<compile_context>
chip_gen: v7x
topology: tpu7x:2x2x1
jax: 0.10.0
libtpu: 0.0.40
codegen_flags: <defaults>
</compile_context>

<pallas_src>
import jax
import jax.numpy as jnp
from jax.experimental import pallas as pl
from jax.experimental.pallas import tpu as pltpu

# ----------------------------- model hyperparameters -----------------------------
SEQ_LEN = 8
BATCH = 2
B_PAD = 8                 # pad batch to the f32 sublane minimum (8)
NUM_EMBEDDINGS = 100      # vocab size
EMBEDDING_DIM = 32
HIDDEN_SIZE = 256         # must be 256 (see note above)
NUM_LAYERS = 2
HEAD_DIM = 256            # first Linear output width
OUT_PAD = 128             # pad the 2-wide logits to a full lane tile
BN_EPS = 1e-5


# ----------------------------- fused forward kernel -----------------------------
def make_fused_kernel(num_layers, seq_len):
    """Kernel ref order: x, [w_ih_l, w_hh_l, b_l] * num_layers, w1, b1, w2, b2, out."""

    def kernel(*refs):
        x_ref = refs[0]
        out_ref = refs[-1]
        pr = refs[1:-1]

        # Load all parameters from VMEM refs once (hoisted out of the time loop).
        layers = []
        idx = 0
        for _ in range(num_layers):
            layers.append((pr[idx][...], pr[idx + 1][...], pr[idx + 2][...]))
            idx += 3
        w1 = pr[idx][...]
        b1 = pr[idx + 1][...]
        w2 = pr[idx + 2][...]
        b2 = pr[idx + 3][...]

        B = x_ref.shape[1]
        H = layers[0][1].shape[0]
        hs = [jnp.zeros((B, H), jnp.float32) for _ in range(num_layers)]

        # Statically unrolled recurrence (S is small) -> scheduler can overlap the
        # input matmul of step t+1 with the recurrent matmul of step t.
        for t in range(seq_len):
            inp = x_ref[t]  # (B, E_in)
            for l in range(num_layers):
                w_ih, w_hh, b = layers[l]
                hs[l] = jnp.tanh(
                    jnp.dot(inp, w_ih, preferred_element_type=jnp.float32)
                    + jnp.dot(hs[l], w_hh, preferred_element_type=jnp.float32)
                    + b
                )
                inp = hs[l]
            # Inter-layer dropout = identity (eval mode).

        # Head: Linear (with folded eval-mode BatchNorm) -> Dropout(identity) -> ReLU
        #       -> Linear (lane-padded to 128) -> Sigmoid.
        y = jnp.maximum(
            jnp.dot(hs[-1], w1, preferred_element_type=jnp.float32) + b1, 0.0
        )
        z = jnp.dot(y, w2, preferred_element_type=jnp.float32) + b2
        out_ref[...] = (1.0 / (1.0 + jnp.exp(-z))).astype(out_ref.dtype)

    return kernel


def fused_forward(embedded_padded, rnn_flat, w1f, b1f, w2p, b2p):
    """embedded_padded: (S, B_PAD, E) -> (B_PAD, OUT_PAD) padded sigmoid outputs."""
    kernel = make_fused_kernel(NUM_LAYERS, SEQ_LEN)
    return pl.pallas_call(
        kernel,
        out_shape=jax.ShapeDtypeStruct((B_PAD, OUT_PAD), jnp.float32),
        compiler_params=pltpu.CompilerParams(vmem_limit_bytes=32 * 1024 * 1024),
    )(embedded_padded, *rnn_flat, w1f, b1f, w2p, b2p)


# ----------------------------- parameter init (deterministic) -----------------------------
def init_params(key):
    params = {}
    num_keys = 1 + 4 * NUM_LAYERS + 4   # embedding + 4/RNN layer + (w1, b1, w2, b2)
    keys = iter(jax.random.split(key, num_keys))

    # nn.Embedding: N(0, 1)
    params["embedding"] = jax.random.normal(
        next(keys), (NUM_EMBEDDINGS, EMBEDDING_DIM), jnp.float32)

    # nn.RNN: U(-1/sqrt(H), 1/sqrt(H)); weights stored pre-transposed for x @ W
    bound_rnn = float(HIDDEN_SIZE) ** -0.5
    for l in range(NUM_LAYERS):
        in_dim = EMBEDDING_DIM if l == 0 else HIDDEN_SIZE
        params[f"w_ih_{l}"] = jax.random.uniform(
            next(keys), (in_dim, HIDDEN_SIZE), jnp.float32, -bound_rnn, bound_rnn)
        params[f"w_hh_{l}"] = jax.random.uniform(
            next(keys), (HIDDEN_SIZE, HIDDEN_SIZE), jnp.float32, -bound_rnn, bound_rnn)
        b_ih = jax.random.uniform(
            next(keys), (1, HIDDEN_SIZE), jnp.float32, -bound_rnn, bound_rnn)
        b_hh = jax.random.uniform(
            next(keys), (1, HIDDEN_SIZE), jnp.float32, -bound_rnn, bound_rnn)
        params[f"b_{l}"] = b_ih + b_hh   # biases are always summed inside the cell

    # Linear(H, 256), stored transposed (H, 256)
    b1w = float(HIDDEN_SIZE) ** -0.5
    params["w1"] = jax.random.uniform(
        next(keys), (HIDDEN_SIZE, HEAD_DIM), jnp.float32, -b1w, b1w)
    params["b1"] = jax.random.uniform(next(keys), (1, HEAD_DIM), jnp.float32, -b1w, b1w)

    # BatchNorm1d(256) default init + running stats
    params["bn_gamma"] = jnp.ones((1, HEAD_DIM), jnp.float32)
    params["bn_beta"] = jnp.zeros((1, HEAD_DIM), jnp.float32)
    params["bn_mean"] = jnp.zeros((1, HEAD_DIM), jnp.float32)
    params["bn_var"] = jnp.ones((1, HEAD_DIM), jnp.float32)

    # Linear(256, 2), stored transposed (256, 2)
    b2w = float(HEAD_DIM) ** -0.5
    params["w2"] = jax.random.uniform(next(keys), (HEAD_DIM, 2), jnp.float32, -b2w, b2w)
    params["b2"] = jax.random.uniform(next(keys), (1, 2), jnp.float32, -b2w, b2w)
    return params


# ----------------------------- full forward -----------------------------
@jax.jit
def your_model_forward(text, params):
    # Embedding lookup (gather) - plain JAX glue, then pad batch 2 -> 8 sublanes.
    embedded = jnp.take(params["embedding"], text, axis=0)              # (S, B, E)
    emb_p = jnp.pad(embedded, ((0, 0), (0, B_PAD - BATCH), (0, 0)))     # (S, B_PAD, E)

    # Fold eval-mode BatchNorm into the first Linear: w1' = w1*scale, b1' = (b1-mean)*scale+beta.
    scale = params["bn_gamma"] * jax.lax.rsqrt(params["bn_var"] + BN_EPS)   # (1, 256)
    w1f = params["w1"] * scale
    b1f = (params["b1"] - params["bn_mean"]) * scale + params["bn_beta"]

    # Pad the 2-wide output head to a full 128-lane tile (unmasked stores inside the kernel).
    w2p = jnp.pad(params["w2"], ((0, 0), (0, OUT_PAD - 2)))
    b2p = jnp.pad(params["b2"], ((0, 0), (0, OUT_PAD - 2)))

    rnn_flat = []
    for l in range(NUM_LAYERS):
        rnn_flat += [params[f"w_ih_{l}"], params[f"w_hh_{l}"], params[f"b_{l}"]]

    out_padded = fused_forward(emb_p, rnn_flat, w1f, b1f, w2p, b2p)     # (B_PAD, OUT_PAD)
    return out_padded[:BATCH, :2]                                       # (B, 2)


if __name__ == "__main__":
    key = jax.random.PRNGKey(0)
    pkey, tkey = jax.random.split(key)
    params = init_params(pkey)
    text = jax.random.randint(tkey, (SEQ_LEN, BATCH), 0, NUM_EMBEDDINGS, dtype=jnp.int32)

    out = your_model_forward(text, params)
    out = jax.block_until_ready(out)
    assert out.shape == (BATCH, 2)
    assert bool(jnp.all(jnp.isfinite(out)))
    assert bool(jnp.all((out >= 0.0) & (out <= 1.0)))   # sigmoid output range
    print("KERNEL_OK")
</pallas_src>

<mosaic_0001>
module attributes {stable_mosaic.version = 11 : i64} {
  func.func @kernel(%arg0: memref<8x8x32xf32, #tpu.memory_space<vmem>>, %arg1: memref<32x256xf32, #tpu.memory_space<vmem>>, %arg2: memref<256x256xf32, #tpu.memory_space<vmem>>, %arg3: memref<1x256xf32, #tpu.memory_space<vmem>>, %arg4: memref<256x256xf32, #tpu.memory_space<vmem>>, %arg5: memref<256x256xf32, #tpu.memory_space<vmem>>, %arg6: memref<1x256xf32, #tpu.memory_space<vmem>>, %arg7: memref<256x256xf32, #tpu.memory_space<vmem>>, %arg8: memref<1x256xf32, #tpu.memory_space<vmem>>, %arg9: memref<256x128xf32, #tpu.memory_space<vmem>>, %arg10: memref<1x128xf32, #tpu.memory_space<vmem>>, %arg11: memref<8x128xf32, #tpu.memory_space<vmem>>) attributes {dimension_semantics = [], scalar_prefetch = 0 : i64, scratch_operands = 0 : i64, tpu.core_type = #tpu.core_type<tc>} {
    %c0 = arith.constant 0 : index
    %c0_0 = arith.constant 0 : index
    %0 = vector.load %arg1[%c0, %c0_0] : memref<32x256xf32, #tpu.memory_space<vmem>>, vector<32x256xf32>
    %c0_1 = arith.constant 0 : index
    %c0_2 = arith.constant 0 : index
    %1 = vector.load %arg2[%c0_1, %c0_2] : memref<256x256xf32, #tpu.memory_space<vmem>>, vector<256x256xf32>
    %c0_3 = arith.constant 0 : index
    %c0_4 = arith.constant 0 : index
    %2 = vector.load %arg3[%c0_3, %c0_4] : memref<1x256xf32, #tpu.memory_space<vmem>>, vector<1x256xf32>
    %c0_5 = arith.constant 0 : index
    %c0_6 = arith.constant 0 : index
    %3 = vector.load %arg4[%c0_5, %c0_6] : memref<256x256xf32, #tpu.memory_space<vmem>>, vector<256x256xf32>
    %c0_7 = arith.constant 0 : index
    %c0_8 = arith.constant 0 : index
    %4 = vector.load %arg5[%c0_7, %c0_8] : memref<256x256xf32, #tpu.memory_space<vmem>>, vector<256x256xf32>
    %c0_9 = arith.constant 0 : index
    %c0_10 = arith.constant 0 : index
    %5 = vector.load %arg6[%c0_9, %c0_10] : memref<1x256xf32, #tpu.memory_space<vmem>>, vector<1x256xf32>
    %c0_11 = arith.constant 0 : index
    %c0_12 = arith.constant 0 : index
    %6 = vector.load %arg7[%c0_11, %c0_12] : memref<256x256xf32, #tpu.memory_space<vmem>>, vector<256x256xf32>
    %c0_13 = arith.constant 0 : index
    %c0_14 = arith.constant 0 : index
    %7 = vector.load %arg8[%c0_13, %c0_14] : memref<1x256xf32, #tpu.memory_space<vmem>>, vector<1x256xf32>
    %c0_15 = arith.constant 0 : index
    %c0_16 = arith.constant 0 : index
    %8 = vector.load %arg9[%c0_15, %c0_16] : memref<256x128xf32, #tpu.memory_space<vmem>>, vector<256x128xf32>
    %c0_17 = arith.constant 0 : index
    %c0_18 = arith.constant 0 : index
    %9 = vector.load %arg10[%c0_17, %c0_18] : memref<1x128xf32, #tpu.memory_space<vmem>>, vector<1x128xf32>
    %cst = arith.constant 0.000000e+00 : f32
    %10 = vector.broadcast %cst : f32 to vector<8x256xf32>
    %cst_19 = arith.constant 0.000000e+00 : f32
    %11 = vector.broadcast %cst_19 : f32 to vector<8x256xf32>
    %c0_20 = arith.constant 0 : index
    %c0_21 = arith.constant 0 : index
    %c0_22 = arith.constant 0 : index
    %12 = vector.load %arg0[%c0_20, %c0_21, %c0_22] : memref<8x8x32xf32, #tpu.memory_space<vmem>>, vector<1x8x32xf32>
    %13 = vector.shape_cast %12 : vector<1x8x32xf32> to vector<8x32xf32>
    %cst_23 = arith.constant dense<0.000000e+00> : vector<8x256xf32>
    %14 = tpu.matmul %13, %0, %cst_23 {dimension_numbers = #tpu.dot_dimension_numbers<[1], [0], [0], [1], [0, 0, 1, 1], [], []>} : vector<8x32xf32>, vector<32x256xf32>, vector<8x256xf32> -> vector<8x256xf32>
    %cst_24 = arith.constant dense<0.000000e+00> : vector<8x256xf32>
    %15 = tpu.matmul %10, %1, %cst_24 {dimension_numbers = #tpu.dot_dimension_numbers<[1], [0], [0], [1], [0, 0, 1, 1], [], []>} : vector<8x256xf32>, vector<256x256xf32>, vector<8x256xf32> -> vector<8x256xf32>
    %16 = arith.addf %14, %15 : vector<8x256xf32>
    %17 = vector.broadcast %2 : vector<1x256xf32> to vector<8x256xf32>
    %18 = arith.addf %16, %17 : vector<8x256xf32>
    %19 = math.tanh %18 : vector<8x256xf32>
    %cst_25 = arith.constant dense<0.000000e+00> : vector<8x256xf32>
    %20 = tpu.matmul %19, %3, %cst_25 {dimension_numbers = #tpu.dot_dimension_numbers<[1], [0], [0], [1], [0, 0, 1, 1], [], []>} : vector<8x256xf32>, vector<256x256xf32>, vector<8x256xf32> -> vector<8x256xf32>
    %cst_26 = arith.constant dense<0.000000e+00> : vector<8x256xf32>
    %21 = tpu.matmul %11, %4, %cst_26 {dimension_numbers = #tpu.dot_dimension_numbers<[1], [0], [0], [1], [0, 0, 1, 1], [], []>} : vector<8x256xf32>, vector<256x256xf32>, vector<8x256xf32> -> vector<8x256xf32>
    %22 = arith.addf %20, %21 : vector<8x256xf32>
    %23 = vector.broadcast %5 : vector<1x256xf32> to vector<8x256xf32>
    %24 = arith.addf %22, %23 : vector<8x256xf32>
    %25 = math.tanh %24 : vector<8x256xf32>
    %c1 = arith.constant 1 : index
    %c0_27 = arith.constant 0 : index
    %c0_28 = arith.constant 0 : index
    %26 = vector.load %arg0[%c1, %c0_27, %c0_28] : memref<8x8x32xf32, #tpu.memory_space<vmem>>, vector<1x8x32xf32>
    %27 = vector.shape_cast %26 : vector<1x8x32xf32> to vector<8x32xf32>
    %cst_29 = arith.constant dense<0.000000e+00> : vector<8x256xf32>
    %28 = tpu.matmul %27, %0, %cst_29 {dimension_numbers = #tpu.dot_dimension_numbers<[1], [0], [0], [1], [0, 0, 1, 1], [], []>} : vector<8x32xf32>, vector<32x256xf32>, vector<8x256xf32> -> vector<8x256xf32>
    %cst_30 = arith.constant dense<0.000000e+00> : vector<8x256xf32>
    %29 = tpu.matmul %19, %1, %cst_30 {dimension_numbers = #tpu.dot_dimension_numbers<[1], [0], [0], [1], [0, 0, 1, 1], [], []>} : vector<8x256xf32>, vector<256x256xf32>, vector<8x256xf32> -> vector<8x256xf32>
    %30 = arith.addf %28, %29 : vector<8x256xf32>
    %31 = vector.broadcast %2 : vector<1x256xf32> to vector<8x256xf32>
    %32 = arith.addf %30, %31 : vector<8x256xf32>
    %33 = math.tanh %32 : vector<8x256xf32>
    %cst_31 = arith.constant dense<0.000000e+00> : vector<8x256xf32>
    %34 = tpu.matmul %33, %3, %cst_31 {dimension_numbers = #tpu.dot_dimension_numbers<[1], [0], [0], [1], [0, 0, 1, 1], [], []>} : vector<8x256xf32>, vector<256x256xf32>, vector<8x256xf32> -> vector<8x256xf32>
    %cst_32 = arith.constant dense<0.000000e+00> : vector<8x256xf32>
    %35 = tpu.matmul %25, %4, %cst_32 {dimension_numbers = #tpu.dot_dimension_numbers<[1], [0], [0], [1], [0, 0, 1, 1], [], []>} : vector<8x256xf32>, vector<256x256xf32>, vector<8x256xf32> -> vector<8x256xf32>
    %36 = arith.addf %34, %35 : vector<8x256xf32>
    %37 = vector.broadcast %5 : vector<1x256xf32> to vector<8x256xf32>
    %38 = arith.addf %36, %37 : vector<8x256xf32>
    %39 = math.tanh %38 : vector<8x256xf32>
    %c2 = arith.constant 2 : index
    %c0_33 = arith.constant 0 : index
    %c0_34 = arith.constant 0 : index
    %40 = vector.load %arg0[%c2, %c0_33, %c0_34] : memref<8x8x32xf32, #tpu.memory_space<vmem>>, vector<1x8x32xf32>
    %41 = vector.shape_cast %40 : vector<1x8x32xf32> to vector<8x32xf32>
    %cst_35 = arith.constant dense<0.000000e+00> : vector<8x256xf32>
    %42 = tpu.matmul %41, %0, %cst_35 {dimension_numbers = #tpu.dot_dimension_numbers<[1], [0], [0], [1], [0, 0, 1, 1], [], []>} : vector<8x32xf32>, vector<32x256xf32>, vector<8x256xf32> -> vector<8x256xf32>
    %cst_36 = arith.constant dense<0.000000e+00> : vector<8x256xf32>
    %43 = tpu.matmul %33, %1, %cst_36 {dimension_numbers = #tpu.dot_dimension_numbers<[1], [0], [0], [1], [0, 0, 1, 1], [], []>} : vector<8x256xf32>, vector<256x256xf32>, vector<8x256xf32> -> vector<8x256xf32>
    %44 = arith.addf %42, %43 : vector<8x256xf32>
    %45 = vector.broadcast %2 : vector<1x256xf32> to vector<8x256xf32>
    %46 = arith.addf %44, %45 : vector<8x256xf32>
    %47 = math.tanh %46 : vector<8x256xf32>
    %cst_37 = arith.constant dense<0.000000e+00> : vector<8x256xf32>
    %48 = tpu.matmul %47, %3, %cst_37 {dimension_numbers = #tpu.dot_dimension_numbers<[1], [0], [0], [1], [0, 0, 1, 1], [], []>} : vector<8x256xf32>, vector<256x256xf32>, vector<8x256xf32> -> vector<8x256xf32>
    %cst_38 = arith.constant dense<0.000000e+00> : vector<8x256xf32>
    %49 = tpu.matmul %39, %4, %cst_38 {dimension_numbers = #tpu.dot_dimension_numbers<[1], [0], [0], [1], [0, 0, 1, 1], [], []>} : vector<8x256xf32>, vector<256x256xf32>, vector<8x256xf32> -> vector<8x256xf32>
    %50 = arith.addf %48, %49 : vector<8x256xf32>
    %51 = vector.broadcast %5 : vector<1x256xf32> to vector<8x256xf32>
    %52 = arith.addf %50, %51 : vector<8x256xf32>
    %53 = math.tanh %52 : vector<8x256xf32>
    %c3 = arith.constant 3 : index
    %c0_39 = arith.constant 0 : index
    %c0_40 = arith.constant 0 : index
    %54 = vector.load %arg0[%c3, %c0_39, %c0_40] : memref<8x8x32xf32, #tpu.memory_space<vmem>>, vector<1x8x32xf32>
    %55 = vector.shape_cast %54 : vector<1x8x32xf32> to vector<8x32xf32>
    %cst_41 = arith.constant dense<0.000000e+00> : vector<8x256xf32>
    %56 = tpu.matmul %55, %0, %cst_41 {dimension_numbers = #tpu.dot_dimension_numbers<[1], [0], [0], [1], [0, 0, 1, 1], [], []>} : vector<8x32xf32>, vector<32x256xf32>, vector<8x256xf32> -> vector<8x256xf32>
    %cst_42 = arith.constant dense<0.000000e+00> : vector<8x256xf32>
    %57 = tpu.matmul %47, %1, %cst_42 {dimension_numbers = #tpu.dot_dimension_numbers<[1], [0], [0], [1], [0, 0, 1, 1], [], []>} : vector<8x256xf32>, vector<256x256xf32>, vector<8x256xf32> -> vector<8x256xf32>
    %58 = arith.addf %56, %57 : vector<8x256xf32>
    %59 = vector.broadcast %2 : vector<1x256xf32> to vector<8x256xf32>
    %60 = arith.addf %58, %59 : vector<8x256xf32>
    %61 = math.tanh %60 : vector<8x256xf32>
    %cst_43 = arith.constant dense<0.000000e+00> : vector<8x256xf32>
    %62 = tpu.matmul %61, %3, %cst_43 {dimension_numbers = #tpu.dot_dimension_numbers<[1], [0], [0], [1], [0, 0, 1, 1], [], []>} : vector<8x256xf32>, vector<256x256xf32>, vector<8x256xf32> -> vector<8x256xf32>
    %cst_44 = arith.constant dense<0.000000e+00> : vector<8x256xf32>
    %63 = tpu.matmul %53, %4, %cst_44 {dimension_numbers = #tpu.dot_dimension_numbers<[1], [0], [0], [1], [0, 0, 1, 1], [], []>} : vector<8x256xf32>, vector<256x256xf32>, vector<8x256xf32> -> vector<8x256xf32>
    %64 = arith.addf %62, %63 : vector<8x256xf32>
    %65 = vector.broadcast %5 : vector<1x256xf32> to vector<8x256xf32>
    %66 = arith.addf %64, %65 : vector<8x256xf32>
    %67 = math.tanh %66 : vector<8x256xf32>
    %c4 = arith.constant 4 : index
    %c0_45 = arith.constant 0 : index
    %c0_46 = arith.constant 0 : index
    %68 = vector.load %arg0[%c4, %c0_45, %c0_46] : memref<8x8x32xf32, #tpu.memory_space<vmem>>, vector<1x8x32xf32>
    %69 = vector.shape_cast %68 : vector<1x8x32xf32> to vector<8x32xf32>
    %cst_47 = arith.constant dense<0.000000e+00> : vector<8x256xf32>
    %70 = tpu.matmul %69, %0, %cst_47 {dimension_numbers = #tpu.dot_dimension_numbers<[1], [0], [0], [1], [0, 0, 1, 1], [], []>} : vector<8x32xf32>, vector<32x256xf32>, vector<8x256xf32> -> vector<8x256xf32>
    %cst_48 = arith.constant dense<0.000000e+00> : vector<8x256xf32>
    %71 = tpu.matmul %61, %1, %cst_48 {dimension_numbers = #tpu.dot_dimension_numbers<[1], [0], [0], [1], [0, 0, 1, 1], [], []>} : vector<8x256xf32>, vector<256x256xf32>, vector<8x256xf32> -> vector<8x256xf32>
    %72 = arith.addf %70, %71 : vector<8x256xf32>
    %73 = vector.broadcast %2 : vector<1x256xf32> to vector<8x256xf32>
    %74 = arith.addf %72, %73 : vector<8x256xf32>
    %75 = math.tanh %74 : vector<8x256xf32>
    %cst_49 = arith.constant dense<0.000000e+00> : vector<8x256xf32>
    %76 = tpu.matmul %75, %3, %cst_49 {dimension_numbers = #tpu.dot_dimension_numbers<[1], [0], [0], [1], [0, 0, 1, 1], [], []>} : vector<8x256xf32>, vector<256x256xf32>, vector<8x256xf32> -> vector<8x256xf32>
    %cst_50 = arith.constant dense<0.000000e+00> : vector<8x256xf32>
    %77 = tpu.matmul %67, %4, %cst_50 {dimension_numbers = #tpu.dot_dimension_numbers<[1], [0], [0], [1], [0, 0, 1, 1], [], []>} : vector<8x256xf32>, vector<256x256xf32>, vector<8x256xf32> -> vector<8x256xf32>
    %78 = arith.addf %76, %77 : vector<8x256xf32>
    %79 = vector.broadcast %5 : vector<1x256xf32> to vector<8x256xf32>
    %80 = arith.addf %78, %79 : vector<8x256xf32>
    %81 = math.tanh %80 : vector<8x256xf32>
    %c5 = arith.constant 5 : index
    %c0_51 = arith.constant 0 : index
    %c0_52 = arith.constant 0 : index
    %82 = vector.load %arg0[%c5, %c0_51, %c0_52] : memref<8x8x32xf32, #tpu.memory_space<vmem>>, vector<1x8x32xf32>
    %83 = vector.shape_cast %82 : vector<1x8x32xf32> to vector<8x32xf32>
    %cst_53 = arith.constant dense<0.000000e+00> : vector<8x256xf32>
    %84 = tpu.matmul %83, %0, %cst_53 {dimension_numbers = #tpu.dot_dimension_numbers<[1], [0], [0], [1], [0, 0, 1, 1], [], []>} : vector<8x32xf32>, vector<32x256xf32>, vector<8x256xf32> -> vector<8x256xf32>
    %cst_54 = arith.constant dense<0.000000e+00> : vector<8x256xf32>
    %85 = tpu.matmul %75, %1, %cst_54 {dimension_numbers = #tpu.dot_dimension_numbers<[1], [0], [0], [1], [0, 0, 1, 1], [], []>} : vector<8x256xf32>, vector<256x256xf32>, vector<8x256xf32> -> vector<8x256xf32>
    %86 = arith.addf %84, %85 : vector<8x256xf32>
    %87 = vector.broadcast %2 : vector<1x256xf32> to vector<8x256xf32>
    %88 = arith.addf %86, %87 : vector<8x256xf32>
    %89 = math.tanh %88 : vector<8x256xf32>
    %cst_55 = arith.constant dense<0.000000e+00> : vector<8x256xf32>
    %90 = tpu.matmul %89, %3, %cst_55 {dimension_numbers = #tpu.dot_dimension_numbers<[1], [0], [0], [1], [0, 0, 1, 1], [], []>} : vector<8x256xf32>, vector<256x256xf32>, vector<8x256xf32> -> vector<8x256xf32>
    %cst_56 = arith.constant dense<0.000000e+00> : vector<8x256xf32>
    %91 = tpu.matmul %81, %4, %cst_56 {dimension_numbers = #tpu.dot_dimension_numbers<[1], [0], [0], [1], [0, 0, 1, 1], [], []>} : vector<8x256xf32>, vector<256x256xf32>, vector<8x256xf32> -> vector<8x256xf32>
    %92 = arith.addf %90, %91 : vector<8x256xf32>
    %93 = vector.broadcast %5 : vector<1x256xf32> to vector<8x256xf32>
    %94 = arith.addf %92, %93 : vector<8x256xf32>
    %95 = math.tanh %94 : vector<8x256xf32>
    %c6 = arith.constant 6 : index
    %c0_57 = arith.constant 0 : index
    %c0_58 = arith.constant 0 : index
    %96 = vector.load %arg0[%c6, %c0_57, %c0_58] : memref<8x8x32xf32, #tpu.memory_space<vmem>>, vector<1x8x32xf32>
    %97 = vector.shape_cast %96 : vector<1x8x32xf32> to vector<8x32xf32>
    %cst_59 = arith.constant dense<0.000000e+00> : vector<8x256xf32>
    %98 = tpu.matmul %97, %0, %cst_59 {dimension_numbers = #tpu.dot_dimension_numbers<[1], [0], [0], [1], [0, 0, 1, 1], [], []>} : vector<8x32xf32>, vector<32x256xf32>, vector<8x256xf32> -> vector<8x256xf32>
    %cst_60 = arith.constant dense<0.000000e+00> : vector<8x256xf32>
    %99 = tpu.matmul %89, %1, %cst_60 {dimension_numbers = #tpu.dot_dimension_numbers<[1], [0], [0], [1], [0, 0, 1, 1], [], []>} : vector<8x256xf32>, vector<256x256xf32>, vector<8x256xf32> -> vector<8x256xf32>
    %100 = arith.addf %98, %99 : vector<8x256xf32>
    %101 = vector.broadcast %2 : vector<1x256xf32> to vector<8x256xf32>
    %102 = arith.addf %100, %101 : vector<8x256xf32>
    %103 = math.tanh %102 : vector<8x256xf32>
    %cst_61 = arith.constant dense<0.000000e+00> : vector<8x256xf32>
    %104 = tpu.matmul %103, %3, %cst_61 {dimension_numbers = #tpu.dot_dimension_numbers<[1], [0], [0], [1], [0, 0, 1, 1], [], []>} : vector<8x256xf32>, vector<256x256xf32>, vector<8x256xf32> -> vector<8x256xf32>
    %cst_62 = arith.constant dense<0.000000e+00> : vector<8x256xf32>
    %105 = tpu.matmul %95, %4, %cst_62 {dimension_numbers = #tpu.dot_dimension_numbers<[1], [0], [0], [1], [0, 0, 1, 1], [], []>} : vector<8x256xf32>, vector<256x256xf32>, vector<8x256xf32> -> vector<8x256xf32>
    %106 = arith.addf %104, %105 : vector<8x256xf32>
    %107 = vector.broadcast %5 : vector<1x256xf32> to vector<8x256xf32>
    %108 = arith.addf %106, %107 : vector<8x256xf32>
    %109 = math.tanh %108 : vector<8x256xf32>
    %c7 = arith.constant 7 : index
    %c0_63 = arith.constant 0 : index
    %c0_64 = arith.constant 0 : index
    %110 = vector.load %arg0[%c7, %c0_63, %c0_64] : memref<8x8x32xf32, #tpu.memory_space<vmem>>, vector<1x8x32xf32>
    %111 = vector.shape_cast %110 : vector<1x8x32xf32> to vector<8x32xf32>
    %cst_65 = arith.constant dense<0.000000e+00> : vector<8x256xf32>
    %112 = tpu.matmul %111, %0, %cst_65 {dimension_numbers = #tpu.dot_dimension_numbers<[1], [0], [0], [1], [0, 0, 1, 1], [], []>} : vector<8x32xf32>, vector<32x256xf32>, vector<8x256xf32> -> vector<8x256xf32>
    %cst_66 = arith.constant dense<0.000000e+00> : vector<8x256xf32>
    %113 = tpu.matmul %103, %1, %cst_66 {dimension_numbers = #tpu.dot_dimension_numbers<[1], [0], [0], [1], [0, 0, 1, 1], [], []>} : vector<8x256xf32>, vector<256x256xf32>, vector<8x256xf32> -> vector<8x256xf32>
    %114 = arith.addf %112, %113 : vector<8x256xf32>
    %115 = vector.broadcast %2 : vector<1x256xf32> to vector<8x256xf32>
    %116 = arith.addf %114, %115 : vector<8x256xf32>
    %117 = math.tanh %116 : vector<8x256xf32>
    %cst_67 = arith.constant dense<0.000000e+00> : vector<8x256xf32>
    %118 = tpu.matmul %117, %3, %cst_67 {dimension_numbers = #tpu.dot_dimension_numbers<[1], [0], [0], [1], [0, 0, 1, 1], [], []>} : vector<8x256xf32>, vector<256x256xf32>, vector<8x256xf32> -> vector<8x256xf32>
    %cst_68 = arith.constant dense<0.000000e+00> : vector<8x256xf32>
    %119 = tpu.matmul %109, %4, %cst_68 {dimension_numbers = #tpu.dot_dimension_numbers<[1], [0], [0], [1], [0, 0, 1, 1], [], []>} : vector<8x256xf32>, vector<256x256xf32>, vector<8x256xf32> -> vector<8x256xf32>
    %120 = arith.addf %118, %119 : vector<8x256xf32>
    %121 = vector.broadcast %5 : vector<1x256xf32> to vector<8x256xf32>
    %122 = arith.addf %120, %121 : vector<8x256xf32>
    %123 = math.tanh %122 : vector<8x256xf32>
    %cst_69 = arith.constant dense<0.000000e+00> : vector<8x256xf32>
    %124 = tpu.matmul %123, %6, %cst_69 {dimension_numbers = #tpu.dot_dimension_numbers<[1], [0], [0], [1], [0, 0, 1, 1], [], []>} : vector<8x256xf32>, vector<256x256xf32>, vector<8x256xf32> -> vector<8x256xf32>
    %125 = vector.broadcast %7 : vector<1x256xf32> to vector<8x256xf32>
    %126 = arith.addf %124, %125 : vector<8x256xf32>
    %cst_70 = arith.constant 0.000000e+00 : f32
    %127 = vector.broadcast %cst_70 : f32 to vector<8x256xf32>
    %128 = arith.maximumf %126, %127 : vector<8x256xf32>
    %cst_71 = arith.constant dense<0.000000e+00> : vector<8x128xf32>
    %129 = tpu.matmul %128, %8, %cst_71 {dimension_numbers = #tpu.dot_dimension_numbers<[1], [0], [0], [1], [0, 0, 1, 1], [], []>} : vector<8x256xf32>, vector<256x128xf32>, vector<8x128xf32> -> vector<8x128xf32>
    %130 = vector.broadcast %9 : vector<1x128xf32> to vector<8x128xf32>
    %131 = arith.addf %129, %130 : vector<8x128xf32>
    %cst_72 = arith.constant 0.000000e+00 : f32
    %132 = vector.broadcast %cst_72 : f32 to vector<8x128xf32>
    %133 = arith.subf %132, %131 : vector<8x128xf32>
    %134 = math.exp %133 : vector<8x128xf32>
    %cst_73 = arith.constant 1.000000e+00 : f32
    %135 = vector.broadcast %cst_73 : f32 to vector<8x128xf32>
    %136 = arith.addf %135, %134 : vector<8x128xf32>
    %cst_74 = arith.constant 1.000000e+00 : f32
    %137 = vector.broadcast %cst_74 : f32 to vector<8x128xf32>
    %138 = arith.divf %137, %136 : vector<8x128xf32>
    %c0_75 = arith.constant 0 : index
    %c0_76 = arith.constant 0 : index
    %139 = vector.load %arg11[%c0_75, %c0_76] : memref<8x128xf32, #tpu.memory_space<vmem>>, vector<8x128xf32>
    tpu.vector_store %arg11[%c0_75, %c0_76], %138 {strides = array<i32>} : memref<8x128xf32, #tpu.memory_space<vmem>>, vector<8x128xf32>,
    return
  }
}

</mosaic_0001>

<bundles_post_ra>
// kernel: your_model_forward.1
= control target key start
LH: loop header
LB: loop body
LE: loop exit
PB: predicated region body
PF: predicated region fallthrough
CT: control target
= control target key end

     0   :  { %v6847_v3 = vmov 0.0   ;;  %vm410_vm0 = vcmask 261120   ;;  %s6835_s2 = inlined_call_operand.vmem [shape: f32[256,256], index: 2, kind: input, shape index: {}]   ;;  %s6836_s5 = inlined_call_operand.vmem [shape: f32[256,256], index: 5, kind: input, shape index: {}]   ;;  %s6837_s1 = inlined_call_operand.vmem [shape: f32[32,256], index: 1, kind: input, shape index: {}]   ;;  %s6838_s0 = inlined_call_operand.vmem [shape: f32[8,8,32], index: 0, kind: input, shape index: {}]   ;;  %s6839_s4 = inlined_call_operand.vmem [shape: f32[256,256], index: 4, kind: input, shape index: {}]   ;;  %s6840_s3 = inlined_call_operand.vmem [shape: f32[1,256], index: 3, kind: input, shape index: {}]   ;;  %s6841_s6 = inlined_call_operand.vmem [shape: f32[1,256], index: 6, kind: input, shape index: {}]   ;;  %s6842_s7 = inlined_call_operand.vmem [shape: f32[256,256], index: 7, kind: input, shape index: {}]   ;;  %s6843_s9 = inlined_call_operand.vmem [shape: f32[256,128], index: 9, kind: input, shape index: {}]   ;;  %s6844_s8 = inlined_call_operand.vmem [shape: f32[1,256], index: 8, kind: input, shape index: {}]   ;;  %s6845_s10 = inlined_call_operand.vmem [shape: f32[1,128], index: 10, kind: input, shape index: {}]   ;;  %s6846_s11 = inlined_call_operand.vmem [shape: f32[8,128], index: 11, kind: output, shape index: {}]  }
   0x1   :  { %v47_v0 = vld [vmem:[%s6835_s2 + $0x8] sm:$0xff]  ;;  %v49_v1 = vld [vmem:[%s6835_s2 + $0x18] sm:$0xff]  ;;  %v46_v2 = vld [vmem:[%s6835_s2] sm:$0xff]  ;;  %403 = vmatprep.mubr.f32.mxu0 %v6847_v3  ;;  %564 = vmatprep.mubr.f32.mxu1 %v6847_v3 }
   0x2   :  { %v4827_v4 = vpack.c.bf16 %v49_v1, %v47_v0  ;;  %v48_v5 = vld [vmem:[%s6835_s2 + $0x10] sm:$0xff]  ;;  %v51_v6 = vld [vmem:[%s6835_s2 + $0x28] sm:$0xff]  ;;  %v53_v7 = vld [vmem:[%s6835_s2 + $0x38] sm:$0xff] }
   0x3   :  { %v4838_v8 = vpack.c.bf16 %v48_v5, %v46_v2  ;;  %v4840_v9 = vpack.c.bf16 %v53_v7, %v51_v6  ;;  %v50_v10 = vld [vmem:[%s6835_s2 + $0x20] sm:$0xff]  ;;  %v52_v11 = vld [vmem:[%s6835_s2 + $0x30] sm:$0xff]  ;;  %v55_v12 = vld [vmem:[%s6835_s2 + $0x48] sm:$0xff] }
   0x4   :  { %7081 = vst [vmem:[#allocation2_spill] sm:$0xff] %v4827_v4  ;;  %2959 = vmatprep.subr.bf16.mxu0 %v4827_v4  ;;  %v57_v13 = vld [vmem:[%s6835_s2 + $0x58] sm:$0xff]  ;;  %v4856_v14 = vpack.c.bf16 %v52_v11, %v50_v10  ;;  %v54_v16 = vld [vmem:[%s6835_s2 + $0x40] sm:$0xff]  ;;  %v56_v17 = vld [vmem:[%s6835_s2 + $0x50] sm:$0xff] }
   0x5   :  { %7082 = vst [vmem:[#allocation3_spill] sm:$0xff] %v4838_v8  ;;  %7083 = vst [vmem:[#allocation4_spill] sm:$0xff] %v4840_v9  ;;  %2961 = vmatpush1.bf16.msra.mxu0 %v4838_v8  ;;  %v4859_v15 = vpack.c.bf16 %v57_v13, %v55_v12  ;;  %v59_v18 = vld [vmem:[%s6835_s2 + $0x68] sm:$0xff]  ;;  %v61_v19 = vld [vmem:[%s6835_s2 + $0x78] sm:$0xff]  ;;  %v4874_v20 = vpack.c.bf16 %v56_v17, %v54_v16 }
   0x6   :  { %7084 = vst [vmem:[#allocation5_spill] sm:$0xff] %v4856_v14  ;;  %2963 = vmatprep.subr.bf16.mxu0 %v4840_v9  ;;  %v4877_v21 = vpack.c.bf16 %v61_v19, %v59_v18  ;;  %v58_v22 = vld [vmem:[%s6835_s2 + $0x60] sm:$0xff]  ;;  %v60_v23 = vld [vmem:[%s6835_s2 + $0x70] sm:$0xff]  ;;  %v63_v24 = vld [vmem:[%s6835_s2 + $0x88] sm:$0xff] }
   0x7   :  { %7085 = vst [vmem:[#allocation6_spill] sm:$0xff] %v4859_v15  ;;  %7086 = vst [vmem:[#allocation7_spill] sm:$0xff] %v4874_v20  ;;  %v65_v25 = vld [vmem:[%s6835_s2 + $0x98] sm:$0xff]  ;;  %v4892_v26 = vpack.c.bf16 %v60_v23, %v58_v22  ;;  %v62_v28 = vld [vmem:[%s6835_s2 + $0x80] sm:$0xff] }
   0x8   :  { %7087 = vst [vmem:[#allocation8_spill] sm:$0xff] %v4877_v21  ;;  %v4895_v27 = vpack.c.bf16 %v65_v25, %v63_v24  ;;  %v64_v29 = vld [vmem:[%s6835_s2 + $0x90] sm:$0xff]  ;;  %v67_v30 = vld [vmem:[%s6835_s2 + $0xa8] sm:$0xff]  ;;  %v69_v31 = vld [vmem:[%s6835_s2 + $0xb8] sm:$0xff] }
   0x9   :  { %2965 = vmatpush1.bf16.msra.mxu0 %v4856_v14  ;;  %7088 = vst [vmem:[#allocation9_spill] sm:$0xff] %v4892_v26  ;;  %v4910_v32 = vpack.c.bf16 %v64_v29, %v62_v28  ;;  %v4913_v33 = vpack.c.bf16 %v69_v31, %v67_v30  ;;  %v66_v34 = vld [vmem:[%s6835_s2 + $0xa0] sm:$0xff]  ;;  %v68_v35 = vld [vmem:[%s6835_s2 + $0xb0] sm:$0xff]  ;;  %v71_v36 = vld [vmem:[%s6835_s2 + $0xc8] sm:$0xff] }
   0xa   :  { %2967 = vmatprep.subr.bf16.mxu0 %v4859_v15  ;;  %7089 = vst [vmem:[#allocation10_spill] sm:$0xff] %v4895_v27  ;;  %v73_v37 = vld [vmem:[%s6835_s2 + $0xd8] sm:$0xff]  ;;  %v4928_v38 = vpack.c.bf16 %v68_v35, %v66_v34  ;;  %v70_v40 = vld [vmem:[%s6835_s2 + $0xc0] sm:$0xff]  ;;  %v72_v41 = vld [vmem:[%s6835_s2 + $0xd0] sm:$0xff] }
   0xb   :  { %7090 = vst [vmem:[#allocation11_spill] sm:$0xff] %v4910_v32  ;;  %7091 = vst [vmem:[#allocation12_spill] sm:$0xff] %v4913_v33  ;;  %v4931_v39 = vpack.c.bf16 %v73_v37, %v71_v36  ;;  %v75_v42 = vld [vmem:[%s6835_s2 + $0xe8] sm:$0xff]  ;;  %v77_v43 = vld [vmem:[%s6835_s2 + $0xf8] sm:$0xff]  ;;  %v4952_v46 = vpack.c.bf16 %v72_v41, %v70_v40 }
   0xc   :  { %7092 = vst [vmem:[#allocation13_spill] sm:$0xff] %v4928_v38  ;;  %v74_v44 = vld [vmem:[%s6835_s2 + $0xe0] sm:$0xff]  ;;  %v76_v45 = vld [vmem:[%s6835_s2 + $0xf0] sm:$0xff]  ;;  %v79_v47 = vld [vmem:[%s6835_s2 + $0x108] sm:$0xff]  ;;  %v4967_v51 = vpack.c.bf16 %v77_v43, %v75_v42 }
   0xd   :  { %2969 = vmatpush1.bf16.msra.mxu0 %v4874_v20  ;;  %7093 = vst [vmem:[#allocation14_spill] sm:$0xff] %v4931_v39  ;;  %7094 = vst [vmem:[#allocation15_spill] sm:$0xff] %v4952_v46  ;;  %v81_v48 = vld [vmem:[%s6835_s2 + $0x118] sm:$0xff]  ;;  %v176_v49 = vld [vmem:[%s6836_s5 + $0x8] sm:$0xff]  ;;  %v5001_v63 = vpack.c.bf16 %v76_v45, %v74_v44 }
   0xe   :  { %2971 = vmatprep.subr.bf16.mxu0 %v4877_v21  ;;  %v178_v50 = vld [vmem:[%s6836_s5 + $0x18] sm:$0xff]  ;;  %7095 = vst [vmem:[#allocation16_spill] sm:$0xff] %v4967_v51  ;;  %v175_v53 = vld [vmem:[%s6836_s5] sm:$0xff]  ;;  %v177_v54 = vld [vmem:[%s6836_s5 + $0x10] sm:$0xff]  ;;  %v5013_v5 = vpack.c.bf16 %v81_v48, %v79_v47 }
   0xf   :  { %v4969_v52 = vpack.c.bf16 %v178_v50, %v176_v49  ;;  %v180_v55 = vld [vmem:[%s6836_s5 + $0x28] sm:$0xff]  ;;  %v4980_v56 = vpack.c.bf16 %v177_v54, %v175_v53  ;;  %v182_v57 = vld [vmem:[%s6836_s5 + $0x38] sm:$0xff]  ;;  %v179_v58 = vld [vmem:[%s6836_s5 + $0x20] sm:$0xff]  ;;  %7097 = vst [vmem:[#allocation18_spill] sm:$0xff] %v5001_v63 }
  0x10   :  { %v181_v59 = vld [vmem:[%s6836_s5 + $0x30] sm:$0xff]  ;;  %v4992_v60 = vpack.c.bf16 %v182_v57, %v180_v55  ;;  %v184_v61 = vld [vmem:[%s6836_s5 + $0x48] sm:$0xff]  ;;  %v186_v62 = vld [vmem:[%s6836_s5 + $0x58] sm:$0xff]  ;;  %7098 = vst [vmem:[#allocation19_spill] sm:$0xff] %v5013_v5 }
  0x11   :  { %2973 = vmatpush1.bf16.msra.mxu0 %v4892_v26  ;;  %7096 = vst [vmem:[#allocation17_spill] sm:$0xff] %v4969_v52  ;;  %3031 = vmatprep.subr.bf16.mxu1 %v4969_v52  ;;  %v78_v0 = vld [vmem:[%s6835_s2 + $0x100] sm:$0xff]  ;;  %v80_v1 = vld [vmem:[%s6835_s2 + $0x110] sm:$0xff]  ;;  %v5010_v2 = vpack.c.bf16 %v181_v59, %v179_v58  ;;  %v83_v6 = vld [vmem:[%s6835_s2 + $0x128] sm:$0xff]  ;;  %v5019_v7 = vpack.c.bf16 %v186_v62, %v184_v61 }
  0x12   :  { %2975 = vmatprep.subr.bf16.mxu0 %v4895_v27  ;;  %3033 = vmatpush1.bf16.msra.mxu1 %v4980_v56  ;;  %v183_v10 = vld [vmem:[%s6836_s5 + $0x40] sm:$0xff]  ;;  %v185_v11 = vld [vmem:[%s6836_s5 + $0x50] sm:$0xff]  ;;  %v85_v12 = vld [vmem:[%s6835_s2 + $0x138] sm:$0xff]  ;;  %v5037_v17 = vpack.c.bf16 %v80_v1, %v78_v0 }
  0x13   :  { %3035 = vmatprep.subr.bf16.mxu1 %v4992_v60  ;;  %v188_v13 = vld [vmem:[%s6836_s5 + $0x68] sm:$0xff]  ;;  %v190_v16 = vld [vmem:[%s6836_s5 + $0x78] sm:$0xff]  ;;  %v82_v18 = vld [vmem:[%s6835_s2 + $0x120] sm:$0xff]  ;;  %v5046_v22 = vpack.c.bf16 %v185_v11, %v183_v10  ;;  %v5049_v23 = vpack.c.bf16 %v85_v12, %v83_v6 }
  0x14   :  { %7099 = vst [vmem:[#allocation20_spill] sm:$0xff] %v5037_v17  ;;  %v84_v19 = vld [vmem:[%s6835_s2 + $0x130] sm:$0xff]  ;;  %v87_v24 = vld [vmem:[%s6835_s2 + $0x148] sm:$0xff]  ;;  %v5055_v25 = vpack.c.bf16 %v190_v16, %v188_v13  ;;  %v187_v28 = vld [vmem:[%s6836_s5 + $0x60] sm:$0xff] }
  0x15   :  { %2977 = vmatpush1.bf16.msra.mxu0 %v4910_v32  ;;  %7100 = vst [vmem:[#allocation21_spill] sm:$0xff] %v5049_v23  ;;  %v189_v29 = vld [vmem:[%s6836_s5 + $0x70] sm:$0xff]  ;;  %v89_v30 = vld [vmem:[%s6835_s2 + $0x158] sm:$0xff]  ;;  %v192_v31 = vld [vmem:[%s6836_s5 + $0x88] sm:$0xff]  ;;  %v5073_v35 = vpack.c.bf16 %v84_v19, %v82_v18 }
  0x16   :  { %2979 = vmatprep.subr.bf16.mxu0 %v4913_v33  ;;  %3037 = vmatpush1.bf16.msra.mxu1 %v5010_v2  ;;  %v194_v34 = vld [vmem:[%s6836_s5 + $0x98] sm:$0xff]  ;;  %v86_v36 = vld [vmem:[%s6835_s2 + $0x140] sm:$0xff]  ;;  %v88_v37 = vld [vmem:[%s6835_s2 + $0x150] sm:$0xff]  ;;  %v5082_v40 = vpack.c.bf16 %v189_v29, %v187_v28  ;;  %v5085_v41 = vpack.c.bf16 %v89_v30, %v87_v24 }
  0x17   :  { %3039 = vmatprep.subr.bf16.mxu1 %v5019_v7  ;;  %7101 = vst [vmem:[#allocation22_spill] sm:$0xff] %v5073_v35  ;;  %v91_v42 = vld [vmem:[%s6835_s2 + $0x168] sm:$0xff]  ;;  %v5091_v43 = vpack.c.bf16 %v194_v34, %v192_v31  ;;  %v191_v44 = vld [vmem:[%s6836_s5 + $0x80] sm:$0xff]  ;;  %v193_v45 = vld [vmem:[%s6836_s5 + $0x90] sm:$0xff]  ;;  %v5109_v50 = vpack.c.bf16 %v88_v37, %v86_v36 }
  0x18   :  { %7102 = vst [vmem:[#allocation23_spill] sm:$0xff] %v5085_v41  ;;  %v93_v47 = vld [vmem:[%s6835_s2 + $0x178] sm:$0xff]  ;;  %v196_v48 = vld [vmem:[%s6836_s5 + $0xa8] sm:$0xff]  ;;  %v90_v53 = vld [vmem:[%s6835_s2 + $0x160] sm:$0xff]  ;;  %v5118_v55 = vpack.c.bf16 %v193_v45, %v191_v44 }
  0x19   :  { %2981 = vmatpush1.bf16.msra.mxu0 %v4928_v38  ;;  %v198_v49 = vld [vmem:[%s6836_s5 + $0xb8] sm:$0xff]  ;;  %7103 = vst [vmem:[#allocation24_spill] sm:$0xff] %v5109_v50  ;;  %v92_v54 = vld [vmem:[%s6835_s2 + $0x170] sm:$0xff]  ;;  %v5121_v57 = vpack.c.bf16 %v93_v47, %v91_v42  ;;  %v95_v58 = vld [vmem:[%s6835_s2 + $0x188] sm:$0xff] }
  0x1a   :  { %2983 = vmatprep.subr.bf16.mxu0 %v4931_v39  ;;  %3041 = vmatpush1.bf16.msra.mxu1 %v5046_v22  ;;  %v5127_v59 = vpack.c.bf16 %v198_v49, %v196_v48  ;;  %v195_v61 = vld [vmem:[%s6836_s5 + $0xa0] sm:$0xff]  ;;  %v197_v62 = vld [vmem:[%s6836_s5 + $0xb0] sm:$0xff]  ;;  %v97_v0 = vld [vmem:[%s6835_s2 + $0x198] sm:$0xff]  ;;  %v5145_v10 = vpack.c.bf16 %v92_v54, %v90_v53 }
  0x1b   :  { %3043 = vmatprep.subr.bf16.mxu1 %v5055_v25  ;;  %7104 = vst [vmem:[#allocation25_spill] sm:$0xff] %v5121_v57  ;;  %v200_v1 = vld [vmem:[%s6836_s5 + $0xc8] sm:$0xff]  ;;  %v202_v6 = vld [vmem:[%s6836_s5 + $0xd8] sm:$0xff]  ;;  %v94_v11 = vld [vmem:[%s6835_s2 + $0x180] sm:$0xff]  ;;  %v5154_v13 = vpack.c.bf16 %v197_v62, %v195_v61  ;;  %v5157_v16 = vpack.c.bf16 %v97_v0, %v95_v58 }
  0x1c   :  { %7105 = vst [vmem:[#allocation26_spill] sm:$0xff] %v5145_v10  ;;  %v96_v12 = vld [vmem:[%s6835_s2 + $0x190] sm:$0xff]  ;;  %v99_v18 = vld [vmem:[%s6835_s2 + $0x1a8] sm:$0xff]  ;;  %v5163_v19 = vpack.c.bf16 %v202_v6, %v200_v1  ;;  %v199_v24 = vld [vmem:[%s6836_s5 + $0xc0] sm:$0xff] }
  0x1d   :  { %2985 = vmatpush1.bf16.msra.mxu0 %v4952_v46  ;;  %7106 = vst [vmem:[#allocation27_spill] sm:$0xff] %v5157_v16  ;;  %v201_v28 = vld [vmem:[%s6836_s5 + $0xd0] sm:$0xff]  ;;  %v101_v29 = vld [vmem:[%s6835_s2 + $0x1b8] sm:$0xff]  ;;  %v204_v30 = vld [vmem:[%s6836_s5 + $0xe8] sm:$0xff]  ;;  %v5181_v34 = vpack.c.bf16 %v96_v12, %v94_v11 }
  0x1e   :  { %2987 = vmatprep.subr.bf16.mxu0 %v4967_v51  ;;  %3045 = vmatpush1.bf16.msra.mxu1 %v5082_v40  ;;  %v206_v31 = vld [vmem:[%s6836_s5 + $0xf8] sm:$0xff]  ;;  %v98_v36 = vld [vmem:[%s6835_s2 + $0x1a0] sm:$0xff]  ;;  %v100_v37 = vld [vmem:[%s6835_s2 + $0x1b0] sm:$0xff]  ;;  %v5190_v42 = vpack.c.bf16 %v201_v28, %v199_v24  ;;  %v5193_v44 = vpack.c.bf16 %v101_v29, %v99_v18 }
  0x1f   :  { %3047 = vmatprep.subr.bf16.mxu1 %v5091_v43  ;;  %7107 = vst [vmem:[#allocation28_spill] sm:$0xff] %v5181_v34  ;;  %v103_v45 = vld [vmem:[%s6835_s2 + $0x1c8] sm:$0xff]  ;;  %v5199_v47 = vpack.c.bf16 %v206_v31, %v204_v30  ;;  %v203_v48 = vld [vmem:[%s6836_s5 + $0xe0] sm:$0xff]  ;;  %v205_v49 = vld [vmem:[%s6836_s5 + $0xf0] sm:$0xff]  ;;  %v5217_v61 = vpack.c.bf16 %v100_v37, %v98_v36 }
  0x20   :  { %7108 = vst [vmem:[#allocation29_spill] sm:$0xff] %v5193_v44  ;;  %v105_v53 = vld [vmem:[%s6835_s2 + $0x1d8] sm:$0xff]  ;;  %v208_v54 = vld [vmem:[%s6836_s5 + $0x108] sm:$0xff]  ;;  %v102_v62 = vld [vmem:[%s6835_s2 + $0x1c0] sm:$0xff]  ;;  %v5226_v1 = vpack.c.bf16 %v205_v49, %v203_v48 }
  0x21   :  { %2989 = vmatpush1.bf16.msra.mxu0 %v5001_v63  ;;  %v210_v58 = vld [vmem:[%s6836_s5 + $0x118] sm:$0xff]  ;;  %7109 = vst [vmem:[#allocation30_spill] sm:$0xff] %v5217_v61  ;;  %v104_v0 = vld [vmem:[%s6835_s2 + $0x1d0] sm:$0xff]  ;;  %v5229_v6 = vpack.c.bf16 %v105_v53, %v103_v45  ;;  %v107_v11 = vld [vmem:[%s6835_s2 + $0x1e8] sm:$0xff] }
  0x22   :  { %2991 = vmatprep.subr.bf16.mxu0 %v5013_v5  ;;  %3049 = vmatpush1.bf16.msra.mxu1 %v5118_v55  ;;  %7110 = vst [vmem:[#allocation31_spill] sm:$0xff] %v5226_v1  ;;  %v5235_v12 = vpack.c.bf16 %v210_v58, %v208_v54  ;;  %v207_v18 = vld [vmem:[%s6836_s5 + $0x100] sm:$0xff]  ;;  %v209_v24 = vld [vmem:[%s6836_s5 + $0x110] sm:$0xff]  ;;  %v109_v28 = vld [vmem:[%s6835_s2 + $0x1f8] sm:$0xff]  ;;  %v5253_v31 = vpack.c.bf16 %v104_v0, %v102_v62 }
  0x23   :  { %3051 = vmatprep.subr.bf16.mxu1 %v5127_v59  ;;  %7111 = vst [vmem:[#allocation32_spill] sm:$0xff] %v5229_v6  ;;  %v212_v29 = vld [vmem:[%s6836_s5 + $0x128] sm:$0xff]  ;;  %v214_v30 = vld [vmem:[%s6836_s5 + $0x138] sm:$0xff]  ;;  %v106_v36 = vld [vmem:[%s6835_s2 + $0x1e0] sm:$0xff]  ;;  %v5262_v45 = vpack.c.bf16 %v209_v24, %v207_v18  ;;  %v5265_v48 = vpack.c.bf16 %v109_v28, %v107_v11 }
  0x24   :  { %7112 = vst [vmem:[#allocation33_spill] sm:$0xff] %v5235_v12  ;;  %7113 = vst [vmem:[#allocation34_spill] sm:$0xff] %v5253_v31  ;;  %v108_v37 = vld [vmem:[%s6835_s2 + $0x1f0] sm:$0xff]  ;;  %v39_v49 = vld [vmem:[%s6837_s1 + $0x8] sm:$0xff]  ;;  %v5271_v53 = vpack.c.bf16 %v214_v30, %v212_v29 }
  0x25   :  { %2993 = vmatpush1.bf16.msra.mxu0 %v5037_v17  ;;  %7114 = vst [vmem:[#allocation35_spill] sm:$0xff] %v5262_v45  ;;  %7115 = vst [vmem:[#allocation36_spill] sm:$0xff] %v5265_v48  ;;  %v211_v54 = vld [vmem:[%s6836_s5 + $0x120] sm:$0xff]  ;;  %v213_v58 = vld [vmem:[%s6836_s5 + $0x130] sm:$0xff]  ;;  %v5289_v18 = vpack.c.bf16 %v108_v37, %v106_v36 }
  0x26   :  { %2995 = vmatprep.subr.bf16.mxu0 %v5049_v23  ;;  %3053 = vmatpush1.bf16.msra.mxu1 %v5154_v13  ;;  %7116 = vst [vmem:[#allocation37_spill] sm:$0xff] %v5271_v53  ;;  %v41_v62 = vld [vmem:[%s6837_s1 + $0x18] sm:$0xff]  ;;  %v216_v0 = vld [vmem:[%s6836_s5 + $0x148] sm:$0xff]  ;;  %v5292_v24 = vpack.c.bf16 %v213_v58, %v211_v54  ;;  %v38_v29 = vld [vmem:[%s6837_s1] sm:$0xff] }
  0x27   :  { %3055 = vmatprep.subr.bf16.mxu1 %v5163_v19  ;;  %v218_v11 = vld [vmem:[%s6836_s5 + $0x158] sm:$0xff]  ;;  %7117 = vst [vmem:[#allocation38_spill] sm:$0xff] %v5289_v18  ;;  %v5295_v28 = vpack.c.bf16 %v41_v62, %v39_v49  ;;  %v40_v30 = vld [vmem:[%s6837_s1 + $0x10] sm:$0xff]  ;;  %v43_v36 = vld [vmem:[%s6837_s1 + $0x28] sm:$0xff] }
  0x28   :  { %7118 = vst [vmem:[#allocation39_spill] sm:$0xff] %v5292_v24  ;;  %v5307_v37 = vpack.c.bf16 %v218_v11, %v216_v0  ;;  %v45_v49 = vld [vmem:[%s6837_s1 + $0x38] sm:$0xff]  ;;  %v215_v54 = vld [vmem:[%s6836_s5 + $0x140] sm:$0xff]  ;;  %v217_v58 = vld [vmem:[%s6836_s5 + $0x150] sm:$0xff]  ;;  %v5325_v11 = vpack.c.bf16 %v40_v30, %v38_v29 }
  0x29   :  { %2997 = vmatpush1.bf16.msra.mxu0 %v5073_v35  ;;  %7119 = vst [vmem:[#allocation40_spill] sm:$0xff] %v5295_v28  ;;  %v220_v62 = vld [vmem:[%s6836_s5 + $0x168] sm:$0xff]  ;;  %v222_v0 = vld [vmem:[%s6836_s5 + $0x178] sm:$0xff]  ;;  %v5329_v3 = vpack.c.bf16 %v45_v49, %v43_v36  ;;  %v219_v30 = vld [vmem:[%s6836_s5 + $0x160] sm:$0xff]  ;;  %v7125_v49 = vmov 0.0  }
  0x2a   :  { %2999 = vmatprep.subr.bf16.mxu0 %v5085_v41  ;;  %3057 = vmatpush1.bf16.msra.mxu1 %v5190_v42  ;;  %7120 = vst [vmem:[#allocation41_spill] sm:$0xff] %v5307_v37  ;;  %7121 = vst [vmem:[#allocation42_spill] sm:$0xff] %v5325_v11  ;;  %v5340_v29 = vpack.c.bf16 %v222_v0, %v220_v62  ;;  %v221_v36 = vld [vmem:[%s6836_s5 + $0x170] sm:$0xff] }
  0x2b   :  { %3059 = vmatprep.subr.bf16.mxu1 %v5199_v47  ;;  %7122 = vst [vmem:[#allocation43_spill] sm:$0xff] %v5329_v3  ;;  %v5361_v62 = vpack.c.bf16 %v221_v36, %v219_v30  ;;  %v230_v30 = vld [vmem:[%s6836_s5 + $0x1b8] sm:$0xff] }
  0x2c   :  { %7124 = vst [vmem:[#allocation45_spill] sm:$0xff] %v5340_v29 }
  0x2d   :  { %3001 = vmatpush1.bf16.msra.mxu0 %v5109_v50  ;;  %7127 = vst [vmem:[#allocation47_spill] sm:$0xff] %v5361_v62 }
  0x2e   :  { %3003 = vmatprep.subr.bf16.mxu0 %v5121_v57  ;;  %3061 = vmatpush1.bf16.msra.mxu1 %v5226_v1 }
  0x2f   :  { %3063 = vmatprep.subr.bf16.mxu1 %v5235_v12  ;;  %v5338_v12 = vpack.c.bf16 %v217_v58, %v215_v54  ;;  %v226_v54 = vld [vmem:[%s6836_s5 + $0x198] sm:$0xff] }
  0x31   :  { %3005 = vmatpush1.bf16.msra.mxu0 %v5145_v10  ;;  %7123 = vst [vmem:[#allocation44_spill] sm:$0xff] %v5338_v12 }
  0x32   :  { %3007 = vmatprep.subr.bf16.mxu0 %v5157_v16  ;;  %3065 = vmatpush1.bf16.msra.mxu1 %v5262_v45  ;;  %v44_v45 = vld [vmem:[%s6837_s1 + $0x30] sm:$0xff] }
  0x33   :  { %3067 = vmatprep.subr.bf16.mxu1 %v5271_v53  ;;  %v42_v53 = vld [vmem:[%s6837_s1 + $0x20] sm:$0xff] }
  0x34   :  { %v5356_v58 = vpack.c.bf16 %v44_v45, %v42_v53  ;;  %v225_v45 = vld [vmem:[%s6836_s5 + $0x190] sm:$0xff]  ;;  %v228_v53 = vld [vmem:[%s6836_s5 + $0x1a8] sm:$0xff] }
  0x35   :  { %3009 = vmatpush1.bf16.msra.mxu0 %v5181_v34 }
  0x36   :  { %3011 = vmatprep.subr.bf16.mxu0 %v5193_v44  ;;  %3069 = vmatpush1.bf16.msra.mxu1 %v5292_v24  ;;  %v224_v24 = vld [vmem:[%s6836_s5 + $0x188] sm:$0xff]  ;;  %7126 = vst [vmem:[#allocation46_spill] sm:$0xff] %v5356_v58 }
  0x37   :  { %3071 = vmatprep.subr.bf16.mxu1 %v5307_v37  ;;  %v5364_v0 = vpack.c.bf16 %v226_v54, %v224_v24  ;;  %v223_v37 = vld [vmem:[%s6836_s5 + $0x180] sm:$0xff]  ;;  %v5387_v54 = vpack.c.bf16 %v230_v30, %v228_v53 }
  0x38   :  { %v338_v24 = vld [vmem:[%s6838_s0] sm:$0xff]  ;;  %v5383_v36 = vpack.c.bf16 %v225_v45, %v223_v37  ;;  %v232_v37 = vld [vmem:[%s6836_s5 + $0x1c8] sm:$0xff]  ;;  %v234_v45 = vld [vmem:[%s6836_s5 + $0x1d8] sm:$0xff] }
  0x39   :  { %3013 = vmatpush1.bf16.msra.mxu0 %v5217_v61  ;;  %7128 = vst [vmem:[#allocation48_spill] sm:$0xff] %v5364_v0  ;;  %7130 = vst [vmem:[#allocation50_spill] sm:$0xff] %v5387_v54  ;;  %v5408_v30 = vpack.c.bf16 %v234_v45, %v232_v37  ;;  %v235_v45 = vld [vmem:[%s6836_s5 + $0x1e0] sm:$0xff] }
  0x3a   :  { %3015 = vmatprep.subr.bf16.mxu0 %v5229_v6  ;;  %3073 = vmatpush1.bf16.msra.mxu1 %v5338_v12  ;;  %7129 = vst [vmem:[#allocation49_spill] sm:$0xff] %v5383_v36  ;;  %v229_v12 = vld [vmem:[%s6836_s5 + $0x1b0] sm:$0xff] }
  0x3b   :  { %3075 = vmatprep.subr.bf16.mxu1 %v5340_v29  ;;  %v227_v29 = vld [vmem:[%s6836_s5 + $0x1a0] sm:$0xff]  ;;  %7132 = vst [vmem:[#allocation52_spill] sm:$0xff] %v5408_v30 }
  0x3c   :  { %v5404_v53 = vpack.c.bf16 %v229_v12, %v227_v29  ;;  %v238_v12 = vld [vmem:[%s6836_s5 + $0x1f8] sm:$0xff] }
  0x3d   :  { %3017 = vmatpush1.bf16.msra.mxu0 %v5253_v31 }
  0x3e   :  { %3019 = vmatprep.subr.bf16.mxu0 %v5265_v48  ;;  %3077 = vmatpush1.bf16.msra.mxu1 %v5361_v62  ;;  %7131 = vst [vmem:[#allocation51_spill] sm:$0xff] %v5404_v53 }
  0x3f   :  { %3079 = vmatprep.subr.bf16.mxu1 %v5364_v0  ;;  %v233_v0 = vld [vmem:[%s6836_s5 + $0x1d0] sm:$0xff] }
  0x41   :  { %3021 = vmatpush1.bf16.msra.mxu0 %v5289_v18 }
  0x42   :  { %3023 = vmatprep.subr.bf16.mxu0 %v5295_v28  ;;  %3081 = vmatpush1.bf16.msra.mxu1 %v5383_v36  ;;  %v236_v36 = vld [vmem:[%s6836_s5 + $0x1e8] sm:$0xff] }
  0x43   :  { %3083 = vmatprep.subr.bf16.mxu1 %v5387_v54  ;;  %v5428_v37 = vpack.c.bf16 %v238_v12, %v236_v36  ;;  %v237_v54 = vld [vmem:[%s6836_s5 + $0x1f0] sm:$0xff]  ;;  %v111_v12 = vld [vmem:[%s6839_s4] sm:$0xff] }
  0x44   :  { %404 = vmatmul.mubr.f32.vlgmr.msra.gmra.mrb[0].mxu0 %v7125_v49  ;;  %v5444_v36 = vpack.c.bf16 %v237_v54, %v235_v45  ;;  %v118_v54 = vld [vmem:[%s6839_s4 + $0x38] sm:$0xff] }
  0x45   :  { %3025 = vmatpush1.bf16.msra.mxu0 %v5325_v11  ;;  %478 = vmatprep.mubr.f32.mxu0 %v7125_v49  ;;  %7134 = vst [vmem:[#allocation54_spill] sm:$0xff] %v5428_v37 }
  0x46   :  { %3027 = vmatprep.subr.bf16.mxu0 %v5329_v3  ;;  %3085 = vmatpush1.bf16.msra.mxu1 %v5404_v53  ;;  %v112_v53 = vld [vmem:[%s6839_s4 + $0x8] sm:$0xff]  ;;  %7135 = vst [vmem:[#allocation55_spill] sm:$0xff] %v5444_v36 }
  0x47   :  { %3087 = vmatprep.subr.bf16.mxu1 %v5408_v30  ;;  %v113_v30 = vld [vmem:[%s6839_s4 + $0x10] sm:$0xff] }
  0x49   :  { %3029 = vmatpush1.bf16.msra.mxu0 %v5356_v58 }
  0x4a   :  { %3159 = vmatprep.subr.bf16.mxu0 %v4827_v4 }
  0x4c   :  { %2907 = vmatmul.mubr.msk.f32.vlgmr.msra.gmra.mrb[0].mxu0 %vm410_vm0, %v338_v24  ;;  %v231_v24 = vld [vmem:[%s6836_s5 + $0x1c0] sm:$0xff] }
  0x4d   :  { %3161 = vmatpush1.bf16.msra.mxu0 %v4838_v8  ;;  %v5424_v29 = vpack.c.bf16 %v233_v0, %v231_v24  ;;  %v114_v0 = vld [vmem:[%s6839_s4 + $0x18] sm:$0xff] }
  0x4e   :  { %3163 = vmatprep.subr.bf16.mxu0 %v4840_v9  ;;  %v5448_v24 = vpack.c.bf16 %v114_v0, %v112_v53  ;;  %v5464_v53 = vpack.c.bf16 %v113_v30, %v111_v12  ;;  %v115_v0 = vld [vmem:[%s6839_s4 + $0x20] sm:$0xff]  ;;  %v122_v30 = vld [vmem:[%s6839_s4 + $0x58] sm:$0xff] }
  0x4f   :  { %7133 = vst [vmem:[#allocation53_spill] sm:$0xff] %v5424_v29  ;;  %3089 = vmatpush1.bf16.msra.mxu1 %v5424_v29  ;;  %v116_v29 = vld [vmem:[%s6839_s4 + $0x28] sm:$0xff] }
  0x50   :  { %3091 = vmatprep.subr.bf16.mxu1 %v5428_v37  ;;  %7136 = vst [vmem:[#allocation56_spill] sm:$0xff] %v5448_v24  ;;  %7137 = vst [vmem:[#allocation57_spill] sm:$0xff] %v5464_v53  ;;  %v5468_v45 = vpack.c.bf16 %v118_v54, %v116_v29  ;;  %v117_v37 = vld [vmem:[%s6839_s4 + $0x30] sm:$0xff]  ;;  %v119_v54 = vld [vmem:[%s6839_s4 + $0x40] sm:$0xff] }
  0x51   :  { %3165 = vmatpush1.bf16.msra.mxu0 %v4856_v14  ;;  %v5485_v29 = vpack.c.bf16 %v117_v37, %v115_v0  ;;  %v126_v37 = vld [vmem:[%s6839_s4 + $0x78] sm:$0xff] }
  0x52   :  { %3167 = vmatprep.subr.bf16.mxu0 %v4859_v15  ;;  %7138 = vst [vmem:[#allocation58_spill] sm:$0xff] %v5468_v45 }
  0x53   :  { %3093 = vmatpush1.bf16.msra.mxu1 %v5444_v36  ;;  %v120_v36 = vld [vmem:[%s6839_s4 + $0x48] sm:$0xff]  ;;  %7139 = vst [vmem:[#allocation59_spill] sm:$0xff] %v5485_v29 }
  0x54   :  { %3095 = vmatprep.subr.bf16.mxu1 %v5448_v24  ;;  %v5489_v12 = vpack.c.bf16 %v122_v30, %v120_v36  ;;  %v121_v24 = vld [vmem:[%s6839_s4 + $0x50] sm:$0xff]  ;;  %v123_v30 = vld [vmem:[%s6839_s4 + $0x60] sm:$0xff] }
  0x55   :  { %3169 = vmatpush1.bf16.msra.mxu0 %v4874_v20  ;;  %v5505_v36 = vpack.c.bf16 %v121_v24, %v119_v54  ;;  %v130_v24 = vld [vmem:[%s6839_s4 + $0x98] sm:$0xff] }
  0x56   :  { %3171 = vmatprep.subr.bf16.mxu0 %v4877_v21  ;;  %565 = vmatmul.mubr.f32.vlgmr.msra.gmra.mrb[0].mxu1 %v7125_v49  ;;  %7140 = vst [vmem:[#allocation60_spill] sm:$0xff] %v5489_v12 }
  0x57   :  { %3097 = vmatpush1.bf16.msra.mxu1 %v5464_v53  ;;  %v124_v53 = vld [vmem:[%s6839_s4 + $0x68] sm:$0xff]  ;;  %7141 = vst [vmem:[#allocation61_spill] sm:$0xff] %v5505_v36 }
  0x58   :  { %3099 = vmatprep.subr.bf16.mxu1 %v5468_v45  ;;  %v5509_v0 = vpack.c.bf16 %v126_v37, %v124_v53  ;;  %v125_v45 = vld [vmem:[%s6839_s4 + $0x70] sm:$0xff]  ;;  %v127_v37 = vld [vmem:[%s6839_s4 + $0x80] sm:$0xff] }
  0x59   :  { %3173 = vmatpush1.bf16.msra.mxu0 %v4892_v26  ;;  %v5525_v53 = vpack.c.bf16 %v125_v45, %v123_v30  ;;  %v134_v45 = vld [vmem:[%s6839_s4 + $0xb8] sm:$0xff] }
  0x5a   :  { %3175 = vmatprep.subr.bf16.mxu0 %v4895_v27  ;;  %7142 = vst [vmem:[#allocation62_spill] sm:$0xff] %v5509_v0 }
  0x5b   :  { %3101 = vmatpush1.bf16.msra.mxu1 %v5485_v29  ;;  %v128_v29 = vld [vmem:[%s6839_s4 + $0x88] sm:$0xff]  ;;  %7143 = vst [vmem:[#allocation63_spill] sm:$0xff] %v5525_v53 }
  0x5c   :  { %3103 = vmatprep.subr.bf16.mxu1 %v5489_v12  ;;  %v5529_v54 = vpack.c.bf16 %v130_v24, %v128_v29  ;;  %v129_v12 = vld [vmem:[%s6839_s4 + $0x90] sm:$0xff]  ;;  %v131_v24 = vld [vmem:[%s6839_s4 + $0xa0] sm:$0xff] }
  0x5d   :  { %3177 = vmatpush1.bf16.msra.mxu0 %v4910_v32  ;;  %v5545_v29 = vpack.c.bf16 %v129_v12, %v127_v37  ;;  %v138_v12 = vld [vmem:[%s6839_s4 + $0xd8] sm:$0xff] }
  0x5e   :  { %3179 = vmatprep.subr.bf16.mxu0 %v4913_v33  ;;  %7144 = vst [vmem:[#allocation64_spill] sm:$0xff] %v5529_v54 }
  0x5f   :  { %3105 = vmatpush1.bf16.msra.mxu1 %v5505_v36  ;;  %v132_v36 = vld [vmem:[%s6839_s4 + $0xa8] sm:$0xff]  ;;  %7145 = vst [vmem:[#allocation65_spill] sm:$0xff] %v5545_v29 }
  0x60   :  { %3107 = vmatprep.subr.bf16.mxu1 %v5509_v0  ;;  %v5549_v30 = vpack.c.bf16 %v134_v45, %v132_v36  ;;  %v133_v0 = vld [vmem:[%s6839_s4 + $0xb0] sm:$0xff]  ;;  %v135_v45 = vld [vmem:[%s6839_s4 + $0xc0] sm:$0xff] }
  0x61   :  { %3181 = vmatpush1.bf16.msra.mxu0 %v4928_v38  ;;  %v5565_v36 = vpack.c.bf16 %v133_v0, %v131_v24  ;;  %v142_v0 = vld [vmem:[%s6839_s4 + $0xf8] sm:$0xff] }
  0x62   :  { %3183 = vmatprep.subr.bf16.mxu0 %v4931_v39  ;;  %7146 = vst [vmem:[#allocation66_spill] sm:$0xff] %v5549_v30 }
  0x63   :  { %3109 = vmatpush1.bf16.msra.mxu1 %v5525_v53  ;;  %v136_v53 = vld [vmem:[%s6839_s4 + $0xc8] sm:$0xff]  ;;  %7147 = vst [vmem:[#allocation67_spill] sm:$0xff] %v5565_v36 }
  0x64   :  { %3111 = vmatprep.subr.bf16.mxu1 %v5529_v54  ;;  %v5569_v37 = vpack.c.bf16 %v138_v12, %v136_v53  ;;  %v137_v54 = vld [vmem:[%s6839_s4 + $0xd0] sm:$0xff]  ;;  %v139_v12 = vld [vmem:[%s6839_s4 + $0xe0] sm:$0xff] }
  0x65   :  { %3185 = vmatpush1.bf16.msra.mxu0 %v4952_v46  ;;  %v5585_v53 = vpack.c.bf16 %v137_v54, %v135_v45  ;;  %v146_v54 = vld [vmem:[%s6839_s4 + $0x118] sm:$0xff] }
  0x66   :  { %3187 = vmatprep.subr.bf16.mxu0 %v4967_v51  ;;  %7148 = vst [vmem:[#allocation68_spill] sm:$0xff] %v5569_v37 }
  0x67   :  { %3113 = vmatpush1.bf16.msra.mxu1 %v5545_v29  ;;  %v140_v29 = vld [vmem:[%s6839_s4 + $0xe8] sm:$0xff]  ;;  %7149 = vst [vmem:[#allocation69_spill] sm:$0xff] %v5585_v53 }
  0x68   :  { %3115 = vmatprep.subr.bf16.mxu1 %v5549_v30  ;;  %v5589_v24 = vpack.c.bf16 %v142_v0, %v140_v29  ;;  %v141_v30 = vld [vmem:[%s6839_s4 + $0xf0] sm:$0xff]  ;;  %v143_v0 = vld [vmem:[%s6839_s4 + $0x100] sm:$0xff] }
  0x69   :  { %3189 = vmatpush1.bf16.msra.mxu0 %v5001_v63  ;;  %v5605_v29 = vpack.c.bf16 %v141_v30, %v139_v12  ;;  %v150_v30 = vld [vmem:[%s6839_s4 + $0x138] sm:$0xff] }
  0x6a   :  { %3191 = vmatprep.subr.bf16.mxu0 %v5013_v5  ;;  %7150 = vst [vmem:[#allocation70_spill] sm:$0xff] %v5589_v24 }
  0x6b   :  { %3117 = vmatpush1.bf16.msra.mxu1 %v5565_v36  ;;  %v144_v36 = vld [vmem:[%s6839_s4 + $0x108] sm:$0xff]  ;;  %7151 = vst [vmem:[#allocation71_spill] sm:$0xff] %v5605_v29 }
  0x6c   :  { %3119 = vmatprep.subr.bf16.mxu1 %v5569_v37  ;;  %v5609_v45 = vpack.c.bf16 %v146_v54, %v144_v36  ;;  %v145_v37 = vld [vmem:[%s6839_s4 + $0x110] sm:$0xff]  ;;  %v147_v54 = vld [vmem:[%s6839_s4 + $0x120] sm:$0xff] }
  0x6d   :  { %3193 = vmatpush1.bf16.msra.mxu0 %v5037_v17  ;;  %v5625_v36 = vpack.c.bf16 %v145_v37, %v143_v0  ;;  %v154_v37 = vld [vmem:[%s6839_s4 + $0x158] sm:$0xff] }
  0x6e   :  { %3195 = vmatprep.subr.bf16.mxu0 %v5049_v23  ;;  %7152 = vst [vmem:[#allocation72_spill] sm:$0xff] %v5609_v45 }
  0x6f   :  { %3121 = vmatpush1.bf16.msra.mxu1 %v5585_v53  ;;  %v148_v53 = vld [vmem:[%s6839_s4 + $0x128] sm:$0xff]  ;;  %7153 = vst [vmem:[#allocation73_spill] sm:$0xff] %v5625_v36 }
  0x70   :  { %3123 = vmatprep.subr.bf16.mxu1 %v5589_v24  ;;  %v5629_v12 = vpack.c.bf16 %v150_v30, %v148_v53  ;;  %v149_v24 = vld [vmem:[%s6839_s4 + $0x130] sm:$0xff]  ;;  %v151_v30 = vld [vmem:[%s6839_s4 + $0x140] sm:$0xff] }
  0x71   :  { %3197 = vmatpush1.bf16.msra.mxu0 %v5073_v35  ;;  %v5645_v53 = vpack.c.bf16 %v149_v24, %v147_v54  ;;  %v158_v24 = vld [vmem:[%s6839_s4 + $0x178] sm:$0xff] }
  0x72   :  { %3199 = vmatprep.subr.bf16.mxu0 %v5085_v41  ;;  %7154 = vst [vmem:[#allocation74_spill] sm:$0xff] %v5629_v12 }
  0x73   :  { %3125 = vmatpush1.bf16.msra.mxu1 %v5605_v29  ;;  %v152_v29 = vld [vmem:[%s6839_s4 + $0x148] sm:$0xff]  ;;  %7155 = vst [vmem:[#allocation75_spill] sm:$0xff] %v5645_v53 }
  0x74   :  { %3127 = vmatprep.subr.bf16.mxu1 %v5609_v45  ;;  %v5649_v0 = vpack.c.bf16 %v154_v37, %v152_v29  ;;  %v153_v45 = vld [vmem:[%s6839_s4 + $0x150] sm:$0xff]  ;;  %v155_v37 = vld [vmem:[%s6839_s4 + $0x160] sm:$0xff] }
  0x75   :  { %3201 = vmatpush1.bf16.msra.mxu0 %v5109_v50  ;;  %v5665_v29 = vpack.c.bf16 %v153_v45, %v151_v30  ;;  %v162_v30 = vld [vmem:[%s6839_s4 + $0x198] sm:$0xff] }
  0x76   :  { %3203 = vmatprep.subr.bf16.mxu0 %v5121_v57  ;;  %7156 = vst [vmem:[#allocation76_spill] sm:$0xff] %v5649_v0 }
  0x77   :  { %3129 = vmatpush1.bf16.msra.mxu1 %v5625_v36  ;;  %v156_v36 = vld [vmem:[%s6839_s4 + $0x168] sm:$0xff]  ;;  %7157 = vst [vmem:[#allocation77_spill] sm:$0xff] %v5665_v29 }
  0x78   :  { %3131 = vmatprep.subr.bf16.mxu1 %v5629_v12  ;;  %v5669_v54 = vpack.c.bf16 %v158_v24, %v156_v36  ;;  %v157_v12 = vld [vmem:[%s6839_s4 + $0x170] sm:$0xff]  ;;  %v160_v36 = vld [vmem:[%s6839_s4 + $0x188] sm:$0xff]  ;;  %v159_v24 = vld [vmem:[%s6839_s4 + $0x180] sm:$0xff] }
  0x79   :  { %3205 = vmatpush1.bf16.msra.mxu0 %v5145_v10  ;;  %v5679_v45 = vpack.c.bf16 %v157_v12, %v155_v37  ;;  %v5692_v12 = vpack.c.bf16 %v162_v30, %v160_v36  ;;  %v161_v37 = vld [vmem:[%s6839_s4 + $0x190] sm:$0xff]  ;;  %v166_v36 = vld [vmem:[%s6839_s4 + $0x1b8] sm:$0xff] }
  0x7a   :  { %3207 = vmatprep.subr.bf16.mxu0 %v5157_v16  ;;  %7158 = vst [vmem:[#allocation78_spill] sm:$0xff] %v5669_v54 }
  0x7b   :  { %3133 = vmatpush1.bf16.msra.mxu1 %v5645_v53  ;;  %7159 = vst [vmem:[#allocation79_spill] sm:$0xff] %v5679_v45  ;;  %7160 = vst [vmem:[#allocation80_spill] sm:$0xff] %v5692_v12 }
  0x7c   :  { %3135 = vmatprep.subr.bf16.mxu1 %v5649_v0 }
  0x7d   :  { %3209 = vmatpush1.bf16.msra.mxu0 %v5181_v34 }
  0x7e   :  { %3211 = vmatprep.subr.bf16.mxu0 %v5193_v44 }
  0x7f   :  { %3137 = vmatpush1.bf16.msra.mxu1 %v5665_v29  ;;  %v163_v29 = vld [vmem:[%s6839_s4 + $0x1a0] sm:$0xff] }
  0x80   :  { %3139 = vmatprep.subr.bf16.mxu1 %v5669_v54  ;;  %v164_v54 = vld [vmem:[%s6839_s4 + $0x1a8] sm:$0xff] }
  0x81   :  { %3213 = vmatpush1.bf16.msra.mxu0 %v5217_v61  ;;  %v5710_v30 = vpack.c.bf16 %v166_v36, %v164_v54  ;;  %v170_v54 = vld [vmem:[%s6839_s4 + $0x1d8] sm:$0xff]  ;;  %v167_v36 = vld [vmem:[%s6839_s4 + $0x1c0] sm:$0xff] }
  0x82   :  { %3215 = vmatprep.subr.bf16.mxu0 %v5229_v6 }
  0x83   :  { %3141 = vmatpush1.bf16.msra.mxu1 %v5679_v45  ;;  %v5700_v45 = vpack.c.bf16 %v161_v37, %v159_v24  ;;  %7162 = vst [vmem:[#allocation82_spill] sm:$0xff] %v5710_v30  ;;  %v165_v24 = vld [vmem:[%s6839_s4 + $0x1b0] sm:$0xff] }
  0x84   :  { %3143 = vmatprep.subr.bf16.mxu1 %v5692_v12  ;;  %v5718_v37 = vpack.c.bf16 %v165_v24, %v163_v29  ;;  %v169_v29 = vld [vmem:[%s6839_s4 + $0x1d0] sm:$0xff]  ;;  %v172_v24 = vld [vmem:[%s6839_s4 + $0x1e8] sm:$0xff] }
  0x85   :  { %3217 = vmatpush1.bf16.msra.mxu0 %v5253_v31  ;;  %7161 = vst [vmem:[#allocation81_spill] sm:$0xff] %v5700_v45  ;;  %v5742_v0 = vpack.c.bf16 %v169_v29, %v167_v36 }
  0x86   :  { %3219 = vmatprep.subr.bf16.mxu0 %v5265_v48  ;;  %7163 = vst [vmem:[#allocation83_spill] sm:$0xff] %v5718_v37 }
  0x87   :  { %3145 = vmatpush1.bf16.msra.mxu1 %v5700_v45  ;;  %v168_v45 = vld [vmem:[%s6839_s4 + $0x1c8] sm:$0xff]  ;;  %7165 = vst [vmem:[#allocation85_spill] sm:$0xff] %v5742_v0 }
  0x88   :  { %3147 = vmatprep.subr.bf16.mxu1 %v5710_v30  ;;  %v5731_v12 = vpack.c.bf16 %v170_v54, %v168_v45  ;;  %v174_v30 = vld [vmem:[%s6839_s4 + $0x1f8] sm:$0xff]  ;;  %v171_v45 = vld [vmem:[%s6839_s4 + $0x1e0] sm:$0xff]  ;;  %v173_v54 = vld [vmem:[%s6839_s4 + $0x1f0] sm:$0xff] }
  0x89   :  { %3221 = vmatpush1.bf16.msra.mxu0 %v5289_v18  ;;  %v5744_v53 = vpack.c.bf16 %v174_v30, %v172_v24  ;;  %v486_v30 = vlaneseq  ;;  %v110_v24 = vld [vmem:[%s6840_s3] sm:$0x3] }
  0x8a   :  { %3223 = vmatprep.subr.bf16.mxu0 %v5295_v28  ;;  %7164 = vst [vmem:[#allocation84_spill] sm:$0xff] %v5731_v12 }
  0x8b   :  { %3149 = vmatpush1.bf16.msra.mxu1 %v5718_v37  ;;  %7166 = vst [vmem:[#allocation86_spill] sm:$0xff] %v5744_v53  ;;  %v5754_v37 = vpack.c.bf16 %v173_v54, %v171_v45  ;;  %v487_v36 = vshrl.u32 %v486_v30, 7 }
  0x8c   :  { %3151 = vmatprep.subr.bf16.mxu1 %v5731_v12 }
  0x8d   :  { %7167 = vst [vmem:[#allocation87_spill] sm:$0xff] %v5754_v37  ;;  %v5759_v29 = vsub.s32 0, %v487_v36  ;;  %v5764_v28 = vsub.s32 1, %v487_v36  ;;  %v7173_v36 = vld [vmem:[#allocation39_spill] sm:$0xff] }
  0x8f   :  { %3153 = vmatpush1.bf16.msra.mxu1 %v5742_v0  ;;  %7168 = vst [vmem:[#allocation88_spill] sm:$0xff] %v5759_v29  ;;  %7169 = vst [vmem:[#allocation89_spill] sm:$0xff] %v5764_v28  ;;  %v5767_v0 = vrot.slane %v110_v24, %v5759_v29  ;;  %v5770_v45 = vrot.slane %v110_v24, %v5764_v28  ;;  %v7174_v24 = vld [vmem:[#allocation41_spill] sm:$0xff] }
  0x90   :  { %3155 = vmatprep.subr.bf16.mxu1 %v5744_v53 }
  0x93   :  { %3157 = vmatpush1.bf16.msra.mxu1 %v5754_v37 }
  0x94   :  { %3231 = vmatprep.subr.bf16.mxu1 %v4969_v52 }
 0x11f   :  { %v480_v54 = vpop.f32.mrb[0].mxu0 }
 0x120   :  { %v496_v37 = vadd.f32 %v5767_v0, %v480_v54  ;;  %v482_v53 = vpop.f32.mrb[1].mxu0  ;;  %v7175_v54 = vld [vmem:[#allocation44_spill] sm:$0xff] }
 0x121   :  { %v497_v30 = vadd.f32 %v5770_v45, %v482_v53  ;;  %v2908_v53 = vld [vmem:[%s6838_s0 + $0x8] sm:$0xff] }
 0x123   :  { %4687 = vtanh.f32 %v497_v30  ;;  %v7176_v30 = vld [vmem:[#allocation45_spill] sm:$0xff] }
 0x124   :  { %4689 = vtanh.f32 %v496_v37  ;;  %v7172_v37 = vld [vmem:[#allocation37_spill] sm:$0xff] }
 0x12d   :  { %v4688_v12 = vpop.eup %4687 }
 0x12e   :  { %v4690_v52 = vpop.eup %4689  ;;  %635 = vmatprep.mubr.f32.mxu1 %v4688_v12  ;;  %723 = vmatprep.mubr.f32.mxu0 %v4688_v12  ;;  %v7171_v12 = vld [vmem:[#allocation35_spill] sm:$0xff] }
 0x12f   :  { %636 = vmatmul.mubr.f32.vlgmr.msra.gmra.mrb[0].mxu1 %v4690_v52  ;;  %724 = vmatmul.mubr.f32.vlgmr.msra.gmra.mrb[2].mxu0 %v4690_v52  ;;  %v7170_v52 = vld [vmem:[#allocation33_spill] sm:$0xff] }
 0x130   :  { %3225 = vmatpush1.bf16.msra.mxu0 %v5325_v11  ;;  %797 = vmatprep.mubr.f32.mxu0 %v7125_v49 }
 0x131   :  { %3227 = vmatprep.subr.bf16.mxu0 %v5329_v3  ;;  %3233 = vmatpush1.bf16.msra.mxu1 %v4980_v56 }
 0x132   :  { %3235 = vmatprep.subr.bf16.mxu1 %v4992_v60 }
 0x134   :  { %3229 = vmatpush1.bf16.msra.mxu0 %v5356_v58 }
 0x135   :  { %3237 = vmatpush1.bf16.msra.mxu1 %v5010_v2  ;;  %3359 = vmatprep.subr.bf16.mxu0 %v4827_v4 }
 0x136   :  { %3239 = vmatprep.subr.bf16.mxu1 %v5019_v7 }
 0x137   :  { %2909 = vmatmul.mubr.msk.f32.vlgmr.msra.gmra.mrb[2].mxu0 %vm410_vm0, %v2908_v53  ;;  %v7177_v53 = vld [vmem:[#allocation48_spill] sm:$0xff] }
 0x138   :  { %3361 = vmatpush1.bf16.msra.mxu0 %v4838_v8 }
 0x139   :  { %3241 = vmatpush1.bf16.msra.mxu1 %v5046_v22  ;;  %3363 = vmatprep.subr.bf16.mxu0 %v4840_v9 }
 0x13a   :  { %3243 = vmatprep.subr.bf16.mxu1 %v5055_v25 }
 0x13c   :  { %3365 = vmatpush1.bf16.msra.mxu0 %v4856_v14 }
 0x13d   :  { %3245 = vmatpush1.bf16.msra.mxu1 %v5082_v40  ;;  %3367 = vmatprep.subr.bf16.mxu0 %v4859_v15 }
 0x13e   :  { %3247 = vmatprep.subr.bf16.mxu1 %v5091_v43 }
 0x140   :  { %3369 = vmatpush1.bf16.msra.mxu0 %v4874_v20 }
 0x141   :  { %3249 = vmatpush1.bf16.msra.mxu1 %v5118_v55  ;;  %3371 = vmatprep.subr.bf16.mxu0 %v4877_v21 }
 0x142   :  { %3251 = vmatprep.subr.bf16.mxu1 %v5127_v59 }
 0x144   :  { %3373 = vmatpush1.bf16.msra.mxu0 %v4892_v26 }
 0x145   :  { %3253 = vmatpush1.bf16.msra.mxu1 %v5154_v13  ;;  %3375 = vmatprep.subr.bf16.mxu0 %v4895_v27 }
 0x146   :  { %3255 = vmatprep.subr.bf16.mxu1 %v5163_v19 }
 0x148   :  { %3377 = vmatpush1.bf16.msra.mxu0 %v4910_v32 }
 0x149   :  { %3257 = vmatpush1.bf16.msra.mxu1 %v5190_v42  ;;  %3379 = vmatprep.subr.bf16.mxu0 %v4913_v33 }
 0x14a   :  { %3259 = vmatprep.subr.bf16.mxu1 %v5199_v47 }
 0x14c   :  { %3381 = vmatpush1.bf16.msra.mxu0 %v4928_v38 }
 0x14d   :  { %3261 = vmatpush1.bf16.msra.mxu1 %v5226_v1  ;;  %3383 = vmatprep.subr.bf16.mxu0 %v4931_v39 }
 0x14e   :  { %3263 = vmatprep.subr.bf16.mxu1 %v7170_v52 }
 0x150   :  { %3385 = vmatpush1.bf16.msra.mxu0 %v4952_v46 }
 0x151   :  { %3265 = vmatpush1.bf16.msra.mxu1 %v7171_v12  ;;  %3387 = vmatprep.subr.bf16.mxu0 %v4967_v51 }
 0x152   :  { %3267 = vmatprep.subr.bf16.mxu1 %v7172_v37 }
 0x154   :  { %3389 = vmatpush1.bf16.msra.mxu0 %v5001_v63 }
 0x155   :  { %3269 = vmatpush1.bf16.msra.mxu1 %v7173_v36  ;;  %3391 = vmatprep.subr.bf16.mxu0 %v5013_v5  ;;  %v7178_v5 = vld [vmem:[#allocation49_spill] sm:$0xff] }
 0x156   :  { %3271 = vmatprep.subr.bf16.mxu1 %v7174_v24 }
 0x158   :  { %3393 = vmatpush1.bf16.msra.mxu0 %v5037_v17  ;;  %v7179_v17 = vld [vmem:[#allocation50_spill] sm:$0xff] }
 0x159   :  { %3273 = vmatpush1.bf16.msra.mxu1 %v7175_v54  ;;  %3395 = vmatprep.subr.bf16.mxu0 %v5049_v23  ;;  %v7180_v23 = vld [vmem:[#allocation51_spill] sm:$0xff] }
 0x15a   :  { %3275 = vmatprep.subr.bf16.mxu1 %v7176_v30 }
 0x15c   :  { %3397 = vmatpush1.bf16.msra.mxu0 %v5073_v35  ;;  %v7181_v35 = vld [vmem:[#allocation52_spill] sm:$0xff] }
 0x15d   :  { %3277 = vmatpush1.bf16.msra.mxu1 %v5361_v62  ;;  %3399 = vmatprep.subr.bf16.mxu0 %v5085_v41  ;;  %v7182_v41 = vld [vmem:[#allocation53_spill] sm:$0xff] }
 0x15e   :  { %3279 = vmatprep.subr.bf16.mxu1 %v7177_v53 }
 0x160   :  { %3401 = vmatpush1.bf16.msra.mxu0 %v5109_v50  ;;  %v7183_v50 = vld [vmem:[#allocation54_spill] sm:$0xff] }
 0x161   :  { %3281 = vmatpush1.bf16.msra.mxu1 %v7178_v5  ;;  %3403 = vmatprep.subr.bf16.mxu0 %v5121_v57  ;;  %v7184_v57 = vld [vmem:[#allocation55_spill] sm:$0xff] }
 0x162   :  { %3283 = vmatprep.subr.bf16.mxu1 %v7179_v17 }
 0x164   :  { %3405 = vmatpush1.bf16.msra.mxu0 %v5145_v10  ;;  %v7185_v10 = vld [vmem:[#allocation56_spill] sm:$0xff] }
 0x165   :  { %3285 = vmatpush1.bf16.msra.mxu1 %v7180_v23  ;;  %3407 = vmatprep.subr.bf16.mxu0 %v5157_v16 }
 0x166   :  { %3287 = vmatprep.subr.bf16.mxu1 %v7181_v35 }
 0x168   :  { %3409 = vmatpush1.bf16.msra.mxu0 %v5181_v34  ;;  %v7186_v34 = vld [vmem:[#allocation40_spill] sm:$0xff] }
 0x169   :  { %3289 = vmatpush1.bf16.msra.mxu1 %v7182_v41  ;;  %3411 = vmatprep.subr.bf16.mxu0 %v5193_v44  ;;  %v239_v44 = vld [vmem:[%s6841_s6] sm:$0x3] }
 0x16a   :  { %3291 = vmatprep.subr.bf16.mxu1 %v7183_v50  ;;  %v5854_v16 = vrot.slane %v239_v44, %v5764_v28  ;;  %v7190_v28 = vld [vmem:[#allocation59_spill] sm:$0xff] }
 0x16c   :  { %3413 = vmatpush1.bf16.msra.mxu0 %v5217_v61  ;;  %v5851_v61 = vrot.slane %v239_v44, %v5759_v29  ;;  %v7188_v44 = vld [vmem:[#allocation57_spill] sm:$0xff] }
 0x16d   :  { %3293 = vmatpush1.bf16.msra.mxu1 %v7184_v57  ;;  %3415 = vmatprep.subr.bf16.mxu0 %v5229_v6 }
 0x16e   :  { %3295 = vmatprep.subr.bf16.mxu1 %v7185_v10  ;;  %7187 = vst [vmem:[#allocation90_spill] sm:$0xff] %v5851_v61 }
 0x170   :  { %3417 = vmatpush1.bf16.msra.mxu0 %v5253_v31 }
 0x171   :  { %3419 = vmatprep.subr.bf16.mxu0 %v5265_v48 }
 0x174   :  { %3421 = vmatpush1.bf16.msra.mxu0 %v5289_v18 }
 0x175   :  { %3423 = vmatprep.subr.bf16.mxu0 %v7186_v34 }
 0x202   :  { %v637_v6 = vpop.f32.mrb[0].mxu1 }
 0x203   :  { %v653_v63 = vadd.f32 %v5851_v61, %v637_v6  ;;  %v639_v31 = vpop.f32.mrb[1].mxu1  ;;  %v7189_v6 = vld [vmem:[#allocation58_spill] sm:$0xff] }
 0x204   :  { %v654_v48 = vadd.f32 %v5854_v16, %v639_v31 }
 0x206   :  { %4691 = vtanh.f32 %v654_v48 }
 0x207   :  { %4693 = vtanh.f32 %v653_v63  ;;  %v7191_v63 = vld [vmem:[#allocation60_spill] sm:$0xff] }
 0x20a   :  { %v799_v18 = vpop.f32.mrb[2].mxu0 }
 0x20b   :  { %v804_v34 = vadd.f32 %v799_v18, %v5767_v0  ;;  %v801_v51 = vpop.f32.mrb[3].mxu0  ;;  %v7195_v18 = vld [vmem:[#allocation64_spill] sm:$0xff] }
 0x20c   :  { %v805_v46 = vadd.f32 %v801_v51, %v5770_v45  ;;  %v7192_v51 = vld [vmem:[#allocation61_spill] sm:$0xff] }
 0x20e   :  { %4695 = vtanh.f32 %v805_v46  ;;  %v7193_v46 = vld [vmem:[#allocation62_spill] sm:$0xff] }
 0x20f   :  { %4697 = vtanh.f32 %v804_v34  ;;  %v2910_v34 = vld [vmem:[%s6838_s0 + $0x10] sm:$0xff] }
 0x210   :  { %v4692_v29 = vpop.eup %4691 }
 0x211   :  { %v4694_v39 = vpop.eup %4693  ;;  %872 = vmatprep.mubr.f32.mxu1 %v4692_v29  ;;  %v7196_v29 = vld [vmem:[#allocation17_spill] sm:$0xff] }
 0x212   :  { %873 = vmatmul.mubr.f32.vlgmr.msra.gmra.mrb[2].mxu1 %v4694_v39  ;;  %v7194_v39 = vld [vmem:[#allocation63_spill] sm:$0xff] }
 0x213   :  { %3297 = vmatpush1.bf16.msra.mxu1 %v7188_v44 }
 0x214   :  { %3299 = vmatprep.subr.bf16.mxu1 %v7189_v6 }
 0x217   :  { %3301 = vmatpush1.bf16.msra.mxu1 %v7190_v28 }
 0x218   :  { %v4696_v31 = vpop.eup %4695  ;;  %3303 = vmatprep.subr.bf16.mxu1 %v7191_v63 }
 0x219   :  { %v4698_v48 = vpop.eup %4697  ;;  %943 = vmatprep.mubr.f32.mxu1 %v4696_v31  ;;  %1020 = vmatprep.mubr.f32.mxu0 %v4696_v31  ;;  %v7197_v31 = vld [vmem:[#allocation65_spill] sm:$0xff] }
 0x21a   :  { %1021 = vmatmul.mubr.f32.vlgmr.msra.gmra.mrb[4].mxu0 %v4698_v48 }
 0x21b   :  { %3305 = vmatpush1.bf16.msra.mxu1 %v7192_v51  ;;  %3425 = vmatpush1.bf16.msra.mxu0 %v5325_v11  ;;  %v7201_v11 = vld [vmem:[#allocation69_spill] sm:$0xff] }
 0x21c   :  { %3307 = vmatprep.subr.bf16.mxu1 %v7193_v46  ;;  %3427 = vmatprep.subr.bf16.mxu0 %v5329_v3  ;;  %v7198_v3 = vld [vmem:[#allocation66_spill] sm:$0xff] }
 0x21d   :  { %1094 = vmatprep.mubr.f32.mxu0 %v7125_v49  ;;  %v7199_v49 = vld [vmem:[#allocation67_spill] sm:$0xff] }
 0x21f   :  { %3309 = vmatpush1.bf16.msra.mxu1 %v7194_v39  ;;  %3429 = vmatpush1.bf16.msra.mxu0 %v5356_v58  ;;  %v7200_v58 = vld [vmem:[#allocation68_spill] sm:$0xff] }
 0x220   :  { %3311 = vmatprep.subr.bf16.mxu1 %v7195_v18  ;;  %3431 = vmatprep.subr.bf16.mxu0 %v7196_v29 }
 0x222   :  { %2911 = vmatmul.mubr.msk.f32.vlgmr.msra.gmra.mrb[4].mxu0 %vm410_vm0, %v2910_v34  ;;  %v7202_v34 = vld [vmem:[#allocation70_spill] sm:$0xff] }
 0x223   :  { %3313 = vmatpush1.bf16.msra.mxu1 %v7197_v31  ;;  %3433 = vmatpush1.bf16.msra.mxu0 %v4980_v56  ;;  %v7203_v31 = vld [vmem:[#allocation71_spill] sm:$0xff] }
 0x224   :  { %3315 = vmatprep.subr.bf16.mxu1 %v7198_v3  ;;  %3435 = vmatprep.subr.bf16.mxu0 %v4992_v60  ;;  %v7204_v3 = vld [vmem:[#allocation72_spill] sm:$0xff] }
 0x227   :  { %3317 = vmatpush1.bf16.msra.mxu1 %v7199_v49  ;;  %3437 = vmatpush1.bf16.msra.mxu0 %v5010_v2  ;;  %v7205_v49 = vld [vmem:[#allocation73_spill] sm:$0xff] }
 0x228   :  { %3319 = vmatprep.subr.bf16.mxu1 %v7200_v58  ;;  %3439 = vmatprep.subr.bf16.mxu0 %v5019_v7  ;;  %v7206_v58 = vld [vmem:[#allocation74_spill] sm:$0xff] }
 0x22b   :  { %3321 = vmatpush1.bf16.msra.mxu1 %v7201_v11  ;;  %3441 = vmatpush1.bf16.msra.mxu0 %v5046_v22  ;;  %v7207_v11 = vld [vmem:[#allocation75_spill] sm:$0xff] }
 0x22c   :  { %3323 = vmatprep.subr.bf16.mxu1 %v7202_v34  ;;  %3443 = vmatprep.subr.bf16.mxu0 %v5055_v25  ;;  %v7208_v34 = vld [vmem:[#allocation76_spill] sm:$0xff] }
 0x22f   :  { %3325 = vmatpush1.bf16.msra.mxu1 %v7203_v31  ;;  %3445 = vmatpush1.bf16.msra.mxu0 %v5082_v40  ;;  %v7209_v31 = vld [vmem:[#allocation77_spill] sm:$0xff] }
 0x230   :  { %3327 = vmatprep.subr.bf16.mxu1 %v7204_v3  ;;  %3447 = vmatprep.subr.bf16.mxu0 %v5091_v43  ;;  %v7210_v3 = vld [vmem:[#allocation78_spill] sm:$0xff] }
 0x233   :  { %3329 = vmatpush1.bf16.msra.mxu1 %v7205_v49  ;;  %3449 = vmatpush1.bf16.msra.mxu0 %v5118_v55  ;;  %v7211_v49 = vld [vmem:[#allocation79_spill] sm:$0xff] }
 0x234   :  { %3331 = vmatprep.subr.bf16.mxu1 %v7206_v58  ;;  %3451 = vmatprep.subr.bf16.mxu0 %v5127_v59  ;;  %v7212_v58 = vld [vmem:[#allocation80_spill] sm:$0xff] }
 0x237   :  { %3333 = vmatpush1.bf16.msra.mxu1 %v7207_v11  ;;  %3453 = vmatpush1.bf16.msra.mxu0 %v5154_v13  ;;  %v7213_v11 = vld [vmem:[#allocation81_spill] sm:$0xff] }
 0x238   :  { %3335 = vmatprep.subr.bf16.mxu1 %v7208_v34  ;;  %3455 = vmatprep.subr.bf16.mxu0 %v5163_v19  ;;  %v7214_v34 = vld [vmem:[#allocation82_spill] sm:$0xff] }
 0x23b   :  { %3337 = vmatpush1.bf16.msra.mxu1 %v7209_v31  ;;  %3457 = vmatpush1.bf16.msra.mxu0 %v5190_v42  ;;  %v7215_v31 = vld [vmem:[#allocation83_spill] sm:$0xff] }
 0x23c   :  { %3339 = vmatprep.subr.bf16.mxu1 %v7210_v3  ;;  %3459 = vmatprep.subr.bf16.mxu0 %v5199_v47  ;;  %v7216_v3 = vld [vmem:[#allocation84_spill] sm:$0xff] }
 0x23f   :  { %3341 = vmatpush1.bf16.msra.mxu1 %v7211_v49  ;;  %3461 = vmatpush1.bf16.msra.mxu0 %v5226_v1  ;;  %v7217_v49 = vld [vmem:[#allocation85_spill] sm:$0xff] }
 0x240   :  { %3343 = vmatprep.subr.bf16.mxu1 %v7212_v58  ;;  %3463 = vmatprep.subr.bf16.mxu0 %v7170_v52  ;;  %v7218_v58 = vld [vmem:[#allocation86_spill] sm:$0xff] }
 0x243   :  { %3345 = vmatpush1.bf16.msra.mxu1 %v7213_v11  ;;  %3465 = vmatpush1.bf16.msra.mxu0 %v7171_v12  ;;  %v7219_v11 = vld [vmem:[#allocation87_spill] sm:$0xff] }
 0x244   :  { %3347 = vmatprep.subr.bf16.mxu1 %v7214_v34  ;;  %3467 = vmatprep.subr.bf16.mxu0 %v7172_v37 }
 0x247   :  { %3349 = vmatpush1.bf16.msra.mxu1 %v7215_v31  ;;  %3469 = vmatpush1.bf16.msra.mxu0 %v7173_v36 }
 0x248   :  { %3351 = vmatprep.subr.bf16.mxu1 %v7216_v3  ;;  %3471 = vmatprep.subr.bf16.mxu0 %v7174_v24 }
 0x24b   :  { %3353 = vmatpush1.bf16.msra.mxu1 %v7217_v49  ;;  %3473 = vmatpush1.bf16.msra.mxu0 %v7175_v54 }
 0x24c   :  { %3355 = vmatprep.subr.bf16.mxu1 %v7218_v58  ;;  %3475 = vmatprep.subr.bf16.mxu0 %v7176_v30 }
 0x24f   :  { %3357 = vmatpush1.bf16.msra.mxu1 %v7219_v11  ;;  %3477 = vmatpush1.bf16.msra.mxu0 %v5361_v62 }
 0x250   :  { %3559 = vmatprep.subr.bf16.mxu1 %v4827_v4  ;;  %3479 = vmatprep.subr.bf16.mxu0 %v7177_v53 }
 0x252   :  { %944 = vmatmul.mubr.f32.vlgmr.msra.gmra.mrb[2].mxu1 %v4698_v48  ;;  %v7220_v48 = vld [vmem:[#allocation14_spill] sm:$0xff] }
 0x253   :  { %3561 = vmatpush1.bf16.msra.mxu1 %v4838_v8  ;;  %3481 = vmatpush1.bf16.msra.mxu0 %v7178_v5 }
 0x254   :  { %3563 = vmatprep.subr.bf16.mxu1 %v4840_v9  ;;  %3483 = vmatprep.subr.bf16.mxu0 %v7179_v17  ;;  %v7227_v9 = vld [vmem:[#allocation22_spill] sm:$0xff] }
 0x257   :  { %3565 = vmatpush1.bf16.msra.mxu1 %v4856_v14  ;;  %3485 = vmatpush1.bf16.msra.mxu0 %v7180_v23  ;;  %v7225_v14 = vld [vmem:[#allocation20_spill] sm:$0xff] }
 0x258   :  { %3567 = vmatprep.subr.bf16.mxu1 %v4859_v15  ;;  %3487 = vmatprep.subr.bf16.mxu0 %v7181_v35  ;;  %v7223_v15 = vld [vmem:[#allocation18_spill] sm:$0xff] }
 0x25b   :  { %3569 = vmatpush1.bf16.msra.mxu1 %v4874_v20  ;;  %3489 = vmatpush1.bf16.msra.mxu0 %v7182_v41  ;;  %v7221_v20 = vld [vmem:[#allocation15_spill] sm:$0xff] }
 0x25c   :  { %3571 = vmatprep.subr.bf16.mxu1 %v4877_v21  ;;  %3491 = vmatprep.subr.bf16.mxu0 %v7183_v50  ;;  %v7222_v21 = vld [vmem:[#allocation16_spill] sm:$0xff] }
 0x25f   :  { %3573 = vmatpush1.bf16.msra.mxu1 %v4892_v26  ;;  %3493 = vmatpush1.bf16.msra.mxu0 %v7184_v57  ;;  %v7224_v26 = vld [vmem:[#allocation19_spill] sm:$0xff] }
 0x260   :  { %3575 = vmatprep.subr.bf16.mxu1 %v4895_v27  ;;  %3495 = vmatprep.subr.bf16.mxu0 %v7185_v10  ;;  %v7226_v27 = vld [vmem:[#allocation21_spill] sm:$0xff] }
 0x263   :  { %3577 = vmatpush1.bf16.msra.mxu1 %v4910_v32  ;;  %v7228_v32 = vld [vmem:[#allocation23_spill] sm:$0xff] }
 0x264   :  { %3579 = vmatprep.subr.bf16.mxu1 %v4913_v33  ;;  %v7229_v33 = vld [vmem:[#allocation24_spill] sm:$0xff] }
 0x267   :  { %3581 = vmatpush1.bf16.msra.mxu1 %v4928_v38  ;;  %v7230_v38 = vld [vmem:[#allocation25_spill] sm:$0xff] }
 0x268   :  { %3583 = vmatprep.subr.bf16.mxu1 %v7220_v48  ;;  %v7231_v48 = vld [vmem:[#allocation26_spill] sm:$0xff] }
 0x26b   :  { %3585 = vmatpush1.bf16.msra.mxu1 %v7221_v20  ;;  %v7232_v20 = vld [vmem:[#allocation27_spill] sm:$0xff] }
 0x26c   :  { %3587 = vmatprep.subr.bf16.mxu1 %v7222_v21  ;;  %v7233_v21 = vld [vmem:[#allocation28_spill] sm:$0xff] }
 0x26f   :  { %3589 = vmatpush1.bf16.msra.mxu1 %v7223_v15  ;;  %v7234_v15 = vld [vmem:[#allocation29_spill] sm:$0xff] }
 0x270   :  { %3591 = vmatprep.subr.bf16.mxu1 %v7224_v26  ;;  %v7235_v26 = vld [vmem:[#allocation30_spill] sm:$0xff] }
 0x273   :  { %3593 = vmatpush1.bf16.msra.mxu1 %v7225_v14  ;;  %v7236_v14 = vld [vmem:[#allocation32_spill] sm:$0xff] }
 0x274   :  { %3595 = vmatprep.subr.bf16.mxu1 %v7226_v27  ;;  %v7237_v27 = vld [vmem:[#allocation34_spill] sm:$0xff] }
 0x277   :  { %3597 = vmatpush1.bf16.msra.mxu1 %v7227_v9  ;;  %v7238_v9 = vld [vmem:[#allocation36_spill] sm:$0xff] }
 0x278   :  { %3599 = vmatprep.subr.bf16.mxu1 %v7228_v32  ;;  %v7239_v32 = vld [vmem:[#allocation38_spill] sm:$0xff] }
 0x27b   :  { %3601 = vmatpush1.bf16.msra.mxu1 %v7229_v33 }
 0x27c   :  { %3603 = vmatprep.subr.bf16.mxu1 %v7230_v38 }
 0x27f   :  { %3605 = vmatpush1.bf16.msra.mxu1 %v7231_v48 }
 0x280   :  { %3607 = vmatprep.subr.bf16.mxu1 %v7232_v20 }
 0x283   :  { %3609 = vmatpush1.bf16.msra.mxu1 %v7233_v21 }
 0x284   :  { %3611 = vmatprep.subr.bf16.mxu1 %v7234_v15 }
 0x287   :  { %3613 = vmatpush1.bf16.msra.mxu1 %v7235_v26 }
 0x288   :  { %3615 = vmatprep.subr.bf16.mxu1 %v7236_v14 }
 0x28b   :  { %3617 = vmatpush1.bf16.msra.mxu1 %v7237_v27 }
 0x28c   :  { %3619 = vmatprep.subr.bf16.mxu1 %v7238_v9 }
 0x28f   :  { %3621 = vmatpush1.bf16.msra.mxu1 %v7239_v32 }
 0x290   :  { %3631 = vmatprep.subr.bf16.mxu1 %v7196_v29 }
 0x2f5   :  { %v1096_v38 = vpop.f32.mrb[4].mxu0 }
 0x2f6   :  { %v1101_v48 = vadd.f32 %v1096_v38, %v5767_v0  ;;  %v1098_v20 = vpop.f32.mrb[5].mxu0 }
 0x2f7   :  { %v1102_v21 = vadd.f32 %v1098_v20, %v5770_v45 }
 0x2f9   :  { %4699 = vtanh.f32 %v1102_v21 }
 0x2fa   :  { %4701 = vtanh.f32 %v1101_v48 }
 0x303   :  { %v4700_v15 = vpop.eup %4699 }
 0x304   :  { %v5967_v26 = vpop.eup %4701  ;;  %1317 = vmatprep.mubr.f32.mxu1 %v4700_v15 }
 0x305   :  { %1318 = vmatmul.mubr.f32.vlgmr.msra.gmra.mrb[4].mxu1 %v5967_v26 }
 0x306   :  { %3633 = vmatpush1.bf16.msra.mxu1 %v4980_v56 }
 0x307   :  { %3635 = vmatprep.subr.bf16.mxu1 %v4992_v60 }
 0x30a   :  { %3637 = vmatpush1.bf16.msra.mxu1 %v5010_v2 }
 0x30b   :  { %3639 = vmatprep.subr.bf16.mxu1 %v5019_v7 }
 0x30e   :  { %3641 = vmatpush1.bf16.msra.mxu1 %v5046_v22 }
 0x30f   :  { %3643 = vmatprep.subr.bf16.mxu1 %v5055_v25 }
 0x312   :  { %3645 = vmatpush1.bf16.msra.mxu1 %v5082_v40 }
 0x313   :  { %3647 = vmatprep.subr.bf16.mxu1 %v5091_v43 }
 0x316   :  { %3649 = vmatpush1.bf16.msra.mxu1 %v5118_v55 }
 0x317   :  { %3651 = vmatprep.subr.bf16.mxu1 %v5127_v59 }
 0x31a   :  { %3653 = vmatpush1.bf16.msra.mxu1 %v5154_v13 }
 0x31b   :  { %3655 = vmatprep.subr.bf16.mxu1 %v5163_v19 }
 0x31e   :  { %3657 = vmatpush1.bf16.msra.mxu1 %v5190_v42 }
 0x31f   :  { %3659 = vmatprep.subr.bf16.mxu1 %v5199_v47 }
 0x322   :  { %3661 = vmatpush1.bf16.msra.mxu1 %v5226_v1  ;;  %v7269_v1 = vld [vmem:[#allocation11_spill] sm:$0xff] }
 0x323   :  { %3663 = vmatprep.subr.bf16.mxu1 %v7170_v52  ;;  %v7267_v52 = vld [vmem:[#allocation9_spill] sm:$0xff] }
 0x325   :  { %v945_v20 = vpop.f32.mrb[2].mxu1 }
 0x326   :  { %v950_v21 = vadd.f32 %v945_v20, %v5851_v61  ;;  %v947_v38 = vpop.f32.mrb[3].mxu1  ;;  %3665 = vmatpush1.bf16.msra.mxu1 %v7171_v12 }
 0x327   :  { %v951_v48 = vadd.f32 %v947_v38, %v5854_v16  ;;  %3667 = vmatprep.subr.bf16.mxu1 %v7172_v37  ;;  %v7243_v38 = vld [vmem:[#allocation68_spill] sm:$0xff]  ;;  %v7260_v37 = vld [vmem:[#allocation43_spill] sm:$0xff] }
 0x329   :  { %4703 = vtanh.f32 %v951_v48  ;;  %v7244_v48 = vld [vmem:[#allocation69_spill] sm:$0xff] }
 0x32a   :  { %4705 = vtanh.f32 %v950_v21  ;;  %3669 = vmatpush1.bf16.msra.mxu1 %v7173_v36  ;;  %v7242_v21 = vld [vmem:[#allocation67_spill] sm:$0xff]  ;;  %v7259_v36 = vmov 0.0  }
 0x32b   :  { %3671 = vmatprep.subr.bf16.mxu1 %v7174_v24  ;;  %v7258_v24 = vld [vmem:[#allocation42_spill] sm:$0xff] }
 0x32e   :  { %3673 = vmatpush1.bf16.msra.mxu1 %v7175_v54  ;;  %v7257_v54 = vld [vmem:[#allocation40_spill] sm:$0xff] }
 0x32f   :  { %3675 = vmatprep.subr.bf16.mxu1 %v7176_v30  ;;  %v7256_v30 = vld [vmem:[#allocation81_spill] sm:$0xff] }
 0x332   :  { %3677 = vmatpush1.bf16.msra.mxu1 %v5361_v62  ;;  %v7255_v62 = vld [vmem:[#allocation80_spill] sm:$0xff] }
 0x333   :  { %v4704_v20 = vpop.eup %4703  ;;  %3679 = vmatprep.subr.bf16.mxu1 %v7177_v53  ;;  %v7254_v53 = vld [vmem:[#allocation79_spill] sm:$0xff] }
 0x334   :  { %v4706_v12 = vpop.eup %4705  ;;  %1169 = vmatprep.mubr.f32.mxu0 %v4704_v20  ;;  %v7245_v20 = vld [vmem:[#allocation70_spill] sm:$0xff] }
 0x335   :  { %1170 = vmatmul.mubr.f32.vlgmr.msra.gmra.mrb[6].mxu0 %v4706_v12  ;;  %v7241_v12 = vld [vmem:[#allocation66_spill] sm:$0xff] }
 0x336   :  { %3497 = vmatpush1.bf16.msra.mxu0 %v7188_v44  ;;  %1240 = vmatprep.mubr.f32.mxu0 %v4700_v15  ;;  %v7240_v15 = vld [vmem:[#allocation65_spill] sm:$0xff] }
 0x337   :  { %3499 = vmatprep.subr.bf16.mxu0 %v7189_v6  ;;  %3681 = vmatpush1.bf16.msra.mxu1 %v7178_v5  ;;  %v7253_v5 = vld [vmem:[#allocation78_spill] sm:$0xff] }
 0x338   :  { %3683 = vmatprep.subr.bf16.mxu1 %v7179_v17  ;;  %v7252_v17 = vld [vmem:[#allocation77_spill] sm:$0xff] }
 0x33a   :  { %3501 = vmatpush1.bf16.msra.mxu0 %v7190_v28 }
 0x33b   :  { %3503 = vmatprep.subr.bf16.mxu0 %v7191_v63  ;;  %3685 = vmatpush1.bf16.msra.mxu1 %v7180_v23  ;;  %v7251_v23 = vld [vmem:[#allocation76_spill] sm:$0xff] }
 0x33c   :  { %3687 = vmatprep.subr.bf16.mxu1 %v7181_v35  ;;  %v7248_v35 = vld [vmem:[#allocation73_spill] sm:$0xff] }
 0x33e   :  { %3505 = vmatpush1.bf16.msra.mxu0 %v7192_v51 }
 0x33f   :  { %3507 = vmatprep.subr.bf16.mxu0 %v7193_v46  ;;  %3689 = vmatpush1.bf16.msra.mxu1 %v7182_v41  ;;  %v7247_v41 = vld [vmem:[#allocation72_spill] sm:$0xff] }
 0x340   :  { %3691 = vmatprep.subr.bf16.mxu1 %v7183_v50  ;;  %v7246_v50 = vld [vmem:[#allocation71_spill] sm:$0xff] }
 0x342   :  { %3509 = vmatpush1.bf16.msra.mxu0 %v7194_v39 }
 0x343   :  { %3511 = vmatprep.subr.bf16.mxu0 %v7195_v18  ;;  %3693 = vmatpush1.bf16.msra.mxu1 %v7184_v57  ;;  %v7249_v57 = vld [vmem:[#allocation74_spill] sm:$0xff] }
 0x344   :  { %3695 = vmatprep.subr.bf16.mxu1 %v7185_v10  ;;  %v7250_v10 = vld [vmem:[#allocation75_spill] sm:$0xff] }
 0x346   :  { %3513 = vmatpush1.bf16.msra.mxu0 %v7240_v15 }
 0x347   :  { %3515 = vmatprep.subr.bf16.mxu0 %v7241_v12 }
 0x34a   :  { %3517 = vmatpush1.bf16.msra.mxu0 %v7242_v21 }
 0x34b   :  { %3519 = vmatprep.subr.bf16.mxu0 %v7243_v38 }
 0x34e   :  { %3521 = vmatpush1.bf16.msra.mxu0 %v7244_v48 }
 0x34f   :  { %3523 = vmatprep.subr.bf16.mxu0 %v7245_v20 }
 0x352   :  { %3525 = vmatpush1.bf16.msra.mxu0 %v7246_v50 }
 0x353   :  { %3527 = vmatprep.subr.bf16.mxu0 %v7247_v41 }
 0x356   :  { %3529 = vmatpush1.bf16.msra.mxu0 %v7248_v35 }
 0x357   :  { %3531 = vmatprep.subr.bf16.mxu0 %v7249_v57 }
 0x35a   :  { %3533 = vmatpush1.bf16.msra.mxu0 %v7250_v10 }
 0x35b   :  { %3535 = vmatprep.subr.bf16.mxu0 %v7251_v23 }
 0x35e   :  { %3537 = vmatpush1.bf16.msra.mxu0 %v7252_v17 }
 0x35f   :  { %3539 = vmatprep.subr.bf16.mxu0 %v7253_v5 }
 0x362   :  { %3541 = vmatpush1.bf16.msra.mxu0 %v7254_v53 }
 0x363   :  { %3543 = vmatprep.subr.bf16.mxu0 %v7255_v62 }
 0x366   :  { %3545 = vmatpush1.bf16.msra.mxu0 %v7256_v30  ;;  %v7268_v30 = vld [vmem:[#allocation10_spill] sm:$0xff] }
 0x367   :  { %3547 = vmatprep.subr.bf16.mxu0 %v7214_v34  ;;  %v7261_v34 = vld [vmem:[#allocation46_spill] sm:$0xff] }
 0x36a   :  { %3549 = vmatpush1.bf16.msra.mxu0 %v7215_v31  ;;  %v7266_v31 = vld [vmem:[#allocation8_spill] sm:$0xff] }
 0x36b   :  { %3551 = vmatprep.subr.bf16.mxu0 %v7216_v3  ;;  %v7265_v3 = vld [vmem:[#allocation7_spill] sm:$0xff] }
 0x36e   :  { %3553 = vmatpush1.bf16.msra.mxu0 %v7217_v49  ;;  %v2912_v49 = vld [vmem:[%s6838_s0 + $0x18] sm:$0xff] }
 0x36f   :  { %3555 = vmatprep.subr.bf16.mxu0 %v7218_v58  ;;  %v7264_v58 = vld [vmem:[#allocation6_spill] sm:$0xff] }
 0x372   :  { %3557 = vmatpush1.bf16.msra.mxu0 %v7219_v11  ;;  %v7262_v11 = vld [vmem:[#allocation4_spill] sm:$0xff] }
 0x373   :  { %3623 = vmatprep.subr.bf16.mxu0 %v7257_v54 }
 0x375   :  { %1241 = vmatmul.mubr.f32.vlgmr.msra.gmra.mrb[6].mxu0 %v5967_v26  ;;  %v7263_v26 = vld [vmem:[#allocation5_spill] sm:$0xff] }
 0x376   :  { %3625 = vmatpush1.bf16.msra.mxu0 %v7258_v24  ;;  %1391 = vmatprep.mubr.f32.mxu0 %v7259_v36 }
 0x377   :  { %3627 = vmatprep.subr.bf16.mxu0 %v7260_v37 }
 0x37a   :  { %3629 = vmatpush1.bf16.msra.mxu0 %v7261_v34 }
 0x37b   :  { %3759 = vmatprep.subr.bf16.mxu0 %v4827_v4  ;;  %v7270_v4 = vld [vmem:[#allocation12_spill] sm:$0xff] }
 0x37d   :  { %2913 = vmatmul.mubr.msk.f32.vlgmr.msra.gmra.mrb[8].mxu0 %vm410_vm0, %v2912_v49  ;;  %v7271_v49 = vld [vmem:[#allocation13_spill] sm:$0xff] }
 0x37e   :  { %3761 = vmatpush1.bf16.msra.mxu0 %v4838_v8  ;;  %v7272_v8 = vld [vmem:[#allocation14_spill] sm:$0xff] }
 0x37f   :  { %3763 = vmatprep.subr.bf16.mxu0 %v7262_v11  ;;  %v7273_v11 = vld [vmem:[#allocation15_spill] sm:$0xff] }
 0x382   :  { %3765 = vmatpush1.bf16.msra.mxu0 %v7263_v26  ;;  %v7274_v26 = vld [vmem:[#allocation16_spill] sm:$0xff] }
 0x383   :  { %3767 = vmatprep.subr.bf16.mxu0 %v7264_v58  ;;  %v7275_v58 = vld [vmem:[#allocation18_spill] sm:$0xff] }
 0x386   :  { %3769 = vmatpush1.bf16.msra.mxu0 %v7265_v3  ;;  %v7276_v3 = vld [vmem:[#allocation19_spill] sm:$0xff] }
 0x387   :  { %3771 = vmatprep.subr.bf16.mxu0 %v7266_v31  ;;  %v7277_v31 = vld [vmem:[#allocation20_spill] sm:$0xff] }
 0x38a   :  { %3773 = vmatpush1.bf16.msra.mxu0 %v7267_v52  ;;  %v7278_v52 = vld [vmem:[#allocation21_spill] sm:$0xff] }
 0x38b   :  { %3775 = vmatprep.subr.bf16.mxu0 %v7268_v30  ;;  %v7279_v30 = vld [vmem:[#allocation22_spill] sm:$0xff] }
 0x38e   :  { %3777 = vmatpush1.bf16.msra.mxu0 %v7269_v1  ;;  %v7280_v1 = vld [vmem:[#allocation23_spill] sm:$0xff] }
 0x38f   :  { %3779 = vmatprep.subr.bf16.mxu0 %v7270_v4 }
 0x392   :  { %3781 = vmatpush1.bf16.msra.mxu0 %v7271_v49  ;;  %v7281_v49 = vld [vmem:[#allocation25_spill] sm:$0xff] }
 0x393   :  { %3783 = vmatprep.subr.bf16.mxu0 %v7272_v8  ;;  %v7282_v8 = vld [vmem:[#allocation26_spill] sm:$0xff] }
 0x396   :  { %3785 = vmatpush1.bf16.msra.mxu0 %v7273_v11  ;;  %v7283_v11 = vld [vmem:[#allocation27_spill] sm:$0xff] }
 0x397   :  { %3787 = vmatprep.subr.bf16.mxu0 %v7274_v26  ;;  %v7284_v26 = vld [vmem:[#allocation28_spill] sm:$0xff] }
 0x39a   :  { %3789 = vmatpush1.bf16.msra.mxu0 %v7275_v58  ;;  %v7285_v58 = vld [vmem:[#allocation29_spill] sm:$0xff] }
 0x39b   :  { %3791 = vmatprep.subr.bf16.mxu0 %v7276_v3  ;;  %v7286_v3 = vld [vmem:[#allocation30_spill] sm:$0xff] }
 0x39e   :  { %3793 = vmatpush1.bf16.msra.mxu0 %v7277_v31 }
 0x39f   :  { %3795 = vmatprep.subr.bf16.mxu0 %v7278_v52 }
 0x3a2   :  { %3797 = vmatpush1.bf16.msra.mxu0 %v7279_v30 }
 0x3a3   :  { %3799 = vmatprep.subr.bf16.mxu0 %v7280_v1 }
 0x3a6   :  { %3801 = vmatpush1.bf16.msra.mxu0 %v7229_v33 }
 0x3a7   :  { %3803 = vmatprep.subr.bf16.mxu0 %v7281_v49 }
 0x3aa   :  { %3805 = vmatpush1.bf16.msra.mxu0 %v7282_v8 }
 0x3ab   :  { %3807 = vmatprep.subr.bf16.mxu0 %v7283_v11 }
 0x3ae   :  { %3809 = vmatpush1.bf16.msra.mxu0 %v7284_v26 }
 0x3af   :  { %3811 = vmatprep.subr.bf16.mxu0 %v7285_v58 }
 0x3b2   :  { %3813 = vmatpush1.bf16.msra.mxu0 %v7286_v3 }
 0x3b3   :  { %3815 = vmatprep.subr.bf16.mxu0 %v7236_v14 }
 0x3b6   :  { %3817 = vmatpush1.bf16.msra.mxu0 %v7237_v27 }
 0x3b7   :  { %3819 = vmatprep.subr.bf16.mxu0 %v7238_v9 }
 0x3ba   :  { %3821 = vmatpush1.bf16.msra.mxu0 %v7239_v32 }
 0x3bb   :  { %3823 = vmatprep.subr.bf16.mxu0 %v7257_v54 }
 0x3d8   :  { %v1319_v49 = vpop.f32.mrb[4].mxu1 }
 0x3d9   :  { %v1321_v8 = vpop.f32.mrb[5].mxu1 }
 0x448   :  { %v1242_v33 = vpop.f32.mrb[6].mxu0 }
 0x449   :  { %v1247_v11 = vadd.f32 %v1242_v33, %v5851_v61  ;;  %v1244_v26 = vpop.f32.mrb[7].mxu0  ;;  %v7290_v33 = vld [vmem:[#allocation82_spill] sm:$0xff] }
 0x44a   :  { %v1248_v58 = vadd.f32 %v1244_v26, %v5854_v16  ;;  %v7296_v26 = vld [vmem:[#allocation85_spill] sm:$0xff] }
 0x44c   :  { %4707 = vtanh.f32 %v1248_v58  ;;  %v7293_v58 = vld [vmem:[#allocation37_spill] sm:$0xff] }
 0x44d   :  { %4709 = vtanh.f32 %v1247_v11  ;;  %v7292_v11 = vld [vmem:[#allocation83_spill] sm:$0xff] }
 0x450   :  { %v1393_v3 = vpop.f32.mrb[8].mxu0 }
 0x451   :  { %v1394_v14 = vadd.f32 %v1393_v3, %v1319_v49  ;;  %v1395_v1 = vpop.f32.mrb[9].mxu0  ;;  %v7297_v49 = vld [vmem:[#allocation41_spill] sm:$0xff] }
 0x452   :  { %v1396_v27 = vadd.f32 %v1395_v1, %v1321_v8  ;;  %v7291_v1 = vld [vmem:[#allocation35_spill] sm:$0xff] }
 0x453   :  { %v1398_v9 = vadd.f32 %v1394_v14, %v5767_v0  ;;  %v7287_v14 = vld [vmem:[#allocation31_spill] sm:$0xff] }
 0x454   :  { %v1399_v32 = vadd.f32 %v1396_v27, %v5770_v45  ;;  %v7288_v27 = vld [vmem:[#allocation81_spill] sm:$0xff] }
 0x456   :  { %v4708_v30 = vpop.eup %4707  ;;  %4711 = vtanh.f32 %v1399_v32  ;;  %v7289_v32 = vld [vmem:[#allocation33_spill] sm:$0xff] }
 0x457   :  { %v4710_v54 = vpop.eup %4709  ;;  %1466 = vmatprep.mubr.f32.mxu1 %v4708_v30  ;;  %4713 = vtanh.f32 %v1398_v9  ;;  %v2914_v9 = vld [vmem:[%s6838_s0 + $0x20] sm:$0xff]  ;;  %v7295_v30 = vld [vmem:[#allocation39_spill] sm:$0xff] }
 0x458   :  { %1467 = vmatmul.mubr.f32.vlgmr.msra.gmra.mrb[6].mxu1 %v4710_v54  ;;  %v7294_v54 = vld [vmem:[#allocation84_spill] sm:$0xff] }
 0x459   :  { %3697 = vmatpush1.bf16.msra.mxu1 %v7188_v44 }
 0x45a   :  { %3699 = vmatprep.subr.bf16.mxu1 %v7189_v6 }
 0x45d   :  { %3701 = vmatpush1.bf16.msra.mxu1 %v7190_v28 }
 0x45e   :  { %3703 = vmatprep.subr.bf16.mxu1 %v7191_v63 }
 0x460   :  { %v4712_v3 = vpop.eup %4711 }
 0x461   :  { %3705 = vmatpush1.bf16.msra.mxu1 %v7192_v51  ;;  %1537 = vmatprep.mubr.f32.mxu1 %v4712_v3  ;;  %v4714_v8 = vpop.eup %4713 }
 0x462   :  { %1614 = vmatprep.mubr.f32.mxu0 %v4712_v3  ;;  %3707 = vmatprep.subr.bf16.mxu1 %v7193_v46  ;;  %v7298_v3 = vld [vmem:[#allocation86_spill] sm:$0xff] }
 0x463   :  { %1615 = vmatmul.mubr.f32.vlgmr.msra.gmra.mrb[10].mxu0 %v4714_v8 }
 0x464   :  { %3825 = vmatpush1.bf16.msra.mxu0 %v7258_v24  ;;  %1688 = vmatprep.mubr.f32.mxu0 %v7259_v36 }
 0x465   :  { %3709 = vmatpush1.bf16.msra.mxu1 %v7194_v39  ;;  %3827 = vmatprep.subr.bf16.mxu0 %v7260_v37 }
 0x466   :  { %3711 = vmatprep.subr.bf16.mxu1 %v7195_v18 }
 0x468   :  { %3829 = vmatpush1.bf16.msra.mxu0 %v7261_v34 }
 0x469   :  { %3713 = vmatpush1.bf16.msra.mxu1 %v7240_v15  ;;  %3831 = vmatprep.subr.bf16.mxu0 %v7196_v29 }
 0x46a   :  { %3715 = vmatprep.subr.bf16.mxu1 %v7241_v12 }
 0x46b   :  { %2915 = vmatmul.mubr.msk.f32.vlgmr.msra.gmra.mrb[10].mxu0 %vm410_vm0, %v2914_v9  ;;  %v7299_v9 = vld [vmem:[#allocation44_spill] sm:$0xff] }
 0x46c   :  { %3833 = vmatpush1.bf16.msra.mxu0 %v4980_v56 }
 0x46d   :  { %3717 = vmatpush1.bf16.msra.mxu1 %v7242_v21  ;;  %3835 = vmatprep.subr.bf16.mxu0 %v4992_v60 }
 0x46e   :  { %3719 = vmatprep.subr.bf16.mxu1 %v7243_v38 }
 0x470   :  { %3837 = vmatpush1.bf16.msra.mxu0 %v5010_v2 }
 0x471   :  { %3721 = vmatpush1.bf16.msra.mxu1 %v7244_v48  ;;  %3839 = vmatprep.subr.bf16.mxu0 %v5019_v7  ;;  %v7327_v48 = vld [vmem:[#allocation19_spill] sm:$0xff] }
 0x472   :  { %3723 = vmatprep.subr.bf16.mxu1 %v7245_v20  ;;  %v7325_v20 = vld [vmem:[#allocation16_spill] sm:$0xff] }
 0x474   :  { %3841 = vmatpush1.bf16.msra.mxu0 %v5046_v22 }
 0x475   :  { %3725 = vmatpush1.bf16.msra.mxu1 %v7246_v50  ;;  %3843 = vmatprep.subr.bf16.mxu0 %v5055_v25  ;;  %v7323_v50 = vld [vmem:[#allocation14_spill] sm:$0xff] }
 0x476   :  { %3727 = vmatprep.subr.bf16.mxu1 %v7247_v41  ;;  %v7320_v41 = vld [vmem:[#allocation11_spill] sm:$0xff] }
 0x478   :  { %3845 = vmatpush1.bf16.msra.mxu0 %v5082_v40 }
 0x479   :  { %3729 = vmatpush1.bf16.msra.mxu1 %v7248_v35  ;;  %3847 = vmatprep.subr.bf16.mxu0 %v5091_v43  ;;  %v7318_v35 = vld [vmem:[#allocation10_spill] sm:$0xff] }
 0x47a   :  { %3731 = vmatprep.subr.bf16.mxu1 %v7249_v57  ;;  %v7316_v57 = vld [vmem:[#allocation9_spill] sm:$0xff] }
 0x47c   :  { %3849 = vmatpush1.bf16.msra.mxu0 %v5118_v55 }
 0x47d   :  { %3733 = vmatpush1.bf16.msra.mxu1 %v7250_v10  ;;  %3851 = vmatprep.subr.bf16.mxu0 %v5127_v59  ;;  %v7314_v10 = vld [vmem:[#allocation8_spill] sm:$0xff] }
 0x47e   :  { %3735 = vmatprep.subr.bf16.mxu1 %v7251_v23  ;;  %v7311_v23 = vld [vmem:[#allocation51_spill] sm:$0xff] }
 0x480   :  { %3853 = vmatpush1.bf16.msra.mxu0 %v5154_v13 }
 0x481   :  { %3737 = vmatpush1.bf16.msra.mxu1 %v7252_v17  ;;  %3855 = vmatprep.subr.bf16.mxu0 %v5163_v19  ;;  %v7309_v17 = vld [vmem:[#allocation50_spill] sm:$0xff] }
 0x482   :  { %3739 = vmatprep.subr.bf16.mxu1 %v7253_v5  ;;  %v7307_v5 = vld [vmem:[#allocation49_spill] sm:$0xff] }
 0x484   :  { %3857 = vmatpush1.bf16.msra.mxu0 %v5190_v42 }
 0x485   :  { %3741 = vmatpush1.bf16.msra.mxu1 %v7254_v53  ;;  %3859 = vmatprep.subr.bf16.mxu0 %v5199_v47  ;;  %v7305_v53 = vld [vmem:[#allocation48_spill] sm:$0xff] }
 0x486   :  { %3743 = vmatprep.subr.bf16.mxu1 %v7255_v62  ;;  %v7302_v62 = vld [vmem:[#allocation2_spill] sm:$0xff] }
 0x488   :  { %3861 = vmatpush1.bf16.msra.mxu0 %v7287_v14 }
 0x489   :  { %3745 = vmatpush1.bf16.msra.mxu1 %v7288_v27  ;;  %3863 = vmatprep.subr.bf16.mxu0 %v7289_v32  ;;  %v7300_v27 = vld [vmem:[#allocation87_spill] sm:$0xff] }
 0x48a   :  { %3747 = vmatprep.subr.bf16.mxu1 %v7290_v33  ;;  %v7301_v33 = vld [vmem:[#allocation45_spill] sm:$0xff] }
 0x48c   :  { %3865 = vmatpush1.bf16.msra.mxu0 %v7291_v1 }
 0x48d   :  { %3749 = vmatpush1.bf16.msra.mxu1 %v7292_v11  ;;  %3867 = vmatprep.subr.bf16.mxu0 %v7293_v58  ;;  %v7303_v11 = vld [vmem:[#allocation47_spill] sm:$0xff] }
 0x48e   :  { %3751 = vmatprep.subr.bf16.mxu1 %v7294_v54  ;;  %v7304_v54 = vld [vmem:[#allocation3_spill] sm:$0xff] }
 0x490   :  { %3869 = vmatpush1.bf16.msra.mxu0 %v7295_v30 }
 0x491   :  { %3753 = vmatpush1.bf16.msra.mxu1 %v7296_v26  ;;  %3871 = vmatprep.subr.bf16.mxu0 %v7297_v49  ;;  %v7306_v26 = vld [vmem:[#allocation4_spill] sm:$0xff] }
 0x492   :  { %3755 = vmatprep.subr.bf16.mxu1 %v7298_v3  ;;  %v7308_v3 = vld [vmem:[#allocation5_spill] sm:$0xff] }
 0x494   :  { %3873 = vmatpush1.bf16.msra.mxu0 %v7299_v9 }
 0x495   :  { %3757 = vmatpush1.bf16.msra.mxu1 %v7300_v27  ;;  %3875 = vmatprep.subr.bf16.mxu0 %v7301_v33  ;;  %v7310_v27 = vld [vmem:[#allocation6_spill] sm:$0xff] }
 0x496   :  { %3959 = vmatprep.subr.bf16.mxu1 %v7302_v62  ;;  %v7312_v62 = vld [vmem:[#allocation7_spill] sm:$0xff] }
 0x498   :  { %1538 = vmatmul.mubr.f32.vlgmr.msra.gmra.mrb[6].mxu1 %v4714_v8  ;;  %3877 = vmatpush1.bf16.msra.mxu0 %v7303_v11  ;;  %v7313_v8 = vld [vmem:[#allocation52_spill] sm:$0xff] }
 0x499   :  { %3961 = vmatpush1.bf16.msra.mxu1 %v7304_v54  ;;  %3879 = vmatprep.subr.bf16.mxu0 %v7305_v53  ;;  %v7315_v54 = vld [vmem:[#allocation53_spill] sm:$0xff] }
 0x49a   :  { %3963 = vmatprep.subr.bf16.mxu1 %v7306_v26  ;;  %v7317_v26 = vld [vmem:[#allocation54_spill] sm:$0xff] }
 0x49c   :  { %3881 = vmatpush1.bf16.msra.mxu0 %v7307_v5 }
 0x49d   :  { %3965 = vmatpush1.bf16.msra.mxu1 %v7308_v3  ;;  %3883 = vmatprep.subr.bf16.mxu0 %v7309_v17  ;;  %v7319_v3 = vld [vmem:[#allocation55_spill] sm:$0xff] }
 0x49e   :  { %3967 = vmatprep.subr.bf16.mxu1 %v7310_v27  ;;  %v7321_v27 = vld [vmem:[#allocation56_spill] sm:$0xff] }
 0x4a0   :  { %3885 = vmatpush1.bf16.msra.mxu0 %v7311_v23 }
 0x4a1   :  { %3969 = vmatpush1.bf16.msra.mxu1 %v7312_v62  ;;  %3887 = vmatprep.subr.bf16.mxu0 %v7313_v8  ;;  %v7322_v62 = vld [vmem:[#allocation13_spill] sm:$0xff] }
 0x4a2   :  { %3971 = vmatprep.subr.bf16.mxu1 %v7314_v10  ;;  %v7324_v10 = vld [vmem:[#allocation15_spill] sm:$0xff] }
 0x4a4   :  { %3889 = vmatpush1.bf16.msra.mxu0 %v7315_v54 }
 0x4a5   :  { %3973 = vmatpush1.bf16.msra.mxu1 %v7316_v57  ;;  %3891 = vmatprep.subr.bf16.mxu0 %v7317_v26  ;;  %v7326_v57 = vld [vmem:[#allocation18_spill] sm:$0xff] }
 0x4a6   :  { %3975 = vmatprep.subr.bf16.mxu1 %v7318_v35  ;;  %v7329_v35 = vld [vmem:[#allocation23_spill] sm:$0xff] }
 0x4a8   :  { %3893 = vmatpush1.bf16.msra.mxu0 %v7319_v3 }
 0x4a9   :  { %3977 = vmatpush1.bf16.msra.mxu1 %v7320_v41  ;;  %3895 = vmatprep.subr.bf16.mxu0 %v7321_v27  ;;  %v7328_v41 = vld [vmem:[#allocation22_spill] sm:$0xff] }
 0x4aa   :  { %3979 = vmatprep.subr.bf16.mxu1 %v7270_v4  ;;  %v7330_v4 = vld [vmem:[#allocation24_spill] sm:$0xff] }
 0x4ad   :  { %3981 = vmatpush1.bf16.msra.mxu1 %v7322_v62  ;;  %v7331_v62 = vld [vmem:[#allocation25_spill] sm:$0xff] }
 0x4ae   :  { %3983 = vmatprep.subr.bf16.mxu1 %v7323_v50  ;;  %v7332_v50 = vld [vmem:[#allocation26_spill] sm:$0xff] }
 0x4b1   :  { %3985 = vmatpush1.bf16.msra.mxu1 %v7324_v10  ;;  %v7333_v10 = vld [vmem:[#allocation27_spill] sm:$0xff] }
 0x4b2   :  { %3987 = vmatprep.subr.bf16.mxu1 %v7325_v20  ;;  %v7334_v20 = vld [vmem:[#allocation28_spill] sm:$0xff] }
 0x4b5   :  { %3989 = vmatpush1.bf16.msra.mxu1 %v7326_v57  ;;  %v7335_v57 = vld [vmem:[#allocation29_spill] sm:$0xff] }
 0x4b6   :  { %3991 = vmatprep.subr.bf16.mxu1 %v7327_v48  ;;  %v7336_v48 = vld [vmem:[#allocation30_spill] sm:$0xff] }
 0x4b9   :  { %3993 = vmatpush1.bf16.msra.mxu1 %v7277_v31  ;;  %v7337_v31 = vld [vmem:[#allocation32_spill] sm:$0xff] }
 0x4ba   :  { %3995 = vmatprep.subr.bf16.mxu1 %v7278_v52  ;;  %v7338_v52 = vld [vmem:[#allocation34_spill] sm:$0xff] }
 0x4bd   :  { %3997 = vmatpush1.bf16.msra.mxu1 %v7328_v41  ;;  %v7339_v41 = vld [vmem:[#allocation36_spill] sm:$0xff] }
 0x4be   :  { %3999 = vmatprep.subr.bf16.mxu1 %v7329_v35  ;;  %v7340_v35 = vld [vmem:[#allocation38_spill] sm:$0xff] }
 0x4c1   :  { %4001 = vmatpush1.bf16.msra.mxu1 %v7330_v4  ;;  %v7341_v4 = vld [vmem:[#allocation40_spill] sm:$0xff] }
 0x4c2   :  { %4003 = vmatprep.subr.bf16.mxu1 %v7331_v62 }
 0x4c5   :  { %4005 = vmatpush1.bf16.msra.mxu1 %v7332_v50 }
 0x4c6   :  { %4007 = vmatprep.subr.bf16.mxu1 %v7333_v10 }
 0x4c9   :  { %4009 = vmatpush1.bf16.msra.mxu1 %v7334_v20 }
 0x4ca   :  { %4011 = vmatprep.subr.bf16.mxu1 %v7335_v57 }
 0x4cd   :  { %4013 = vmatpush1.bf16.msra.mxu1 %v7336_v48 }
 0x4ce   :  { %4015 = vmatprep.subr.bf16.mxu1 %v7337_v31 }
 0x4d1   :  { %4017 = vmatpush1.bf16.msra.mxu1 %v7338_v52 }
 0x4d2   :  { %4019 = vmatprep.subr.bf16.mxu1 %v7339_v41 }
 0x4d5   :  { %4021 = vmatpush1.bf16.msra.mxu1 %v7340_v35 }
 0x4d6   :  { %4023 = vmatprep.subr.bf16.mxu1 %v7341_v4 }
 0x53e   :  { %v1690_v62 = vpop.f32.mrb[10].mxu0 }
 0x53f   :  { %v1695_v50 = vadd.f32 %v1690_v62, %v5767_v0  ;;  %v1692_v10 = vpop.f32.mrb[11].mxu0 }
 0x540   :  { %v1696_v20 = vadd.f32 %v1692_v10, %v5770_v45  ;;  %v2916_v10 = vld [vmem:[%s6838_s0 + $0x28] sm:$0xff] }
 0x542   :  { %4715 = vtanh.f32 %v1696_v20 }
 0x543   :  { %4717 = vtanh.f32 %v1695_v50 }
 0x54c   :  { %v4716_v57 = vpop.eup %4715 }
 0x54d   :  { %v6189_v48 = vpop.eup %4717  ;;  %1911 = vmatprep.mubr.f32.mxu1 %v4716_v57 }
 0x54e   :  { %1912 = vmatmul.mubr.f32.vlgmr.msra.gmra.mrb[8].mxu1 %v6189_v48 }
 0x54f   :  { %4025 = vmatpush1.bf16.msra.mxu1 %v7258_v24  ;;  %1985 = vmatprep.mubr.f32.mxu1 %v7259_v36 }
 0x550   :  { %4027 = vmatprep.subr.bf16.mxu1 %v7260_v37 }
 0x553   :  { %4029 = vmatpush1.bf16.msra.mxu1 %v7261_v34 }
 0x554   :  { %4031 = vmatprep.subr.bf16.mxu1 %v7196_v29 }
 0x556   :  { %2917 = vmatmul.mubr.msk.f32.vlgmr.msra.gmra.mrb[8].mxu1 %vm410_vm0, %v2916_v10 }
 0x557   :  { %4033 = vmatpush1.bf16.msra.mxu1 %v4980_v56 }
 0x558   :  { %4035 = vmatprep.subr.bf16.mxu1 %v4992_v60 }
 0x55b   :  { %4037 = vmatpush1.bf16.msra.mxu1 %v5010_v2 }
 0x55c   :  { %4039 = vmatprep.subr.bf16.mxu1 %v5019_v7 }
 0x55f   :  { %4041 = vmatpush1.bf16.msra.mxu1 %v5046_v22 }
 0x560   :  { %4043 = vmatprep.subr.bf16.mxu1 %v5055_v25 }
 0x563   :  { %4045 = vmatpush1.bf16.msra.mxu1 %v5082_v40 }
 0x564   :  { %4047 = vmatprep.subr.bf16.mxu1 %v5091_v43 }
 0x567   :  { %4049 = vmatpush1.bf16.msra.mxu1 %v5118_v55 }
 0x568   :  { %4051 = vmatprep.subr.bf16.mxu1 %v5127_v59 }
 0x56b   :  { %v1539_v50 = vpop.f32.mrb[6].mxu1  ;;  %4053 = vmatpush1.bf16.msra.mxu1 %v5154_v13 }
 0x56c   :  { %v1544_v62 = vadd.f32 %v1539_v50, %v5851_v61  ;;  %v1541_v20 = vpop.f32.mrb[7].mxu1  ;;  %4055 = vmatprep.subr.bf16.mxu1 %v5163_v19 }
 0x56d   :  { %v1545_v10 = vadd.f32 %v1541_v20, %v5854_v16  ;;  %v7345_v20 = vld [vmem:[#allocation72_spill] sm:$0xff] }
 0x56f   :  { %4719 = vtanh.f32 %v1545_v10  ;;  %4057 = vmatpush1.bf16.msra.mxu1 %v5190_v42  ;;  %v7346_v10 = vld [vmem:[#allocation73_spill] sm:$0xff] }
 0x570   :  { %4721 = vtanh.f32 %v1544_v62  ;;  %4059 = vmatprep.subr.bf16.mxu1 %v5199_v47  ;;  %v7344_v62 = vld [vmem:[#allocation71_spill] sm:$0xff] }
 0x573   :  { %4061 = vmatpush1.bf16.msra.mxu1 %v7287_v14 }
 0x574   :  { %4063 = vmatprep.subr.bf16.mxu1 %v7289_v32 }
 0x577   :  { %4065 = vmatpush1.bf16.msra.mxu1 %v7291_v1 }
 0x578   :  { %4067 = vmatprep.subr.bf16.mxu1 %v7293_v58 }
 0x579   :  { %v4720_v50 = vpop.eup %4719 }
 0x57a   :  { %v4722_v61 = vpop.eup %4721  ;;  %1763 = vmatprep.mubr.f32.mxu0 %v4720_v50  ;;  %v7347_v50 = vld [vmem:[#allocation74_spill] sm:$0xff] }
 0x57b   :  { %1764 = vmatmul.mubr.f32.vlgmr.msra.gmra.mrb[12].mxu0 %v4722_v61  ;;  %4069 = vmatpush1.bf16.msra.mxu1 %v7295_v30  ;;  %v7343_v61 = vld [vmem:[#allocation70_spill] sm:$0xff] }
 0x57c   :  { %3897 = vmatpush1.bf16.msra.mxu0 %v7188_v44  ;;  %1834 = vmatprep.mubr.f32.mxu0 %v4716_v57  ;;  %v7342_v57 = vld [vmem:[#allocation69_spill] sm:$0xff] }
 0x57d   :  { %3899 = vmatprep.subr.bf16.mxu0 %v7189_v6  ;;  %4071 = vmatprep.subr.bf16.mxu1 %v7297_v49 }
 0x57f   :  { %4073 = vmatpush1.bf16.msra.mxu1 %v7299_v9 }
 0x580   :  { %3901 = vmatpush1.bf16.msra.mxu0 %v7190_v28  ;;  %4075 = vmatprep.subr.bf16.mxu1 %v7301_v33 }
 0x581   :  { %3903 = vmatprep.subr.bf16.mxu0 %v7191_v63 }
 0x583   :  { %4077 = vmatpush1.bf16.msra.mxu1 %v7303_v11 }
 0x584   :  { %3905 = vmatpush1.bf16.msra.mxu0 %v7192_v51  ;;  %4079 = vmatprep.subr.bf16.mxu1 %v7305_v53 }
 0x585   :  { %3907 = vmatprep.subr.bf16.mxu0 %v7193_v46 }
 0x587   :  { %4081 = vmatpush1.bf16.msra.mxu1 %v7307_v5 }
 0x588   :  { %3909 = vmatpush1.bf16.msra.mxu0 %v7194_v39  ;;  %4083 = vmatprep.subr.bf16.mxu1 %v7309_v17 }
 0x589   :  { %3911 = vmatprep.subr.bf16.mxu0 %v7195_v18  ;;  %v7353_v18 = vld [vmem:[#allocation80_spill] sm:$0xff] }
 0x58b   :  { %4085 = vmatpush1.bf16.msra.mxu1 %v7311_v23 }
 0x58c   :  { %3913 = vmatpush1.bf16.msra.mxu0 %v7240_v15  ;;  %4087 = vmatprep.subr.bf16.mxu1 %v7313_v8  ;;  %v7351_v15 = vld [vmem:[#allocation78_spill] sm:$0xff] }
 0x58d   :  { %3915 = vmatprep.subr.bf16.mxu0 %v7241_v12  ;;  %v7349_v12 = vld [vmem:[#allocation76_spill] sm:$0xff] }
 0x58f   :  { %4089 = vmatpush1.bf16.msra.mxu1 %v7315_v54 }
 0x590   :  { %3917 = vmatpush1.bf16.msra.mxu0 %v7242_v21  ;;  %4091 = vmatprep.subr.bf16.mxu1 %v7317_v26  ;;  %v7348_v21 = vld [vmem:[#allocation75_spill] sm:$0xff] }
 0x591   :  { %3919 = vmatprep.subr.bf16.mxu0 %v7243_v38  ;;  %v7350_v38 = vld [vmem:[#allocation77_spill] sm:$0xff] }
 0x593   :  { %4093 = vmatpush1.bf16.msra.mxu1 %v7319_v3 }
 0x594   :  { %3921 = vmatpush1.bf16.msra.mxu0 %v7342_v57  ;;  %4095 = vmatprep.subr.bf16.mxu1 %v7321_v27  ;;  %v7352_v57 = vld [vmem:[#allocation79_spill] sm:$0xff] }
 0x595   :  { %3923 = vmatprep.subr.bf16.mxu0 %v7343_v61  ;;  %v7354_v61 = vld [vmem:[#allocation81_spill] sm:$0xff] }
 0x598   :  { %3925 = vmatpush1.bf16.msra.mxu0 %v7344_v62  ;;  %v7355_v62 = vld [vmem:[#allocation82_spill] sm:$0xff] }
 0x599   :  { %3927 = vmatprep.subr.bf16.mxu0 %v7345_v20  ;;  %v7356_v20 = vld [vmem:[#allocation83_spill] sm:$0xff] }
 0x59c   :  { %3929 = vmatpush1.bf16.msra.mxu0 %v7346_v10  ;;  %v7357_v10 = vld [vmem:[#allocation84_spill] sm:$0xff] }
 0x59d   :  { %3931 = vmatprep.subr.bf16.mxu0 %v7347_v50  ;;  %v7358_v50 = vld [vmem:[#allocation85_spill] sm:$0xff] }
 0x5a0   :  { %3933 = vmatpush1.bf16.msra.mxu0 %v7348_v21  ;;  %v7359_v21 = vld [vmem:[#allocation86_spill] sm:$0xff] }
 0x5a1   :  { %3935 = vmatprep.subr.bf16.mxu0 %v7349_v12  ;;  %v7360_v12 = vld [vmem:[#allocation87_spill] sm:$0xff] }
 0x5a4   :  { %3937 = vmatpush1.bf16.msra.mxu0 %v7350_v38  ;;  %v7361_v38 = vld [vmem:[#allocation2_spill] sm:$0xff] }
 0x5a5   :  { %3939 = vmatprep.subr.bf16.mxu0 %v7351_v15 }
 0x5a8   :  { %3941 = vmatpush1.bf16.msra.mxu0 %v7352_v57  ;;  %v7362_v57 = vld [vmem:[#allocation3_spill] sm:$0xff] }
 0x5a9   :  { %3943 = vmatprep.subr.bf16.mxu0 %v7353_v18  ;;  %v7363_v18 = vld [vmem:[#allocation4_spill] sm:$0xff] }
 0x5ac   :  { %3945 = vmatpush1.bf16.msra.mxu0 %v7354_v61  ;;  %v7364_v61 = vld [vmem:[#allocation5_spill] sm:$0xff] }
 0x5ad   :  { %3947 = vmatprep.subr.bf16.mxu0 %v7355_v62  ;;  %v7365_v62 = vld [vmem:[#allocation6_spill] sm:$0xff] }
 0x5b0   :  { %3949 = vmatpush1.bf16.msra.mxu0 %v7356_v20  ;;  %v7366_v20 = vld [vmem:[#allocation7_spill] sm:$0xff] }
 0x5b1   :  { %3951 = vmatprep.subr.bf16.mxu0 %v7357_v10  ;;  %v7367_v10 = vld [vmem:[#allocation8_spill] sm:$0xff] }
 0x5b4   :  { %3953 = vmatpush1.bf16.msra.mxu0 %v7358_v50  ;;  %v7368_v50 = vld [vmem:[#allocation9_spill] sm:$0xff] }
 0x5b5   :  { %3955 = vmatprep.subr.bf16.mxu0 %v7359_v21  ;;  %v7369_v21 = vld [vmem:[#allocation10_spill] sm:$0xff] }
 0x5b8   :  { %3957 = vmatpush1.bf16.msra.mxu0 %v7360_v12  ;;  %v7370_v12 = vld [vmem:[#allocation11_spill] sm:$0xff] }
 0x5b9   :  { %4159 = vmatprep.subr.bf16.mxu0 %v7361_v38  ;;  %v7371_v38 = vld [vmem:[#allocation12_spill] sm:$0xff] }
 0x5bb   :  { %1835 = vmatmul.mubr.f32.vlgmr.msra.gmra.mrb[12].mxu0 %v6189_v48  ;;  %v7372_v48 = vld [vmem:[#allocation13_spill] sm:$0xff] }
 0x5bc   :  { %4161 = vmatpush1.bf16.msra.mxu0 %v7362_v57  ;;  %v7373_v57 = vld [vmem:[#allocation14_spill] sm:$0xff] }
 0x5bd   :  { %4163 = vmatprep.subr.bf16.mxu0 %v7363_v18  ;;  %v7374_v18 = vld [vmem:[#allocation15_spill] sm:$0xff] }
 0x5c0   :  { %4165 = vmatpush1.bf16.msra.mxu0 %v7364_v61  ;;  %v7375_v61 = vld [vmem:[#allocation16_spill] sm:$0xff] }
 0x5c1   :  { %4167 = vmatprep.subr.bf16.mxu0 %v7365_v62  ;;  %v7376_v62 = vld [vmem:[#allocation18_spill] sm:$0xff] }
 0x5c4   :  { %4169 = vmatpush1.bf16.msra.mxu0 %v7366_v20  ;;  %v7377_v20 = vld [vmem:[#allocation19_spill] sm:$0xff] }
 0x5c5   :  { %4171 = vmatprep.subr.bf16.mxu0 %v7367_v10  ;;  %v7378_v10 = vld [vmem:[#allocation20_spill] sm:$0xff] }
 0x5c8   :  { %4173 = vmatpush1.bf16.msra.mxu0 %v7368_v50  ;;  %v7379_v50 = vld [vmem:[#allocation21_spill] sm:$0xff] }
 0x5c9   :  { %4175 = vmatprep.subr.bf16.mxu0 %v7369_v21  ;;  %v7380_v21 = vld [vmem:[#allocation22_spill] sm:$0xff] }
 0x5cc   :  { %4177 = vmatpush1.bf16.msra.mxu0 %v7370_v12  ;;  %v7381_v12 = vld [vmem:[#allocation23_spill] sm:$0xff] }
 0x5cd   :  { %4179 = vmatprep.subr.bf16.mxu0 %v7371_v38  ;;  %v7382_v38 = vld [vmem:[#allocation24_spill] sm:$0xff] }
 0x5d0   :  { %4181 = vmatpush1.bf16.msra.mxu0 %v7372_v48  ;;  %v7383_v48 = vld [vmem:[#allocation25_spill] sm:$0xff] }
 0x5d1   :  { %4183 = vmatprep.subr.bf16.mxu0 %v7373_v57  ;;  %v7384_v57 = vld [vmem:[#allocation26_spill] sm:$0xff] }
 0x5d4   :  { %4185 = vmatpush1.bf16.msra.mxu0 %v7374_v18  ;;  %v7385_v18 = vld [vmem:[#allocation27_spill] sm:$0xff] }
 0x5d5   :  { %4187 = vmatprep.subr.bf16.mxu0 %v7375_v61  ;;  %v7386_v61 = vld [vmem:[#allocation28_spill] sm:$0xff] }
 0x5d8   :  { %4189 = vmatpush1.bf16.msra.mxu0 %v7376_v62  ;;  %v7387_v62 = vld [vmem:[#allocation29_spill] sm:$0xff] }
 0x5d9   :  { %4191 = vmatprep.subr.bf16.mxu0 %v7377_v20  ;;  %v7388_v20 = vld [vmem:[#allocation30_spill] sm:$0xff] }
 0x5dc   :  { %4193 = vmatpush1.bf16.msra.mxu0 %v7378_v10 }
 0x5dd   :  { %4195 = vmatprep.subr.bf16.mxu0 %v7379_v50 }
 0x5e0   :  { %4197 = vmatpush1.bf16.msra.mxu0 %v7380_v21 }
 0x5e1   :  { %4199 = vmatprep.subr.bf16.mxu0 %v7381_v12 }
 0x5e4   :  { %4201 = vmatpush1.bf16.msra.mxu0 %v7382_v38 }
 0x5e5   :  { %4203 = vmatprep.subr.bf16.mxu0 %v7383_v48 }
 0x5e8   :  { %4205 = vmatpush1.bf16.msra.mxu0 %v7384_v57 }
 0x5e9   :  { %4207 = vmatprep.subr.bf16.mxu0 %v7385_v18 }
 0x5ec   :  { %4209 = vmatpush1.bf16.msra.mxu0 %v7386_v61 }
 0x5ed   :  { %4211 = vmatprep.subr.bf16.mxu0 %v7387_v62 }
 0x5f0   :  { %4213 = vmatpush1.bf16.msra.mxu0 %v7388_v20 }
 0x5f1   :  { %4215 = vmatprep.subr.bf16.mxu0 %v7337_v31 }
 0x5f4   :  { %4217 = vmatpush1.bf16.msra.mxu0 %v7338_v52 }
 0x5f5   :  { %4219 = vmatprep.subr.bf16.mxu0 %v7339_v41 }
 0x5f8   :  { %4221 = vmatpush1.bf16.msra.mxu0 %v7340_v35 }
 0x5f9   :  { %4223 = vmatprep.subr.bf16.mxu0 %v7341_v4 }
 0x629   :  { %v1987_v48 = vpop.f32.mrb[8].mxu1 }
 0x62a   :  { %v1992_v57 = vadd.f32 %v1987_v48, %v5767_v0  ;;  %v1989_v18 = vpop.f32.mrb[9].mxu1 }
 0x62b   :  { %v1993_v61 = vadd.f32 %v1989_v18, %v5770_v45  ;;  %v2918_v18 = vld [vmem:[%s6838_s0 + $0x30] sm:$0xff] }
 0x62d   :  { %4723 = vtanh.f32 %v1993_v61  ;;  %v7389_v61 = vld [vmem:[#allocation90_spill] sm:$0xff] }
 0x62e   :  { %4725 = vtanh.f32 %v1992_v57 }
 0x637   :  { %v4724_v62 = vpop.eup %4723 }
 0x638   :  { %v6302_v20 = vpop.eup %4725  ;;  %2208 = vmatprep.mubr.f32.mxu0 %v4724_v62 }
 0x639   :  { %2209 = vmatmul.mubr.f32.vlgmr.msra.gmra.mrb[14].mxu0 %v6302_v20 }
 0x63a   :  { %4225 = vmatpush1.bf16.msra.mxu0 %v7258_v24  ;;  %2282 = vmatprep.mubr.f32.mxu0 %v7259_v36 }
 0x63b   :  { %4227 = vmatprep.subr.bf16.mxu0 %v7260_v37 }
 0x63e   :  { %4229 = vmatpush1.bf16.msra.mxu0 %v7261_v34 }
 0x63f   :  { %4231 = vmatprep.subr.bf16.mxu0 %v7196_v29 }
 0x641   :  { %2919 = vmatmul.mubr.msk.f32.vlgmr.msra.gmra.mrb[14].mxu0 %vm410_vm0, %v2918_v18 }
 0x642   :  { %4233 = vmatpush1.bf16.msra.mxu0 %v4980_v56 }
 0x643   :  { %4235 = vmatprep.subr.bf16.mxu0 %v4992_v60 }
 0x646   :  { %4237 = vmatpush1.bf16.msra.mxu0 %v5010_v2 }
 0x647   :  { %4239 = vmatprep.subr.bf16.mxu0 %v5019_v7 }
 0x64a   :  { %4241 = vmatpush1.bf16.msra.mxu0 %v5046_v22 }
 0x64b   :  { %4243 = vmatprep.subr.bf16.mxu0 %v5055_v25 }
 0x64e   :  { %4245 = vmatpush1.bf16.msra.mxu0 %v5082_v40 }
 0x64f   :  { %4247 = vmatprep.subr.bf16.mxu0 %v5091_v43 }
 0x652   :  { %4249 = vmatpush1.bf16.msra.mxu0 %v5118_v55 }
 0x653   :  { %4251 = vmatprep.subr.bf16.mxu0 %v5127_v59 }
 0x656   :  { %4253 = vmatpush1.bf16.msra.mxu0 %v5154_v13 }
 0x657   :  { %4255 = vmatprep.subr.bf16.mxu0 %v5163_v19 }
 0x65a   :  { %4257 = vmatpush1.bf16.msra.mxu0 %v5190_v42 }
 0x65b   :  { %4259 = vmatprep.subr.bf16.mxu0 %v5199_v47 }
 0x65e   :  { %4261 = vmatpush1.bf16.msra.mxu0 %v7287_v14 }
 0x65f   :  { %4263 = vmatprep.subr.bf16.mxu0 %v7289_v32 }
 0x662   :  { %4265 = vmatpush1.bf16.msra.mxu0 %v7291_v1 }
 0x663   :  { %4267 = vmatprep.subr.bf16.mxu0 %v7293_v58 }
 0x666   :  { %4269 = vmatpush1.bf16.msra.mxu0 %v7295_v30 }
 0x667   :  { %4271 = vmatprep.subr.bf16.mxu0 %v7297_v49 }
 0x66a   :  { %4273 = vmatpush1.bf16.msra.mxu0 %v7299_v9 }
 0x66b   :  { %4275 = vmatprep.subr.bf16.mxu0 %v7301_v33 }
 0x66e   :  { %4277 = vmatpush1.bf16.msra.mxu0 %v7303_v11 }
 0x66f   :  { %4279 = vmatprep.subr.bf16.mxu0 %v7305_v53 }
 0x672   :  { %4281 = vmatpush1.bf16.msra.mxu0 %v7307_v5 }
 0x673   :  { %4283 = vmatprep.subr.bf16.mxu0 %v7309_v17 }
 0x676   :  { %4285 = vmatpush1.bf16.msra.mxu0 %v7311_v23 }
 0x677   :  { %4287 = vmatprep.subr.bf16.mxu0 %v7313_v8 }
 0x67a   :  { %4289 = vmatpush1.bf16.msra.mxu0 %v7315_v54 }
 0x67b   :  { %4291 = vmatprep.subr.bf16.mxu0 %v7317_v26 }
 0x67e   :  { %4293 = vmatpush1.bf16.msra.mxu0 %v7319_v3 }
 0x67f   :  { %4295 = vmatprep.subr.bf16.mxu0 %v7321_v27 }
 0x68e   :  { %v1836_v57 = vpop.f32.mrb[12].mxu0 }
 0x68f   :  { %v1841_v48 = vadd.f32 %v1836_v57, %v7389_v61  ;;  %v1838_v18 = vpop.f32.mrb[13].mxu0  ;;  %v7391_v57 = vld [vmem:[#allocation65_spill] sm:$0xff] }
 0x690   :  { %v1842_v5 = vadd.f32 %v1838_v18, %v5854_v16  ;;  %v7396_v18 = vld [vmem:[#allocation70_spill] sm:$0xff] }
 0x692   :  { %4727 = vtanh.f32 %v1842_v5  ;;  %v7390_v5 = vld [vmem:[#allocation64_spill] sm:$0xff] }
 0x693   :  { %4729 = vtanh.f32 %v1841_v48  ;;  %v7395_v48 = vld [vmem:[#allocation69_spill] sm:$0xff] }
 0x69c   :  { %v4728_v17 = vpop.eup %4727 }
 0x69d   :  { %v4730_v23 = vpop.eup %4729  ;;  %2060 = vmatprep.mubr.f32.mxu1 %v4728_v17  ;;  %v7392_v17 = vld [vmem:[#allocation66_spill] sm:$0xff] }
 0x69e   :  { %2061 = vmatmul.mubr.f32.vlgmr.msra.gmra.mrb[10].mxu1 %v4730_v23  ;;  %v7393_v23 = vld [vmem:[#allocation67_spill] sm:$0xff] }
 0x69f   :  { %4097 = vmatpush1.bf16.msra.mxu1 %v7188_v44  ;;  %2131 = vmatprep.mubr.f32.mxu1 %v4724_v62  ;;  %v7394_v62 = vld [vmem:[#allocation68_spill] sm:$0xff] }
 0x6a0   :  { %4099 = vmatprep.subr.bf16.mxu1 %v7189_v6 }
 0x6a3   :  { %4101 = vmatpush1.bf16.msra.mxu1 %v7190_v28 }
 0x6a4   :  { %4103 = vmatprep.subr.bf16.mxu1 %v7191_v63  ;;  %v7397_v63 = vld [vmem:[#allocation71_spill] sm:$0xff] }
 0x6a7   :  { %4105 = vmatpush1.bf16.msra.mxu1 %v7192_v51  ;;  %v7398_v51 = vld [vmem:[#allocation72_spill] sm:$0xff] }
 0x6a8   :  { %4107 = vmatprep.subr.bf16.mxu1 %v7193_v46  ;;  %v7399_v46 = vld [vmem:[#allocation73_spill] sm:$0xff] }
 0x6ab   :  { %4109 = vmatpush1.bf16.msra.mxu1 %v7194_v39  ;;  %v7400_v39 = vld [vmem:[#allocation74_spill] sm:$0xff] }
 0x6ac   :  { %4111 = vmatprep.subr.bf16.mxu1 %v7390_v5  ;;  %v7401_v5 = vld [vmem:[#allocation75_spill] sm:$0xff] }
 0x6af   :  { %4113 = vmatpush1.bf16.msra.mxu1 %v7391_v57  ;;  %v7402_v57 = vld [vmem:[#allocation76_spill] sm:$0xff] }
 0x6b0   :  { %4115 = vmatprep.subr.bf16.mxu1 %v7392_v17  ;;  %v7403_v17 = vld [vmem:[#allocation77_spill] sm:$0xff] }
 0x6b3   :  { %4117 = vmatpush1.bf16.msra.mxu1 %v7393_v23 }
 0x6b4   :  { %4119 = vmatprep.subr.bf16.mxu1 %v7394_v62  ;;  %v7404_v62 = vld [vmem:[#allocation79_spill] sm:$0xff] }
 0x6b7   :  { %4121 = vmatpush1.bf16.msra.mxu1 %v7395_v48  ;;  %v7405_v48 = vld [vmem:[#allocation80_spill] sm:$0xff] }
 0x6b8   :  { %4123 = vmatprep.subr.bf16.mxu1 %v7396_v18  ;;  %v7406_v18 = vld [vmem:[#allocation81_spill] sm:$0xff] }
 0x6bb   :  { %4125 = vmatpush1.bf16.msra.mxu1 %v7397_v63  ;;  %v7407_v63 = vld [vmem:[#allocation82_spill] sm:$0xff] }
 0x6bc   :  { %4127 = vmatprep.subr.bf16.mxu1 %v7398_v51  ;;  %v7408_v51 = vld [vmem:[#allocation83_spill] sm:$0xff] }
 0x6bf   :  { %4129 = vmatpush1.bf16.msra.mxu1 %v7399_v46  ;;  %v7409_v46 = vld [vmem:[#allocation84_spill] sm:$0xff] }
 0x6c0   :  { %4131 = vmatprep.subr.bf16.mxu1 %v7400_v39  ;;  %v7410_v39 = vld [vmem:[#allocation85_spill] sm:$0xff] }
 0x6c3   :  { %4133 = vmatpush1.bf16.msra.mxu1 %v7401_v5  ;;  %v7411_v5 = vld [vmem:[#allocation86_spill] sm:$0xff] }
 0x6c4   :  { %4135 = vmatprep.subr.bf16.mxu1 %v7402_v57  ;;  %v7412_v57 = vld [vmem:[#allocation87_spill] sm:$0xff] }
 0x6c7   :  { %4137 = vmatpush1.bf16.msra.mxu1 %v7403_v17  ;;  %v7413_v17 = vld [vmem:[#allocation2_spill] sm:$0xff] }
 0x6c8   :  { %4139 = vmatprep.subr.bf16.mxu1 %v7351_v15 }
 0x6cb   :  { %4141 = vmatpush1.bf16.msra.mxu1 %v7404_v62  ;;  %v7414_v62 = vld [vmem:[#allocation3_spill] sm:$0xff] }
 0x6cc   :  { %4143 = vmatprep.subr.bf16.mxu1 %v7405_v48  ;;  %v7415_v48 = vld [vmem:[#allocation4_spill] sm:$0xff] }
 0x6cf   :  { %4145 = vmatpush1.bf16.msra.mxu1 %v7406_v18  ;;  %v7416_v18 = vld [vmem:[#allocation5_spill] sm:$0xff] }
 0x6d0   :  { %4147 = vmatprep.subr.bf16.mxu1 %v7407_v63  ;;  %v7417_v63 = vld [vmem:[#allocation6_spill] sm:$0xff] }
 0x6d3   :  { %4149 = vmatpush1.bf16.msra.mxu1 %v7408_v51  ;;  %v7418_v51 = vld [vmem:[#allocation7_spill] sm:$0xff] }
 0x6d4   :  { %4151 = vmatprep.subr.bf16.mxu1 %v7409_v46  ;;  %v7419_v46 = vld [vmem:[#allocation8_spill] sm:$0xff] }
 0x6d7   :  { %4153 = vmatpush1.bf16.msra.mxu1 %v7410_v39  ;;  %v7420_v39 = vld [vmem:[#allocation9_spill] sm:$0xff] }
 0x6d8   :  { %4155 = vmatprep.subr.bf16.mxu1 %v7411_v5  ;;  %v7421_v5 = vld [vmem:[#allocation10_spill] sm:$0xff] }
 0x6db   :  { %4157 = vmatpush1.bf16.msra.mxu1 %v7412_v57  ;;  %v7422_v57 = vld [vmem:[#allocation11_spill] sm:$0xff] }
 0x6dc   :  { %4359 = vmatprep.subr.bf16.mxu1 %v7413_v17  ;;  %v7423_v17 = vld [vmem:[#allocation12_spill] sm:$0xff] }
 0x6de   :  { %2132 = vmatmul.mubr.f32.vlgmr.msra.gmra.mrb[10].mxu1 %v6302_v20  ;;  %v7424_v20 = vld [vmem:[#allocation13_spill] sm:$0xff] }
 0x6df   :  { %4361 = vmatpush1.bf16.msra.mxu1 %v7414_v62  ;;  %v7425_v62 = vld [vmem:[#allocation14_spill] sm:$0xff] }
 0x6e0   :  { %4363 = vmatprep.subr.bf16.mxu1 %v7415_v48  ;;  %v7426_v48 = vld [vmem:[#allocation15_spill] sm:$0xff] }
 0x6e3   :  { %4365 = vmatpush1.bf16.msra.mxu1 %v7416_v18  ;;  %v7427_v18 = vld [vmem:[#allocation16_spill] sm:$0xff] }
 0x6e4   :  { %4367 = vmatprep.subr.bf16.mxu1 %v7417_v63  ;;  %v7428_v63 = vld [vmem:[#allocation18_spill] sm:$0xff] }
 0x6e7   :  { %4369 = vmatpush1.bf16.msra.mxu1 %v7418_v51  ;;  %v7429_v51 = vld [vmem:[#allocation19_spill] sm:$0xff] }
 0x6e8   :  { %4371 = vmatprep.subr.bf16.mxu1 %v7419_v46  ;;  %v7430_v46 = vld [vmem:[#allocation25_spill] sm:$0xff] }
 0x6eb   :  { %4373 = vmatpush1.bf16.msra.mxu1 %v7420_v39  ;;  %v7431_v39 = vld [vmem:[#allocation26_spill] sm:$0xff] }
 0x6ec   :  { %4375 = vmatprep.subr.bf16.mxu1 %v7421_v5  ;;  %v7432_v5 = vld [vmem:[#allocation27_spill] sm:$0xff] }
 0x6ef   :  { %4377 = vmatpush1.bf16.msra.mxu1 %v7422_v57  ;;  %v7433_v57 = vld [vmem:[#allocation28_spill] sm:$0xff] }
 0x6f0   :  { %4379 = vmatprep.subr.bf16.mxu1 %v7423_v17  ;;  %v7434_v17 = vld [vmem:[#allocation29_spill] sm:$0xff] }
 0x6f3   :  { %4381 = vmatpush1.bf16.msra.mxu1 %v7424_v20  ;;  %v7435_v20 = vld [vmem:[#allocation30_spill] sm:$0xff] }
 0x6f4   :  { %4383 = vmatprep.subr.bf16.mxu1 %v7425_v62 }
 0x6f7   :  { %4385 = vmatpush1.bf16.msra.mxu1 %v7426_v48  ;;  %v243_v48 = vld [vmem:[%s6842_s7 + $0x18] sm:$0xff] }
 0x6f8   :  { %4387 = vmatprep.subr.bf16.mxu1 %v7427_v18  ;;  %v240_v18 = vld [vmem:[%s6842_s7] sm:$0xff] }
 0x6fb   :  { %4389 = vmatpush1.bf16.msra.mxu1 %v7428_v63 }
 0x6fc   :  { %4391 = vmatprep.subr.bf16.mxu1 %v7429_v51  ;;  %v242_v51 = vld [vmem:[%s6842_s7 + $0x10] sm:$0xff] }
 0x6ff   :  { %4393 = vmatpush1.bf16.msra.mxu1 %v7378_v10 }
 0x700   :  { %4395 = vmatprep.subr.bf16.mxu1 %v7379_v50 }
 0x703   :  { %4397 = vmatpush1.bf16.msra.mxu1 %v7380_v21 }
 0x704   :  { %4399 = vmatprep.subr.bf16.mxu1 %v7381_v12 }
 0x707   :  { %4401 = vmatpush1.bf16.msra.mxu1 %v7382_v38 }
 0x708   :  { %4403 = vmatprep.subr.bf16.mxu1 %v7430_v46  ;;  %v245_v46 = vld [vmem:[%s6842_s7 + $0x28] sm:$0xff] }
 0x70b   :  { %4405 = vmatpush1.bf16.msra.mxu1 %v7431_v39  ;;  %v247_v39 = vld [vmem:[%s6842_s7 + $0x38] sm:$0xff] }
 0x70c   :  { %4407 = vmatprep.subr.bf16.mxu1 %v7432_v5  ;;  %v4560_v5 = vpack.c.bf16 %v242_v51, %v240_v18  ;;  %v261_v18 = vld [vmem:[%s6842_s7 + $0xa8] sm:$0xff] }
 0x70f   :  { %4409 = vmatpush1.bf16.msra.mxu1 %v7433_v57  ;;  %v4562_v57 = vpack.c.bf16 %v247_v39, %v245_v46  ;;  %v260_v39 = vld [vmem:[%s6842_s7 + $0xa0] sm:$0xff] }
 0x710   :  { %4411 = vmatprep.subr.bf16.mxu1 %v7434_v17  ;;  %v244_v17 = vld [vmem:[%s6842_s7 + $0x20] sm:$0xff] }
 0x713   :  { %4413 = vmatpush1.bf16.msra.mxu1 %v7435_v20  ;;  %v246_v20 = vld [vmem:[%s6842_s7 + $0x30] sm:$0xff] }
 0x714   :  { %v2284_v10 = vpop.f32.mrb[14].mxu0  ;;  %4415 = vmatprep.subr.bf16.mxu1 %v7337_v31  ;;  %v7452_v31 = vld [vmem:[#allocation74_spill] sm:$0xff] }
 0x715   :  { %v2289_v21 = vadd.f32 %v2284_v10, %v5767_v0  ;;  %v2286_v12 = vpop.f32.mrb[15].mxu0  ;;  %v249_v10 = vld [vmem:[%s6842_s7 + $0x48] sm:$0xff] }
 0x716   :  { %v2290_v38 = vadd.f32 %v2286_v12, %v5770_v45  ;;  %v4564_v12 = vpack.c.bf16 %v246_v20, %v244_v17  ;;  %v267_v17 = vld [vmem:[%s6842_s7 + $0xd8] sm:$0xff] }
 0x717   :  { %4417 = vmatpush1.bf16.msra.mxu1 %v7338_v52  ;;  %v7446_v52 = vld [vmem:[#allocation68_spill] sm:$0xff] }
 0x718   :  { %4731 = vtanh.f32 %v2290_v38  ;;  %4419 = vmatprep.subr.bf16.mxu1 %v7339_v41 }
 0x719   :  { %4733 = vtanh.f32 %v2289_v21  ;;  %v251_v21 = vld [vmem:[%s6842_s7 + $0x58] sm:$0xff] }
 0x71a   :  { %v4566_v38 = vpack.c.bf16 %v251_v21, %v249_v10  ;;  %v264_v21 = vld [vmem:[%s6842_s7 + $0xc0] sm:$0xff] }
 0x71b   :  { %4421 = vmatpush1.bf16.msra.mxu1 %v7340_v35  ;;  %v2920_v35 = vld [vmem:[%s6838_s0 + $0x38] sm:$0xff] }
 0x71c   :  { %4423 = vmatprep.subr.bf16.mxu1 %v7341_v4  ;;  %v7436_v4 = vld [vmem:[#allocation49_spill] sm:$0xff] }
 0x722   :  { %v4732_v50 = vpop.eup %4731 }
 0x723   :  { %v6415_v62 = vpop.eup %4733  ;;  %2505 = vmatprep.mubr.f32.mxu1 %v4732_v50 }
 0x724   :  { %2506 = vmatmul.mubr.f32.vlgmr.msra.gmra.mrb[12].mxu1 %v6415_v62 }
 0x725   :  { %4425 = vmatpush1.bf16.msra.mxu1 %v7258_v24  ;;  %2579 = vmatprep.mubr.f32.mxu1 %v7259_v36  ;;  %v7448_v36 = vld [vmem:[#allocation70_spill] sm:$0xff]  ;;  %v7449_v24 = vld [vmem:[#allocation71_spill] sm:$0xff] }
 0x726   :  { %4427 = vmatprep.subr.bf16.mxu1 %v7260_v37  ;;  %v7447_v37 = vld [vmem:[#allocation69_spill] sm:$0xff] }
 0x729   :  { %4429 = vmatpush1.bf16.msra.mxu1 %v7261_v34  ;;  %v7453_v34 = vld [vmem:[#allocation75_spill] sm:$0xff] }
 0x72a   :  { %4431 = vmatprep.subr.bf16.mxu1 %v7196_v29  ;;  %v7451_v29 = vld [vmem:[#allocation73_spill] sm:$0xff] }
 0x72c   :  { %2921 = vmatmul.mubr.msk.f32.vlgmr.msra.gmra.mrb[12].mxu1 %vm410_vm0, %v2920_v35  ;;  %v253_v35 = vld [vmem:[%s6842_s7 + $0x68] sm:$0xff] }
 0x72d   :  { %4433 = vmatpush1.bf16.msra.mxu1 %v4980_v56  ;;  %v7437_v56 = vld [vmem:[#allocation50_spill] sm:$0xff] }
 0x72e   :  { %4435 = vmatprep.subr.bf16.mxu1 %v4992_v60  ;;  %v7438_v60 = vld [vmem:[#allocation51_spill] sm:$0xff] }
 0x731   :  { %4437 = vmatpush1.bf16.msra.mxu1 %v5010_v2 }
 0x732   :  { %4439 = vmatprep.subr.bf16.mxu1 %v5019_v7 }
 0x735   :  { %4441 = vmatpush1.bf16.msra.mxu1 %v5046_v22 }
 0x736   :  { %4443 = vmatprep.subr.bf16.mxu1 %v5055_v25 }
 0x739   :  { %4445 = vmatpush1.bf16.msra.mxu1 %v5082_v40 }
 0x73a   :  { %4447 = vmatprep.subr.bf16.mxu1 %v5091_v43  ;;  %v7439_v43 = vld [vmem:[#allocation60_spill] sm:$0xff] }
 0x73d   :  { %4449 = vmatpush1.bf16.msra.mxu1 %v5118_v55  ;;  %v7440_v55 = vld [vmem:[#allocation61_spill] sm:$0xff] }
 0x73e   :  { %4451 = vmatprep.subr.bf16.mxu1 %v5127_v59  ;;  %v7441_v59 = vld [vmem:[#allocation62_spill] sm:$0xff] }
 0x741   :  { %4453 = vmatpush1.bf16.msra.mxu1 %v5154_v13  ;;  %v7442_v13 = vld [vmem:[#allocation63_spill] sm:$0xff] }
 0x742   :  { %4455 = vmatprep.subr.bf16.mxu1 %v5163_v19  ;;  %v7443_v19 = vld [vmem:[#allocation64_spill] sm:$0xff] }
 0x745   :  { %4457 = vmatpush1.bf16.msra.mxu1 %v5190_v42  ;;  %v7444_v42 = vld [vmem:[#allocation65_spill] sm:$0xff] }
 0x746   :  { %4459 = vmatprep.subr.bf16.mxu1 %v5199_v47  ;;  %v7445_v47 = vld [vmem:[#allocation66_spill] sm:$0xff] }
 0x749   :  { %4461 = vmatpush1.bf16.msra.mxu1 %v7287_v14  ;;  %v7454_v14 = vld [vmem:[#allocation76_spill] sm:$0xff] }
 0x74a   :  { %4463 = vmatprep.subr.bf16.mxu1 %v7289_v32  ;;  %v7456_v32 = vld [vmem:[#allocation79_spill] sm:$0xff] }
 0x74d   :  { %4465 = vmatpush1.bf16.msra.mxu1 %v7291_v1  ;;  %v7458_v1 = vld [vmem:[#allocation81_spill] sm:$0xff] }
 0x74e   :  { %4467 = vmatprep.subr.bf16.mxu1 %v7293_v58  ;;  %v7460_v58 = vld [vmem:[#allocation83_spill] sm:$0xff] }
 0x751   :  { %4469 = vmatpush1.bf16.msra.mxu1 %v7295_v30  ;;  %v7462_v30 = vld [vmem:[#allocation85_spill] sm:$0xff] }
 0x752   :  { %4471 = vmatprep.subr.bf16.mxu1 %v7297_v49  ;;  %v7464_v49 = vld [vmem:[#allocation87_spill] sm:$0xff] }
 0x755   :  { %4473 = vmatpush1.bf16.msra.mxu1 %v7299_v9 }
 0x756   :  { %4475 = vmatprep.subr.bf16.mxu1 %v7301_v33  ;;  %v7457_v33 = vld [vmem:[#allocation80_spill] sm:$0xff] }
 0x759   :  { %4477 = vmatpush1.bf16.msra.mxu1 %v7303_v11  ;;  %v7459_v11 = vld [vmem:[#allocation82_spill] sm:$0xff] }
 0x75a   :  { %4479 = vmatprep.subr.bf16.mxu1 %v7305_v53  ;;  %v7450_v53 = vld [vmem:[#allocation72_spill] sm:$0xff] }
 0x75d   :  { %4481 = vmatpush1.bf16.msra.mxu1 %v7436_v4  ;;  %v255_v4 = vld [vmem:[%s6842_s7 + $0x78] sm:$0xff] }
 0x75e   :  { %4483 = vmatprep.subr.bf16.mxu1 %v7437_v56 }
 0x761   :  { %4485 = vmatpush1.bf16.msra.mxu1 %v7438_v60  ;;  %v4570_v60 = vpack.c.bf16 %v255_v4, %v253_v35  ;;  %v268_v4 = vld [vmem:[%s6842_s7 + $0xe0] sm:$0xff] }
 0x762   :  { %4487 = vmatprep.subr.bf16.mxu1 %v7313_v8  ;;  %v241_v8 = vld [vmem:[%s6842_s7 + $0x8] sm:$0xff] }
 0x763   :  { %v4558_v63 = vpack.c.bf16 %v243_v48, %v241_v8  ;;  %v256_v8 = vld [vmem:[%s6842_s7 + $0x80] sm:$0xff]  ;;  %v258_v48 = vld [vmem:[%s6842_s7 + $0x90] sm:$0xff] }
 0x764   :  { %v4576_v51 = vpack.c.bf16 %v258_v48, %v256_v8  ;;  %v279_v8 = vld [vmem:[%s6842_s7 + $0x138] sm:$0xff] }
 0x765   :  { %4489 = vmatpush1.bf16.msra.mxu1 %v7315_v54  ;;  %v7461_v54 = vld [vmem:[#allocation84_spill] sm:$0xff] }
 0x766   :  { %4491 = vmatprep.subr.bf16.mxu1 %v7317_v26  ;;  %v7463_v26 = vld [vmem:[#allocation86_spill] sm:$0xff] }
 0x769   :  { %4493 = vmatpush1.bf16.msra.mxu1 %v7319_v3 }
 0x76a   :  { %4495 = vmatprep.subr.bf16.mxu1 %v7321_v27  ;;  %v7455_v27 = vld [vmem:[#allocation77_spill] sm:$0xff] }
 0x7b1   :  { %v2133_v2 = vpop.f32.mrb[10].mxu1 }
 0x7b2   :  { %v2138_v7 = vadd.f32 %v2133_v2, %v7389_v61  ;;  %v2135_v22 = vpop.f32.mrb[11].mxu1  ;;  %v252_v2 = vld [vmem:[%s6842_s7 + $0x60] sm:$0xff] }
 0x7b3   :  { %v2139_v25 = vadd.f32 %v2135_v22, %v5854_v16  ;;  %v257_v22 = vld [vmem:[%s6842_s7 + $0x88] sm:$0xff] }
 0x7b5   :  { %4735 = vtanh.f32 %v2139_v25  ;;  %v259_v25 = vld [vmem:[%s6842_s7 + $0x98] sm:$0xff] }
 0x7b6   :  { %4737 = vtanh.f32 %v2138_v7  ;;  %v254_v7 = vld [vmem:[%s6842_s7 + $0x70] sm:$0xff] }
 0x7bf   :  { %v4736_v40 = vpop.eup %4735 }
 0x7c0   :  { %v4738_v41 = vpop.eup %4737  ;;  %2357 = vmatprep.mubr.f32.mxu0 %v4736_v40  ;;  %v4572_v40 = vpack.c.bf16 %v254_v7, %v252_v2  ;;  %v275_v2 = vld [vmem:[%s6842_s7 + $0x118] sm:$0xff] }
 0x7c1   :  { %2358 = vmatmul.mubr.f32.vlgmr.msra.gmra.mrb[16].mxu0 %v4738_v41  ;;  %v4574_v41 = vpack.c.bf16 %v259_v25, %v257_v22  ;;  %v272_v25 = vld [vmem:[%s6842_s7 + $0x100] sm:$0xff] }
 0x7c2   :  { %4297 = vmatpush1.bf16.msra.mxu0 %v7188_v44  ;;  %2428 = vmatprep.mubr.f32.mxu0 %v4732_v50  ;;  %v248_v50 = vld [vmem:[%s6842_s7 + $0x40] sm:$0xff] }
 0x7c3   :  { %4299 = vmatprep.subr.bf16.mxu0 %v7189_v6 }
 0x7c6   :  { %4301 = vmatpush1.bf16.msra.mxu0 %v7190_v28 }
 0x7c7   :  { %4303 = vmatprep.subr.bf16.mxu0 %v7439_v43 }
 0x7ca   :  { %4305 = vmatpush1.bf16.msra.mxu0 %v7440_v55 }
 0x7cb   :  { %4307 = vmatprep.subr.bf16.mxu0 %v7441_v59 }
 0x7ce   :  { %4309 = vmatpush1.bf16.msra.mxu0 %v7442_v13 }
 0x7cf   :  { %4311 = vmatprep.subr.bf16.mxu0 %v7443_v19 }
 0x7d2   :  { %4313 = vmatpush1.bf16.msra.mxu0 %v7444_v42 }
 0x7d3   :  { %4315 = vmatprep.subr.bf16.mxu0 %v7445_v47 }
 0x7d6   :  { %4317 = vmatpush1.bf16.msra.mxu0 %v7393_v23 }
 0x7d7   :  { %4319 = vmatprep.subr.bf16.mxu0 %v7446_v52 }
 0x7da   :  { %4321 = vmatpush1.bf16.msra.mxu0 %v7447_v37 }
 0x7db   :  { %4323 = vmatprep.subr.bf16.mxu0 %v7448_v36 }
 0x7de   :  { %4325 = vmatpush1.bf16.msra.mxu0 %v7449_v24 }
 0x7df   :  { %4327 = vmatprep.subr.bf16.mxu0 %v7450_v53 }
 0x7e2   :  { %4329 = vmatpush1.bf16.msra.mxu0 %v7451_v29 }
 0x7e3   :  { %4331 = vmatprep.subr.bf16.mxu0 %v7452_v31 }
 0x7e6   :  { %4333 = vmatpush1.bf16.msra.mxu0 %v7453_v34 }
 0x7e7   :  { %4335 = vmatprep.subr.bf16.mxu0 %v7454_v14 }
 0x7ea   :  { %4337 = vmatpush1.bf16.msra.mxu0 %v7455_v27 }
 0x7eb   :  { %4339 = vmatprep.subr.bf16.mxu0 %v7351_v15 }
 0x7ee   :  { %4341 = vmatpush1.bf16.msra.mxu0 %v7456_v32 }
 0x7ef   :  { %4343 = vmatprep.subr.bf16.mxu0 %v7457_v33 }
 0x7f2   :  { %4345 = vmatpush1.bf16.msra.mxu0 %v7458_v1 }
 0x7f3   :  { %4347 = vmatprep.subr.bf16.mxu0 %v7459_v11 }
 0x7f6   :  { %4349 = vmatpush1.bf16.msra.mxu0 %v7460_v58 }
 0x7f7   :  { %4351 = vmatprep.subr.bf16.mxu0 %v7461_v54 }
 0x7fa   :  { %4353 = vmatpush1.bf16.msra.mxu0 %v7462_v30 }
 0x7fb   :  { %4355 = vmatprep.subr.bf16.mxu0 %v7463_v26 }
 0x7fe   :  { %4357 = vmatpush1.bf16.msra.mxu0 %v7464_v49 }
 0x7ff   :  { %v6492_v3 = vpop.f32.mrb[12].mxu1  ;;  %4559 = vmatprep.subr.bf16.mxu0 %v4558_v63  ;;  %v263_v63 = vld [vmem:[%s6842_s7 + $0xb8] sm:$0xff] }
 0x800   :  { %v6494_v9 = vpop.f32.mrb[13].mxu1  ;;  %v4578_v46 = vpack.c.bf16 %v263_v63, %v261_v18  ;;  %v276_v63 = vld [vmem:[%s6842_s7 + $0x120] sm:$0xff] }
 0x801   :  { %2429 = vmatmul.mubr.f32.vlgmr.msra.gmra.mrb[16].mxu0 %v6415_v62  ;;  %v250_v62 = vld [vmem:[%s6842_s7 + $0x50] sm:$0xff] }
 0x802   :  { %4561 = vmatpush1.bf16.msra.mxu0 %v4560_v5  ;;  %v4568_v56 = vpack.c.bf16 %v250_v62, %v248_v50  ;;  %v262_v5 = vld [vmem:[%s6842_s7 + $0xb0] sm:$0xff]  ;;  %v271_v50 = vld [vmem:[%s6842_s7 + $0xf8] sm:$0xff] }
 0x803   :  { %4563 = vmatprep.subr.bf16.mxu0 %v4562_v57  ;;  %v265_v57 = vld [vmem:[%s6842_s7 + $0xc8] sm:$0xff]  ;;  %v4580_v20 = vpack.c.bf16 %v262_v5, %v260_v39  ;;  %v283_v39 = vld [vmem:[%s6842_s7 + $0x158] sm:$0xff] }
 0x804   :  { %v4582_v10 = vpack.c.bf16 %v267_v17, %v265_v57  ;;  %v280_v17 = vld [vmem:[%s6842_s7 + $0x140] sm:$0xff] }
 0x806   :  { %4565 = vmatpush1.bf16.msra.mxu0 %v4564_v12  ;;  %v266_v12 = vld [vmem:[%s6842_s7 + $0xd0] sm:$0xff] }
 0x807   :  { %4567 = vmatprep.subr.bf16.mxu0 %v4566_v38  ;;  %v269_v38 = vld [vmem:[%s6842_s7 + $0xe8] sm:$0xff]  ;;  %v4584_v62 = vpack.c.bf16 %v266_v12, %v264_v21  ;;  %v287_v21 = vld [vmem:[%s6842_s7 + $0x178] sm:$0xff] }
 0x808   :  { %v4586_v35 = vpack.c.bf16 %v271_v50, %v269_v38  ;;  %v284_v50 = vld [vmem:[%s6842_s7 + $0x160] sm:$0xff] }
 0x80a   :  { %4569 = vmatpush1.bf16.msra.mxu0 %v4568_v56  ;;  %v270_v56 = vld [vmem:[%s6842_s7 + $0xf0] sm:$0xff] }
 0x80b   :  { %4571 = vmatprep.subr.bf16.mxu0 %v4570_v60  ;;  %v273_v60 = vld [vmem:[%s6842_s7 + $0x108] sm:$0xff]  ;;  %v4588_v7 = vpack.c.bf16 %v270_v56, %v268_v4 }
 0x80c   :  { %v4590_v22 = vpack.c.bf16 %v275_v2, %v273_v60  ;;  %v2587_v2 = vadd.f32 %v6494_v9, %v5770_v45  ;;  %v306_v9 = vld [vmem:[%s6843_s9 + $0x8] sm:$0xff] }
 0x80e   :  { %4573 = vmatpush1.bf16.msra.mxu0 %v4572_v40  ;;  %v274_v40 = vld [vmem:[%s6842_s7 + $0x110] sm:$0xff] }
 0x80f   :  { %4575 = vmatprep.subr.bf16.mxu0 %v4574_v41  ;;  %v277_v41 = vld [vmem:[%s6842_s7 + $0x128] sm:$0xff]  ;;  %v4592_v48 = vpack.c.bf16 %v274_v40, %v272_v25 }
 0x810   :  { %v4594_v18 = vpack.c.bf16 %v279_v8, %v277_v41  ;;  %v323_v41 = vld [vmem:[%s6843_s9 + $0x90] sm:$0xff] }
 0x812   :  { %4577 = vmatpush1.bf16.msra.mxu0 %v4576_v51  ;;  %v278_v51 = vld [vmem:[%s6842_s7 + $0x130] sm:$0xff] }
 0x813   :  { %4579 = vmatprep.subr.bf16.mxu0 %v4578_v46  ;;  %v281_v46 = vld [vmem:[%s6842_s7 + $0x148] sm:$0xff]  ;;  %v4596_v5 = vpack.c.bf16 %v278_v51, %v276_v63  ;;  %v308_v63 = vld [vmem:[%s6843_s9 + $0x18] sm:$0xff] }
 0x814   :  { %v4598_v57 = vpack.c.bf16 %v283_v39, %v281_v46  ;;  %v325_v46 = vld [vmem:[%s6843_s9 + $0xa0] sm:$0xff]  ;;  %v326_v39 = vld [vmem:[%s6843_s9 + $0xa8] sm:$0xff] }
 0x816   :  { %4581 = vmatpush1.bf16.msra.mxu0 %v4580_v20  ;;  %v282_v20 = vld [vmem:[%s6842_s7 + $0x150] sm:$0xff] }
 0x817   :  { %4583 = vmatprep.subr.bf16.mxu0 %v4582_v10  ;;  %v285_v10 = vld [vmem:[%s6842_s7 + $0x168] sm:$0xff]  ;;  %v4600_v12 = vpack.c.bf16 %v282_v20, %v280_v17  ;;  %v309_v17 = vld [vmem:[%s6843_s9 + $0x20] sm:$0xff] }
 0x818   :  { %v4602_v38 = vpack.c.bf16 %v287_v21, %v285_v10  ;;  %v310_v20 = vld [vmem:[%s6843_s9 + $0x28] sm:$0xff]  ;;  %v327_v10 = vld [vmem:[%s6843_s9 + $0xb0] sm:$0xff]  ;;  %v328_v21 = vld [vmem:[%s6843_s9 + $0xb8] sm:$0xff] }
 0x81a   :  { %4585 = vmatpush1.bf16.msra.mxu0 %v4584_v62  ;;  %v286_v62 = vld [vmem:[%s6842_s7 + $0x170] sm:$0xff] }
 0x81b   :  { %4587 = vmatprep.subr.bf16.mxu0 %v4586_v35  ;;  %v4604_v35 = vpack.c.bf16 %v286_v62, %v284_v50  ;;  %v311_v50 = vld [vmem:[%s6843_s9 + $0x30] sm:$0xff]  ;;  %v312_v62 = vld [vmem:[%s6843_s9 + $0x38] sm:$0xff] }
 0x81e   :  { %4589 = vmatpush1.bf16.msra.mxu0 %v4588_v7 }
 0x81f   :  { %4591 = vmatprep.subr.bf16.mxu0 %v4590_v22 }
 0x822   :  { %4593 = vmatpush1.bf16.msra.mxu0 %v4592_v48 }
 0x823   :  { %4595 = vmatprep.subr.bf16.mxu0 %v4594_v18  ;;  %v307_v18 = vld [vmem:[%s6843_s9 + $0x10] sm:$0xff] }
 0x826   :  { %4597 = vmatpush1.bf16.msra.mxu0 %v4596_v5  ;;  %v4628_v5 = vpack.c.bf16 %v308_v63, %v307_v18 }
 0x827   :  { %4599 = vmatprep.subr.bf16.mxu0 %v4598_v57  ;;  %v4630_v57 = vpack.c.bf16 %v326_v39, %v325_v46 }
 0x82a   :  { %4601 = vmatpush1.bf16.msra.mxu0 %v4600_v12  ;;  %v4632_v12 = vpack.c.bf16 %v310_v20, %v309_v17 }
 0x82b   :  { %4603 = vmatprep.subr.bf16.mxu0 %v4602_v38  ;;  %v4634_v38 = vpack.c.bf16 %v328_v21, %v327_v10 }
 0x82e   :  { %4605 = vmatpush1.bf16.msra.mxu0 %v4604_v35  ;;  %v329_v35 = vld [vmem:[%s6843_s9 + $0xc0] sm:$0xff] }
 0x8d4   :  { %v2430_v4 = vpop.f32.mrb[16].mxu0 }
 0x8d5   :  { %v2435_v56 = vadd.f32 %v2430_v4, %v7389_v61  ;;  %v2432_v60 = vpop.f32.mrb[17].mxu0  ;;  %v330_v4 = vld [vmem:[%s6843_s9 + $0xc8] sm:$0xff] }
 0x8d6   :  { %v2436_v7 = vadd.f32 %v2432_v60, %v5854_v16  ;;  %v4638_v60 = vpack.c.bf16 %v330_v4, %v329_v35 }
 0x8d8   :  { %4739 = vtanh.f32 %v2436_v7  ;;  %v314_v7 = vld [vmem:[%s6843_s9 + $0x48] sm:$0xff] }
 0x8d9   :  { %4741 = vtanh.f32 %v2435_v56  ;;  %v4636_v56 = vpack.c.bf16 %v312_v62, %v311_v50 }
 0x8da   :  { %4743 = vtanh.f32 %v2587_v2  ;;  %v313_v2 = vld [vmem:[%s6843_s9 + $0x40] sm:$0xff] }
 0x8e2   :  { %v4740_v22 = vpop.eup %4739 }
 0x8e3   :  { %v4742_v25 = vpop.eup %4741  ;;  %2654 = vmatprep.mubr.f32.mxu1 %v4740_v22  ;;  %v331_v22 = vld [vmem:[%s6843_s9 + $0xd0] sm:$0xff] }
 0x8e4   :  { %v4744_v40 = vpop.eup %4743  ;;  %2655 = vmatmul.mubr.f32.vlgmr.msra.gmra.mrb[14].mxu1 %v4742_v25  ;;  %v332_v25 = vld [vmem:[%s6843_s9 + $0xd8] sm:$0xff] }
 0x8e5   :  { %4497 = vmatpush1.bf16.msra.mxu1 %v7188_v44  ;;  %2725 = vmatprep.mubr.f32.mxu1 %v4744_v40  ;;  %v291_v44 = vld [vmem:[%s6842_s7 + $0x198] sm:$0xff]  ;;  %v4640_v40 = vpack.c.bf16 %v314_v7, %v313_v2 }
 0x8e6   :  { %4499 = vmatprep.subr.bf16.mxu1 %v7189_v6 }
 0x8e9   :  { %4501 = vmatpush1.bf16.msra.mxu1 %v7190_v28  ;;  %v2586_v28 = vadd.f32 %v6492_v3, %v5767_v0  ;;  %v289_v0 = vld [vmem:[%s6842_s7 + $0x188] sm:$0xff]  ;;  %v305_v3 = vld [vmem:[%s6843_s9] sm:$0xff] }
 0x8ea   :  { %4503 = vmatprep.subr.bf16.mxu1 %v7439_v43  ;;  %v4606_v6 = vpack.c.bf16 %v291_v44, %v289_v0  ;;  %v4624_v8 = vpack.c.bf16 %v306_v9, %v305_v3  ;;  %v316_v0 = vld [vmem:[%s6843_s9 + $0x58] sm:$0xff]  ;;  %v333_v44 = vld [vmem:[%s6843_s9 + $0xe0] sm:$0xff] }
 0x8eb   :  { %4745 = vtanh.f32 %v2586_v28  ;;  %v4642_v28 = vpack.c.bf16 %v332_v25, %v331_v22 }
 0x8ec   :  { %4607 = vmatprep.subr.bf16.mxu0 %v4606_v6  ;;  %v334_v6 = vld [vmem:[%s6843_s9 + $0xe8] sm:$0xff] }
 0x8ed   :  { %4505 = vmatpush1.bf16.msra.mxu1 %v7440_v55  ;;  %v293_v55 = vld [vmem:[%s6842_s7 + $0x1a8] sm:$0xff] }
 0x8ee   :  { %4507 = vmatprep.subr.bf16.mxu1 %v7441_v59  ;;  %v295_v59 = vld [vmem:[%s6842_s7 + $0x1b8] sm:$0xff] }
 0x8f1   :  { %4509 = vmatpush1.bf16.msra.mxu1 %v7442_v13  ;;  %v4610_v13 = vpack.c.bf16 %v295_v59, %v293_v55  ;;  %v318_v55 = vld [vmem:[%s6843_s9 + $0x68] sm:$0xff] }
 0x8f2   :  { %4511 = vmatprep.subr.bf16.mxu1 %v7443_v19  ;;  %v292_v19 = vld [vmem:[%s6842_s7 + $0x1a0] sm:$0xff] }
 0x8f5   :  { %4513 = vmatpush1.bf16.msra.mxu1 %v7444_v42  ;;  %v4746_v45 = vpop.eup %4745  ;;  %v294_v42 = vld [vmem:[%s6842_s7 + $0x1b0] sm:$0xff] }
 0x8f6   :  { %4515 = vmatprep.subr.bf16.mxu1 %v7445_v47  ;;  %v4612_v47 = vpack.c.bf16 %v294_v42, %v292_v19  ;;  %v336_v19 = vld [vmem:[%s6843_s9 + $0xf8] sm:$0xff] }
 0x8f9   :  { %4517 = vmatpush1.bf16.msra.mxu1 %v7393_v23  ;;  %v290_v23 = vld [vmem:[%s6842_s7 + $0x190] sm:$0xff] }
 0x8fa   :  { %4519 = vmatprep.subr.bf16.mxu1 %v7446_v52  ;;  %v297_v52 = vld [vmem:[%s6842_s7 + $0x1c8] sm:$0xff] }
 0x8fd   :  { %4521 = vmatpush1.bf16.msra.mxu1 %v7447_v37  ;;  %v299_v37 = vld [vmem:[%s6842_s7 + $0x1d8] sm:$0xff] }
 0x8fe   :  { %4523 = vmatprep.subr.bf16.mxu1 %v7448_v36  ;;  %v296_v36 = vld [vmem:[%s6842_s7 + $0x1c0] sm:$0xff] }
 0x901   :  { %4525 = vmatpush1.bf16.msra.mxu1 %v7449_v24  ;;  %v4614_v24 = vpack.c.bf16 %v299_v37, %v297_v52  ;;  %v320_v52 = vld [vmem:[%s6843_s9 + $0x78] sm:$0xff] }
 0x902   :  { %4527 = vmatprep.subr.bf16.mxu1 %v7450_v53  ;;  %v298_v53 = vld [vmem:[%s6842_s7 + $0x1d0] sm:$0xff] }
 0x905   :  { %4529 = vmatpush1.bf16.msra.mxu1 %v7451_v29  ;;  %v301_v29 = vld [vmem:[%s6842_s7 + $0x1e8] sm:$0xff] }
 0x906   :  { %4531 = vmatprep.subr.bf16.mxu1 %v7452_v31  ;;  %v303_v31 = vld [vmem:[%s6842_s7 + $0x1f8] sm:$0xff] }
 0x909   :  { %4533 = vmatpush1.bf16.msra.mxu1 %v7453_v34  ;;  %v4616_v34 = vpack.c.bf16 %v298_v53, %v296_v36  ;;  %v304_v36 = vld [vmem:[%s6844_s8] sm:$0x3] }
 0x90a   :  { %4535 = vmatprep.subr.bf16.mxu1 %v7454_v14  ;;  %v4618_v14 = vpack.c.bf16 %v303_v31, %v301_v29  ;;  %v7466_v29 = vld [vmem:[#allocation89_spill] sm:$0xff] }
 0x90b   :  { %v2744_v31 = vrot.slane %v304_v36, %v7466_v29 }
 0x90d   :  { %4537 = vmatpush1.bf16.msra.mxu1 %v7455_v27  ;;  %v300_v27 = vld [vmem:[%s6842_s7 + $0x1e0] sm:$0xff] }
 0x90e   :  { %4539 = vmatprep.subr.bf16.mxu1 %v7351_v15  ;;  %v288_v15 = vld [vmem:[%s6842_s7 + $0x180] sm:$0xff] }
 0x90f   :  { %v4608_v43 = vpack.c.bf16 %v290_v23, %v288_v15  ;;  %v4646_v23 = vpack.c.bf16 %v334_v6, %v333_v44 }
 0x911   :  { %4541 = vmatpush1.bf16.msra.mxu1 %v7456_v32  ;;  %4609 = vmatpush1.bf16.msra.mxu0 %v4608_v43  ;;  %v302_v32 = vld [vmem:[%s6842_s7 + $0x1f0] sm:$0xff]  ;;  %v317_v43 = vld [vmem:[%s6843_s9 + $0x60] sm:$0xff] }
 0x912   :  { %4543 = vmatprep.subr.bf16.mxu1 %v7457_v33  ;;  %4611 = vmatprep.subr.bf16.mxu0 %v4610_v13  ;;  %v4620_v33 = vpack.c.bf16 %v302_v32, %v300_v27  ;;  %v4648_v59 = vpack.c.bf16 %v318_v55, %v317_v43  ;;  %v335_v13 = vld [vmem:[%s6843_s9 + $0xf0] sm:$0xff] }
 0x913   :  { %v4650_v42 = vpack.c.bf16 %v336_v19, %v335_v13 }
 0x915   :  { %4545 = vmatpush1.bf16.msra.mxu1 %v7458_v1  ;;  %4613 = vmatpush1.bf16.msra.mxu0 %v4612_v47  ;;  %v321_v1 = vld [vmem:[%s6843_s9 + $0x80] sm:$0xff]  ;;  %v319_v47 = vld [vmem:[%s6843_s9 + $0x70] sm:$0xff] }
 0x916   :  { %4547 = vmatprep.subr.bf16.mxu1 %v7459_v11  ;;  %4615 = vmatprep.subr.bf16.mxu0 %v4614_v24  ;;  %v322_v11 = vld [vmem:[%s6843_s9 + $0x88] sm:$0xff]  ;;  %v4652_v37 = vpack.c.bf16 %v320_v52, %v319_v47  ;;  %v7465_v24 = vld [vmem:[#allocation88_spill] sm:$0xff] }
 0x917   :  { %v2740_v53 = vrot.slane %v304_v36, %v7465_v24 }
 0x919   :  { %4549 = vmatpush1.bf16.msra.mxu1 %v7460_v58  ;;  %4617 = vmatpush1.bf16.msra.mxu0 %v4616_v34  ;;  %v4622_v58 = vpack.c.bf16 %v322_v11, %v321_v1 }
 0x91a   :  { %4551 = vmatprep.subr.bf16.mxu1 %v7461_v54  ;;  %4619 = vmatprep.subr.bf16.mxu0 %v4618_v14 }
 0x91d   :  { %4553 = vmatpush1.bf16.msra.mxu1 %v7462_v30  ;;  %4621 = vmatpush1.bf16.msra.mxu0 %v4620_v33 }
 0x91e   :  { %4555 = vmatprep.subr.bf16.mxu1 %v7463_v26  ;;  %4623 = vmatprep.subr.bf16.mxu0 %v4622_v58  ;;  %v2922_v58 = vld [vmem:[%s6845_s10] ss:$0 sm:$0xff] }
 0x921   :  { %4557 = vmatpush1.bf16.msra.mxu1 %v7464_v49 }
 0x924   :  { %2726 = vmatmul.mubr.f32.vlgmr.msra.gmra.mrb[14].mxu1 %v4746_v45  ;;  %v315_v45 = vld [vmem:[%s6843_s9 + $0x50] sm:$0xff] }
 0x925   :  { %v4644_v15 = vpack.c.bf16 %v316_v0, %v315_v45 }
 0x9f7   :  { %v2727_v54 = vpop.f32.mrb[14].mxu1 }
 0x9f8   :  { %v2732_v30 = vadd.f32 %v2727_v54, %v7389_v61  ;;  %v2729_v26 = vpop.f32.mrb[15].mxu1  ;;  %v324_v61 = vld [vmem:[%s6843_s9 + $0x98] sm:$0xff] }
 0x9f9   :  { %v2733_v49 = vadd.f32 %v2729_v26, %v5854_v16  ;;  %v4626_v48 = vpack.c.bf16 %v324_v61, %v323_v41 }
 0x9fb   :  { %4747 = vtanh.f32 %v2733_v49 }
 0x9fc   :  { %4749 = vtanh.f32 %v2732_v30 }
 0xa05   :  { %v4748_v16 = vpop.eup %4747 }
 0xa06   :  { %v4750_v51 = vpop.eup %4749  ;;  %2811 = vmatprep.mubr.f32.mxu0 %v4748_v16 }
 0xa07   :  { %2812 = vmatmul.mubr.f32.vlgmr.msra.gmra.mrb[18].mxu0 %v4750_v51 }
 0xa08   :  { %4625 = vmatpush3.bf16.msra.mxu0 %v4624_v8 }
 0xa09   :  { %4627 = vmatprep.subr.bf16.mxu0 %v4626_v48 }
 0xa0c   :  { %4629 = vmatpush3.bf16.msra.mxu0 %v4628_v5 }
 0xa0d   :  { %4631 = vmatprep.subr.bf16.mxu0 %v4630_v57 }
 0xa10   :  { %4633 = vmatpush3.bf16.msra.mxu0 %v4632_v12 }
 0xa11   :  { %4635 = vmatprep.subr.bf16.mxu0 %v4634_v38 }
 0xa14   :  { %4637 = vmatpush3.bf16.msra.mxu0 %v4636_v56 }
 0xa15   :  { %4639 = vmatprep.subr.bf16.mxu0 %v4638_v60 }
 0xa18   :  { %4641 = vmatpush3.bf16.msra.mxu0 %v4640_v40 }
 0xa19   :  { %4643 = vmatprep.subr.bf16.mxu0 %v4642_v28 }
 0xa1c   :  { %4645 = vmatpush3.bf16.msra.mxu0 %v4644_v15 }
 0xa1d   :  { %4647 = vmatprep.subr.bf16.mxu0 %v4646_v23 }
 0xa20   :  { %4649 = vmatpush3.bf16.msra.mxu0 %v4648_v59 }
 0xa21   :  { %4651 = vmatprep.subr.bf16.mxu0 %v4650_v42 }
 0xa24   :  { %4653 = vmatpush3.bf16.msra.mxu0 %v4652_v37 }
 0xada   :  { %v2813_v34 = vpop.f32.mrb[18].mxu0 }
 0xadb   :  { %v2814_v14 = vadd.f32 %v2813_v34, %v2740_v53  ;;  %v2815_v27 = vpop.f32.mrb[19].mxu0 }
 0xadc   :  { %v2816_v32 = vadd.f32 %v2815_v27, %v2744_v31 }
 0xadd   :  { %v2818_v1 = vmax.f32 %v2814_v14, 0.0 }
 0xade   :  { %v2819_v33 = vmax.f32 %v2816_v32, 0.0 }
 0xae0   :  { %2890 = vmatprep.mubr.f32.mxu0 %v2819_v33 }
 0xae1   :  { %2891 = vmatmul.mubr.f32.vlgmr.msra.gmra.mrb[20].mxu0 %v2818_v1 }
 0xbb4   :  { %v2955_v11 = vpop.f32.mrb[20].mxu0 }
 0xbb5   :  { %v2956_v54 = vpop.f32.mrb[21].mxu0 }
 0xbb6   :  { %v2957_v30 = vadd.f32 %v2956_v54, %v2955_v11 }
 0xbb8   :  { %v2893_v26 = vadd.f32 %v2957_v30, %v2922_v58 }
 0xbba   :  { %v2896_v49 = vsub.f32 0.0, %v2893_v26 }
 0xbbc   :  { %v2897_v3 = vmul.f32 1.442695, %v2896_v49 }
 0xbbe   :  { %4751 = vpow2.f32 %v2897_v3 }
 0xbc8   :  { %v4752_v9 = vpop.eup %4751 }
 0xbc9   :  { %v2899_v41 = vadd.f32 1.0, %v4752_v9 }
 0xbcb   :  { %4753 = vrcp.f32 %v2899_v41 }
 0xbd5   :  { %v4754_v61 = vpop.eup %4753 }
 0xbd6   :  { %2902 = vst [vmem:[%s6846_s11] sm:$0xff] %v4754_v61 }

</bundles_post_ra>
